<compile_context>
chip_gen: v6e
topology: v6e:2x2x1
jax: 0.10.0
libtpu: 0.0.40
codegen_flags: <defaults>
</compile_context>

<pallas_src>
import functools

import jax
import jax.numpy as jnp
from jax.experimental import pallas as pl
from jax.experimental.pallas import tpu as pltpu

K = 3    # conv kernel size (3x3, padding='same')
PH = 2   # AvgPool2d((2, 1)) frequency pooling factor


def _glu_pool(z, TB, Hc, Wc, Cout, ph):
    """Shared epilogue: split the folded matmul result, GLU, AvgPool2d((ph, 1)).

    z: (..., 2*Cout) f32, already scaled/shifted so z[..., :Cout] = BN(conv(x)) and
    z[..., Cout:] = GLU-linear(BN(conv(x))).
    Returns (TB, Hc // ph, Wc * Cout) f32 with (time, channel) merged on the lane axis.
    """
    z = z.reshape(TB, Hc, Wc, 2 * Cout)
    y = z[..., :Cout]
    lin = z[..., Cout:]
    g = lin * jax.nn.sigmoid(y)                               # GLU; Dropout(p=0) is identity
    # AvgPool2d((ph, 1)) on the lane-merged (W*Cout) layout: pure reshape, the ph row-groups are
    # summed without touching the lane-dense minor axis.
    g4 = g.reshape(TB, Hc // ph, ph, Wc * Cout)
    pooled = g4[:, :, 0, :]
    for r in range(1, ph):
        pooled = pooled + g4[:, :, r, :]
    return pooled * (1.0 / ph)


def make_fused_cnn_kernel(TB, H, W, C1, C2, ph):
    H1 = H // ph
    KK1 = K * K           # block-1 taps (Cin = 1)
    KK2 = K * K * C1      # block-2 im2col contraction
    taps = [(dy, dx) for dy in range(K) for dx in range(K)]

    def kernel(x_ref, p1_ref, p2_ref, out_ref, xpad_ref, a1pad_ref):
        # ---------------- Block 1: 1 -> C1, direct VPU conv (no MXU, no patch scratch) --------
        # Tiny zero-padded copy of the input block provides the 'same' halo.
        xpad_ref[...] = jnp.zeros_like(xpad_ref)
        xpad_ref[:, 1:H + 1, 1:W + 1] = x_ref[...]

        scale1 = p1_ref[KK1:KK1 + 1, :].reshape(1, 1, 1, 2 * C1)   # [bn_scale | ones]
        shift1 = p1_ref[KK1 + 1:KK1 + 2, :].reshape(1, 1, 1, 2 * C1)  # [bn_shift | b_lin]
        acc1 = jnp.zeros((TB, H, W, 2 * C1), jnp.float32)
        for t, (dy, dx) in enumerate(taps):
            xs = xpad_ref[:, dy:dy + H, dx:dx + W]                 # (TB, H, W), time on lanes
            w_row = p1_ref[t:t + 1, :].reshape(1, 1, 1, 2 * C1)    # folded [conv | conv@glu] tap
            acc1 = acc1 + xs[:, :, :, None] * w_row                # 9 broadcast VPU FMAs, f32
        a1 = _glu_pool(acc1 * scale1 + shift1, TB, H, W, C1, ph)   # (TB, H1, W*C1) f32

        # ---------------- Block 2: C1 -> C2, im2col + ONE folded bf16 matmul --------------------
        # Block-1 output goes once (f32 -> bf16) into a small 'same'-padded NHWC scratch.
        a1pad_ref[...] = jnp.zeros_like(a1pad_ref)
        a1pad_ref[:, 1:H1 + 1, 1:W + 1, :] = a1.reshape(TB, H1, W, C1).astype(jnp.bfloat16)

        # im2col as a value: 9 shifted NHWC slices concatenated on the channel axis.
        patches = jnp.concatenate(
            [a1pad_ref[:, dy:dy + H1, dx:dx + W, :] for (dy, dx) in taps], axis=-1)
        m2 = patches.reshape(TB * H1 * W, KK2)                     # (M, 72) bf16
        w2 = p2_ref[0:KK2, :].astype(jnp.bfloat16)                 # (72, 2*C2) folded weights
        acc2 = jnp.dot(m2, w2, preferred_element_type=jnp.float32)  # conv + GLU-linear, one matmul
        scale2 = p2_ref[KK2:KK2 + 1, :]                            # (1, 2*C2)
        shift2 = p2_ref[KK2 + 1:KK2 + 2, :]
        a2 = _glu_pool(acc2 * scale2 + shift2, TB, H1, W, C2, ph)  # (TB, H2, W*C2) f32

        # Lane-dense store: last dim W*C2 (= 128 lanes at these shapes).
        out_ref[...] = a2.astype(out_ref.dtype)

    return kernel


@functools.partial(jax.jit, static_argnames=("C1", "C2", "batch_tile"))
def cnn_forward(x, p1, p2, *, C1, C2, batch_tile=None):
    """x: (B, F, T) spectrogram -> (B, F//4, T, C2) NHWC (transpose to get PyTorch's NCHW)."""
    B, H, W = x.shape
    # >= 2 parallel grid steps by default: keeps both v7x TensorCores busy and lets the
    # input/output DMAs pipeline with compute.
    TB = batch_tile if batch_tile is not None else max(1, B // 2)
    assert B % TB == 0
    assert H % (PH * PH) == 0, "frequency dim must be divisible by 4 (two AvgPool2d((2,1)) stages)"
    H1, H2 = H // PH, H // (PH * PH)

    kernel = make_fused_cnn_kernel(TB, H, W, C1, C2, PH)
    out = pl.pallas_call(
        kernel,
        out_shape=jax.ShapeDtypeStruct((B, H2, W * C2), jnp.float32),
        grid=(B // TB,),
        in_specs=[
            pl.BlockSpec((TB, H, W), lambda b: (b, 0, 0)),   # spectrogram, time on lanes
            pl.BlockSpec(p1.shape, lambda b: (0, 0)),        # packed folded block-1 params
            pl.BlockSpec(p2.shape, lambda b: (0, 0)),        # packed folded block-2 params
        ],
        out_specs=pl.BlockSpec((TB, H2, W * C2), lambda b: (b, 0, 0)),
        scratch_shapes=[
            pltpu.VMEM((TB, H + 2, W + 2), jnp.float32),          # 'same'-padded input halo
            pltpu.VMEM((TB, H1 + 2, W + 2, C1), jnp.bfloat16),    # 'same'-padded block-1 output
        ],
        compiler_params=pltpu.CompilerParams(
            dimension_semantics=("parallel",),
        ),
    )(x, p1, p2)
    return out.reshape(B, H2, W, C2)


def init_block_params(key, Cin, Cout):
    """Synthetic inference-mode ConvBlock parameters, algebraically folded and packed.

    Packed layout, shape (K*K*Cin + 2, 2*Cout):
      rows [0, K*K*Cin) : W_cat = [ conv_w (HWIO, flat (dy,dx,cin)) | conv_w @ (bn_scale * glu_w) ]
      row  K*K*Cin      : [ bn_scale | ones ]
      row  K*K*Cin + 1  : [ bn_shift (conv bias folded) | bn_shift @ glu_w + glu_bias ]
    NOTE: glu_w is used as (Cin, Cout); when loading a real checkpoint this is the TRANSPOSE of
    PyTorch's Conv2d(C, C, 1).weight[:, :, 0, 0].  All folds are done in f32 before any bf16 cast.
    Returns (packed, raw) where `raw` holds the unfused parameters for the pure-JAX reference.
    """
    k1, k2, k3, k4, k5, k6 = jax.random.split(key, 6)
    conv_w = jax.random.normal(k1, (K, K, Cin, Cout), jnp.float32) / (K * K * Cin) ** 0.5
    conv_b = 0.1 * jax.random.normal(k2, (Cout,), jnp.float32)
    gamma = 1.0 + 0.1 * jax.random.normal(k3, (Cout,), jnp.float32)
    beta = 0.1 * jax.random.normal(k4, (Cout,), jnp.float32)
    run_mean = jnp.zeros((Cout,), jnp.float32)      # inference-mode running stats
    run_var = jnp.ones((Cout,), jnp.float32)
    eps = 1e-5
    glu_w_torch = jax.random.normal(k5, (Cout, Cout), jnp.float32) / Cout ** 0.5  # (out, in)
    glu_w = glu_w_torch.T                                                          # used as (in, out)
    glu_b = 0.1 * jax.random.normal(k6, (Cout,), jnp.float32)

    bn_scale = gamma / jnp.sqrt(run_var + eps)
    bn_shift = beta - run_mean * bn_scale + conv_b * bn_scale   # conv bias folded in

    wc = conv_w.reshape(K * K * Cin, Cout)
    w_lin = wc @ (bn_scale[:, None] * glu_w)        # f32 fold of conv -> BN -> GLU-linear
    b_lin = bn_shift @ glu_w + glu_b
    packed = jnp.concatenate([
        jnp.concatenate([wc, w_lin], axis=1),
        jnp.concatenate([bn_scale, jnp.ones_like(bn_scale)])[None, :],
        jnp.concatenate([bn_shift, b_lin])[None, :],
    ], axis=0)
    raw = dict(conv_w=conv_w, conv_b=conv_b, gamma=gamma, beta=beta, run_mean=run_mean,
               run_var=run_var, eps=eps, glu_w=glu_w, glu_b=glu_b)
    return packed, raw


def _ref_block(x_nhwc, raw):
    """Unfused f32 reference for one ConvBlock (validates the weight folding + kernel)."""
    B, H, W, Cin = x_nhwc.shape
    xp = jnp.pad(x_nhwc, ((0, 0), (1, 1), (1, 1), (0, 0)))
    conv = jnp.zeros((B, H, W, raw["conv_w"].shape[-1]), jnp.float32)
    for dy in range(K):
        for dx in range(K):
            conv = conv + jnp.einsum("bhwc,co->bhwo",
                                     xp[:, dy:dy + H, dx:dx + W, :], raw["conv_w"][dy, dx])
    conv = conv + raw["conv_b"]
    bn_scale = raw["gamma"] / jnp.sqrt(raw["run_var"] + raw["eps"])
    y = (conv - raw["run_mean"]) * bn_scale + raw["beta"]        # BatchNorm2d (eval mode)
    lin = jnp.einsum("bhwc,co->bhwo", y, raw["glu_w"]) + raw["glu_b"]
    g = lin * jax.nn.sigmoid(y)                                  # GLU; Dropout(p=0) identity
    return 0.5 * (g[:, 0::2] + g[:, 1::2])                       # AvgPool2d((2, 1))


def _ref_forward(x, raw1, raw2):
    a1 = _ref_block(x[..., None], raw1)
    return _ref_block(a1, raw2)   # (B, F//4, T, C2) NHWC


if __name__ == "__main__":
    key = jax.random.PRNGKey(0)
    kx, kb1, kb2 = jax.random.split(key, 3)

    B, F, T = 2, 16, 8          # small (batch, freq, time) spectrogram
    dims = [8, 16]              # CNN(dims=[8, 16]): channels 1 -> 8 -> 16

    x = jax.random.normal(kx, (B, F, T), jnp.float32)
    p1, raw1 = init_block_params(kb1, 1, dims[0])
    p2, raw2 = init_block_params(kb2, dims[0], dims[1])

    out = cnn_forward(x, p1, p2, C1=dims[0], C2=dims[1])
    out = jax.block_until_ready(out)

    # Two AvgPool2d((2,1)) stages: F 16 -> 8 -> 4; T unchanged; channels -> 16 (NHWC output).
    assert out.shape == (B, F // 4, T, dims[-1]), out.shape
    assert bool(jnp.all(jnp.isfinite(out)))

    # Validate against the unfused f32 reference (block-2 matmul runs in bf16 -> loose tolerance).
    ref = _ref_forward(x, raw1, raw2)
    err = float(jnp.max(jnp.abs(out - ref)))
    assert err < 5e-2, f"max abs error vs unfused f32 reference: {err}"
    print("KERNEL_OK")
</pallas_src>

<mosaic_0001>
module attributes {stable_mosaic.version = 11 : i64} {
  func.func @kernel(%arg0: i32, %arg1: memref<1x16x8xf32, #tpu.memory_space<vmem>>, %arg2: memref<11x16xf32, #tpu.memory_space<vmem>>, %arg3: memref<74x32xf32, #tpu.memory_space<vmem>>, %arg4: memref<1x4x128xf32, #tpu.memory_space<vmem>>, %arg5: memref<1x18x10xf32, #tpu.memory_space<vmem>>, %arg6: memref<1x10x10x8xbf16, #tpu.memory_space<vmem>>) attributes {dimension_semantics = [#tpu.dimension_semantics<parallel>], iteration_bounds = array<i64: 2>, scalar_prefetch = 0 : i64, scratch_operands = 2 : i64, tpu.core_type = #tpu.core_type<tc>, window_params = [{transform_indices = @transform_0, window_bounds = array<i64: 1, 16, 8>}, {pipeline_mode = #tpu.pipeline_mode<synchronous>, transform_indices = @transform_1, window_bounds = array<i64: 11, 16>}, {pipeline_mode = #tpu.pipeline_mode<synchronous>, transform_indices = @transform_2, window_bounds = array<i64: 74, 32>}, {transform_indices = @transform_3, window_bounds = array<i64: 1, 4, 128>}]} {
    %cst = arith.constant 0.000000e+00 : f32
    %0 = vector.broadcast %cst : f32 to vector<1x18x10xf32>
    %c0 = arith.constant 0 : index
    %c0_0 = arith.constant 0 : index
    %c0_1 = arith.constant 0 : index
    %1 = vector.load %arg5[%c0, %c0_0, %c0_1] : memref<1x18x10xf32, #tpu.memory_space<vmem>>, vector<1x18x10xf32>
    tpu.vector_store %arg5[%c0, %c0_0, %c0_1], %0 {strides = array<i32>} : memref<1x18x10xf32, #tpu.memory_space<vmem>>, vector<1x18x10xf32>,
    %c0_2 = arith.constant 0 : index
    %c0_3 = arith.constant 0 : index
    %c0_4 = arith.constant 0 : index
    %2 = vector.load %arg1[%c0_2, %c0_3, %c0_4] : memref<1x16x8xf32, #tpu.memory_space<vmem>>, vector<1x16x8xf32>
    %c0_5 = arith.constant 0 : index
    %c1 = arith.constant 1 : index
    %c1_6 = arith.constant 1 : index
    %3 = vector.load %arg5[%c0_5, %c1, %c1_6] : memref<1x18x10xf32, #tpu.memory_space<vmem>>, vector<1x16x8xf32>
    tpu.vector_store %arg5[%c0_5, %c1, %c1_6], %2 {strides = array<i32>} : memref<1x18x10xf32, #tpu.memory_space<vmem>>, vector<1x16x8xf32>,
    %c9 = arith.constant 9 : index
    %c0_7 = arith.constant 0 : index
    %4 = vector.load %arg2[%c9, %c0_7] : memref<11x16xf32, #tpu.memory_space<vmem>>, vector<1x16xf32>
    %5 = vector.shape_cast %4 : vector<1x16xf32> to vector<1x1x1x16xf32>
    %c10 = arith.constant 10 : index
    %c0_8 = arith.constant 0 : index
    %6 = vector.load %arg2[%c10, %c0_8] : memref<11x16xf32, #tpu.memory_space<vmem>>, vector<1x16xf32>
    %7 = vector.shape_cast %6 : vector<1x16xf32> to vector<1x1x1x16xf32>
    %cst_9 = arith.constant 0.000000e+00 : f32
    %8 = vector.broadcast %cst_9 : f32 to vector<1x16x8x16xf32>
    %c0_10 = arith.constant 0 : index
    %c0_11 = arith.constant 0 : index
    %c0_12 = arith.constant 0 : index
    %9 = vector.load %arg5[%c0_10, %c0_11, %c0_12] : memref<1x18x10xf32, #tpu.memory_space<vmem>>, vector<1x16x8xf32>
    %c0_13 = arith.constant 0 : index
    %c0_14 = arith.constant 0 : index
    %10 = vector.load %arg2[%c0_13, %c0_14] : memref<11x16xf32, #tpu.memory_space<vmem>>, vector<1x16xf32>
    %11 = vector.shape_cast %10 : vector<1x16xf32> to vector<1x1x1x16xf32>
    %12 = vector.shape_cast %9 : vector<1x16x8xf32> to vector<1x16x8x1xf32>
    %13 = vector.broadcast %12 : vector<1x16x8x1xf32> to vector<1x16x8x16xf32>
    %14 = vector.broadcast %11 : vector<1x1x1x16xf32> to vector<1x16x8x16xf32>
    %15 = arith.mulf %13, %14 : vector<1x16x8x16xf32>
    %16 = arith.addf %8, %15 : vector<1x16x8x16xf32>
    %c0_15 = arith.constant 0 : index
    %c0_16 = arith.constant 0 : index
    %c1_17 = arith.constant 1 : index
    %17 = vector.load %arg5[%c0_15, %c0_16, %c1_17] : memref<1x18x10xf32, #tpu.memory_space<vmem>>, vector<1x16x8xf32>
    %c1_18 = arith.constant 1 : index
    %c0_19 = arith.constant 0 : index
    %18 = vector.load %arg2[%c1_18, %c0_19] : memref<11x16xf32, #tpu.memory_space<vmem>>, vector<1x16xf32>
    %19 = vector.shape_cast %18 : vector<1x16xf32> to vector<1x1x1x16xf32>
    %20 = vector.shape_cast %17 : vector<1x16x8xf32> to vector<1x16x8x1xf32>
    %21 = vector.broadcast %20 : vector<1x16x8x1xf32> to vector<1x16x8x16xf32>
    %22 = vector.broadcast %19 : vector<1x1x1x16xf32> to vector<1x16x8x16xf32>
    %23 = arith.mulf %21, %22 : vector<1x16x8x16xf32>
    %24 = arith.addf %16, %23 : vector<1x16x8x16xf32>
    %c0_20 = arith.constant 0 : index
    %c0_21 = arith.constant 0 : index
    %c2 = arith.constant 2 : index
    %25 = vector.load %arg5[%c0_20, %c0_21, %c2] : memref<1x18x10xf32, #tpu.memory_space<vmem>>, vector<1x16x8xf32>
    %c2_22 = arith.constant 2 : index
    %c0_23 = arith.constant 0 : index
    %26 = vector.load %arg2[%c2_22, %c0_23] : memref<11x16xf32, #tpu.memory_space<vmem>>, vector<1x16xf32>
    %27 = vector.shape_cast %26 : vector<1x16xf32> to vector<1x1x1x16xf32>
    %28 = vector.shape_cast %25 : vector<1x16x8xf32> to vector<1x16x8x1xf32>
    %29 = vector.broadcast %28 : vector<1x16x8x1xf32> to vector<1x16x8x16xf32>
    %30 = vector.broadcast %27 : vector<1x1x1x16xf32> to vector<1x16x8x16xf32>
    %31 = arith.mulf %29, %30 : vector<1x16x8x16xf32>
    %32 = arith.addf %24, %31 : vector<1x16x8x16xf32>
    %c0_24 = arith.constant 0 : index
    %c1_25 = arith.constant 1 : index
    %c0_26 = arith.constant 0 : index
    %33 = vector.load %arg5[%c0_24, %c1_25, %c0_26] : memref<1x18x10xf32, #tpu.memory_space<vmem>>, vector<1x16x8xf32>
    %c3 = arith.constant 3 : index
    %c0_27 = arith.constant 0 : index
    %34 = vector.load %arg2[%c3, %c0_27] : memref<11x16xf32, #tpu.memory_space<vmem>>, vector<1x16xf32>
    %35 = vector.shape_cast %34 : vector<1x16xf32> to vector<1x1x1x16xf32>
    %36 = vector.shape_cast %33 : vector<1x16x8xf32> to vector<1x16x8x1xf32>
    %37 = vector.broadcast %36 : vector<1x16x8x1xf32> to vector<1x16x8x16xf32>
    %38 = vector.broadcast %35 : vector<1x1x1x16xf32> to vector<1x16x8x16xf32>
    %39 = arith.mulf %37, %38 : vector<1x16x8x16xf32>
    %40 = arith.addf %32, %39 : vector<1x16x8x16xf32>
    %c0_28 = arith.constant 0 : index
    %c1_29 = arith.constant 1 : index
    %c1_30 = arith.constant 1 : index
    %41 = vector.load %arg5[%c0_28, %c1_29, %c1_30] : memref<1x18x10xf32, #tpu.memory_space<vmem>>, vector<1x16x8xf32>
    %c4 = arith.constant 4 : index
    %c0_31 = arith.constant 0 : index
    %42 = vector.load %arg2[%c4, %c0_31] : memref<11x16xf32, #tpu.memory_space<vmem>>, vector<1x16xf32>
    %43 = vector.shape_cast %42 : vector<1x16xf32> to vector<1x1x1x16xf32>
    %44 = vector.shape_cast %41 : vector<1x16x8xf32> to vector<1x16x8x1xf32>
    %45 = vector.broadcast %44 : vector<1x16x8x1xf32> to vector<1x16x8x16xf32>
    %46 = vector.broadcast %43 : vector<1x1x1x16xf32> to vector<1x16x8x16xf32>
    %47 = arith.mulf %45, %46 : vector<1x16x8x16xf32>
    %48 = arith.addf %40, %47 : vector<1x16x8x16xf32>
    %c0_32 = arith.constant 0 : index
    %c1_33 = arith.constant 1 : index
    %c2_34 = arith.constant 2 : index
    %49 = vector.load %arg5[%c0_32, %c1_33, %c2_34] : memref<1x18x10xf32, #tpu.memory_space<vmem>>, vector<1x16x8xf32>
    %c5 = arith.constant 5 : index
    %c0_35 = arith.constant 0 : index
    %50 = vector.load %arg2[%c5, %c0_35] : memref<11x16xf32, #tpu.memory_space<vmem>>, vector<1x16xf32>
    %51 = vector.shape_cast %50 : vector<1x16xf32> to vector<1x1x1x16xf32>
    %52 = vector.shape_cast %49 : vector<1x16x8xf32> to vector<1x16x8x1xf32>
    %53 = vector.broadcast %52 : vector<1x16x8x1xf32> to vector<1x16x8x16xf32>
    %54 = vector.broadcast %51 : vector<1x1x1x16xf32> to vector<1x16x8x16xf32>
    %55 = arith.mulf %53, %54 : vector<1x16x8x16xf32>
    %56 = arith.addf %48, %55 : vector<1x16x8x16xf32>
    %c0_36 = arith.constant 0 : index
    %c2_37 = arith.constant 2 : index
    %c0_38 = arith.constant 0 : index
    %57 = vector.load %arg5[%c0_36, %c2_37, %c0_38] : memref<1x18x10xf32, #tpu.memory_space<vmem>>, vector<1x16x8xf32>
    %c6 = arith.constant 6 : index
    %c0_39 = arith.constant 0 : index
    %58 = vector.load %arg2[%c6, %c0_39] : memref<11x16xf32, #tpu.memory_space<vmem>>, vector<1x16xf32>
    %59 = vector.shape_cast %58 : vector<1x16xf32> to vector<1x1x1x16xf32>
    %60 = vector.shape_cast %57 : vector<1x16x8xf32> to vector<1x16x8x1xf32>
    %61 = vector.broadcast %60 : vector<1x16x8x1xf32> to vector<1x16x8x16xf32>
    %62 = vector.broadcast %59 : vector<1x1x1x16xf32> to vector<1x16x8x16xf32>
    %63 = arith.mulf %61, %62 : vector<1x16x8x16xf32>
    %64 = arith.addf %56, %63 : vector<1x16x8x16xf32>
    %c0_40 = arith.constant 0 : index
    %c2_41 = arith.constant 2 : index
    %c1_42 = arith.constant 1 : index
    %65 = vector.load %arg5[%c0_40, %c2_41, %c1_42] : memref<1x18x10xf32, #tpu.memory_space<vmem>>, vector<1x16x8xf32>
    %c7 = arith.constant 7 : index
    %c0_43 = arith.constant 0 : index
    %66 = vector.load %arg2[%c7, %c0_43] : memref<11x16xf32, #tpu.memory_space<vmem>>, vector<1x16xf32>
    %67 = vector.shape_cast %66 : vector<1x16xf32> to vector<1x1x1x16xf32>
    %68 = vector.shape_cast %65 : vector<1x16x8xf32> to vector<1x16x8x1xf32>
    %69 = vector.broadcast %68 : vector<1x16x8x1xf32> to vector<1x16x8x16xf32>
    %70 = vector.broadcast %67 : vector<1x1x1x16xf32> to vector<1x16x8x16xf32>
    %71 = arith.mulf %69, %70 : vector<1x16x8x16xf32>
    %72 = arith.addf %64, %71 : vector<1x16x8x16xf32>
    %c0_44 = arith.constant 0 : index
    %c2_45 = arith.constant 2 : index
    %c2_46 = arith.constant 2 : index
    %73 = vector.load %arg5[%c0_44, %c2_45, %c2_46] : memref<1x18x10xf32, #tpu.memory_space<vmem>>, vector<1x16x8xf32>
    %c8 = arith.constant 8 : index
    %c0_47 = arith.constant 0 : index
    %74 = vector.load %arg2[%c8, %c0_47] : memref<11x16xf32, #tpu.memory_space<vmem>>, vector<1x16xf32>
    %75 = vector.shape_cast %74 : vector<1x16xf32> to vector<1x1x1x16xf32>
    %76 = vector.shape_cast %73 : vector<1x16x8xf32> to vector<1x16x8x1xf32>
    %77 = vector.broadcast %76 : vector<1x16x8x1xf32> to vector<1x16x8x16xf32>
    %78 = vector.broadcast %75 : vector<1x1x1x16xf32> to vector<1x16x8x16xf32>
    %79 = arith.mulf %77, %78 : vector<1x16x8x16xf32>
    %80 = arith.addf %72, %79 : vector<1x16x8x16xf32>
    %81 = vector.broadcast %5 : vector<1x1x1x16xf32> to vector<1x16x8x16xf32>
    %82 = arith.mulf %80, %81 : vector<1x16x8x16xf32>
    %83 = vector.broadcast %7 : vector<1x1x1x16xf32> to vector<1x16x8x16xf32>
    %84 = arith.addf %82, %83 : vector<1x16x8x16xf32>
    %85 = vector.extract_strided_slice %84 {offsets = [0, 0, 0, 0], sizes = [1, 16, 8, 8], strides = [1, 1, 1, 1]} : vector<1x16x8x16xf32> to vector<1x16x8x8xf32>
    %86 = vector.extract_strided_slice %84 {offsets = [0, 0, 0, 8], sizes = [1, 16, 8, 8], strides = [1, 1, 1, 1]} : vector<1x16x8x16xf32> to vector<1x16x8x8xf32>
    %87 = arith.negf %85 : vector<1x16x8x8xf32>
    %88 = math.exp %87 : vector<1x16x8x8xf32>
    %cst_48 = arith.constant 1.000000e+00 : f32
    %89 = vector.broadcast %cst_48 : f32 to vector<1x16x8x8xf32>
    %90 = arith.addf %89, %88 : vector<1x16x8x8xf32>
    %91 = arith.divf %89, %90 : vector<1x16x8x8xf32>
    %92 = arith.mulf %86, %91 : vector<1x16x8x8xf32>
    %93 = vector.shape_cast %92 : vector<1x16x8x8xf32> to vector<1x8x2x64xf32>
    %94 = vector.extract_strided_slice %93 {offsets = [0, 0, 0, 0], sizes = [1, 8, 1, 64], strides = [1, 1, 1, 1]} : vector<1x8x2x64xf32> to vector<1x8x1x64xf32>
    %95 = vector.shape_cast %94 : vector<1x8x1x64xf32> to vector<1x8x64xf32>
    %96 = vector.extract_strided_slice %93 {offsets = [0, 0, 1, 0], sizes = [1, 8, 1, 64], strides = [1, 1, 1, 1]} : vector<1x8x2x64xf32> to vector<1x8x1x64xf32>
    %97 = vector.shape_cast %96 : vector<1x8x1x64xf32> to vector<1x8x64xf32>
    %98 = arith.addf %95, %97 : vector<1x8x64xf32>
    %cst_49 = arith.constant 5.000000e-01 : f32
    %99 = vector.broadcast %cst_49 : f32 to vector<1x8x64xf32>
    %100 = arith.mulf %98, %99 : vector<1x8x64xf32>
    %cst_50 = arith.constant 0.000000e+00 : bf16
    %101 = vector.broadcast %cst_50 : bf16 to vector<1x10x10x8xbf16>
    %c0_51 = arith.constant 0 : index
    %c0_52 = arith.constant 0 : index
    %c0_53 = arith.constant 0 : index
    %c0_54 = arith.constant 0 : index
    %102 = vector.load %arg6[%c0_51, %c0_52, %c0_53, %c0_54] : memref<1x10x10x8xbf16, #tpu.memory_space<vmem>>, vector<1x10x10x8xbf16>
    tpu.vector_store %arg6[%c0_51, %c0_52, %c0_53, %c0_54], %101 {strides = array<i32>} : memref<1x10x10x8xbf16, #tpu.memory_space<vmem>>, vector<1x10x10x8xbf16>,
    %103 = vector.shape_cast %100 : vector<1x8x64xf32> to vector<1x8x8x8xf32>
    %104 = arith.truncf %103 : vector<1x8x8x8xf32> to vector<1x8x8x8xbf16>
    %c0_55 = arith.constant 0 : index
    %c1_56 = arith.constant 1 : index
    %c1_57 = arith.constant 1 : index
    %c0_58 = arith.constant 0 : index
    %105 = vector.load %arg6[%c0_55, %c1_56, %c1_57, %c0_58] : memref<1x10x10x8xbf16, #tpu.memory_space<vmem>>, vector<1x8x8x8xbf16>
    tpu.vector_store %arg6[%c0_55, %c1_56, %c1_57, %c0_58], %104 {strides = array<i32>} : memref<1x10x10x8xbf16, #tpu.memory_space<vmem>>, vector<1x8x8x8xbf16>,
    %c0_59 = arith.constant 0 : index
    %c0_60 = arith.constant 0 : index
    %c0_61 = arith.constant 0 : index
    %c0_62 = arith.constant 0 : index
    %106 = vector.load %arg6[%c0_59, %c0_60, %c0_61, %c0_62] : memref<1x10x10x8xbf16, #tpu.memory_space<vmem>>, vector<1x8x8x8xbf16>
    %c0_63 = arith.constant 0 : index
    %c0_64 = arith.constant 0 : index
    %c1_65 = arith.constant 1 : index
    %c0_66 = arith.constant 0 : index
    %107 = vector.load %arg6[%c0_63, %c0_64, %c1_65, %c0_66] : memref<1x10x10x8xbf16, #tpu.memory_space<vmem>>, vector<1x8x8x8xbf16>
    %c0_67 = arith.constant 0 : index
    %c0_68 = arith.constant 0 : index
    %c2_69 = arith.constant 2 : index
    %c0_70 = arith.constant 0 : index
    %108 = vector.load %arg6[%c0_67, %c0_68, %c2_69, %c0_70] : memref<1x10x10x8xbf16, #tpu.memory_space<vmem>>, vector<1x8x8x8xbf16>
    %c0_71 = arith.constant 0 : index
    %c1_72 = arith.constant 1 : index
    %c0_73 = arith.constant 0 : index
    %c0_74 = arith.constant 0 : index
    %109 = vector.load %arg6[%c0_71, %c1_72, %c0_73, %c0_74] : memref<1x10x10x8xbf16, #tpu.memory_space<vmem>>, vector<1x8x8x8xbf16>
    %c0_75 = arith.constant 0 : index
    %c1_76 = arith.constant 1 : index
    %c1_77 = arith.constant 1 : index
    %c0_78 = arith.constant 0 : index
    %110 = vector.load %arg6[%c0_75, %c1_76, %c1_77, %c0_78] : memref<1x10x10x8xbf16, #tpu.memory_space<vmem>>, vector<1x8x8x8xbf16>
    %c0_79 = arith.constant 0 : index
    %c1_80 = arith.constant 1 : index
    %c2_81 = arith.constant 2 : index
    %c0_82 = arith.constant 0 : index
    %111 = vector.load %arg6[%c0_79, %c1_80, %c2_81, %c0_82] : memref<1x10x10x8xbf16, #tpu.memory_space<vmem>>, vector<1x8x8x8xbf16>
    %c0_83 = arith.constant 0 : index
    %c2_84 = arith.constant 2 : index
    %c0_85 = arith.constant 0 : index
    %c0_86 = arith.constant 0 : index
    %112 = vector.load %arg6[%c0_83, %c2_84, %c0_85, %c0_86] : memref<1x10x10x8xbf16, #tpu.memory_space<vmem>>, vector<1x8x8x8xbf16>
    %c0_87 = arith.constant 0 : index
    %c2_88 = arith.constant 2 : index
    %c1_89 = arith.constant 1 : index
    %c0_90 = arith.constant 0 : index
    %113 = vector.load %arg6[%c0_87, %c2_88, %c1_89, %c0_90] : memref<1x10x10x8xbf16, #tpu.memory_space<vmem>>, vector<1x8x8x8xbf16>
    %c0_91 = arith.constant 0 : index
    %c2_92 = arith.constant 2 : index
    %c2_93 = arith.constant 2 : index
    %c0_94 = arith.constant 0 : index
    %114 = vector.load %arg6[%c0_91, %c2_92, %c2_93, %c0_94] : memref<1x10x10x8xbf16, #tpu.memory_space<vmem>>, vector<1x8x8x8xbf16>
    %115 = tpu.concatenate %106, %107, %108, %109, %110, %111, %112, %113, %114 in 3 : vector<1x8x8x8xbf16>, vector<1x8x8x8xbf16>, vector<1x8x8x8xbf16>, vector<1x8x8x8xbf16>, vector<1x8x8x8xbf16>, vector<1x8x8x8xbf16>, vector<1x8x8x8xbf16>, vector<1x8x8x8xbf16>, vector<1x8x8x8xbf16> -> vector<1x8x8x72xbf16>
    %116 = vector.shape_cast %115 : vector<1x8x8x72xbf16> to vector<64x72xbf16>
    %c0_95 = arith.constant 0 : index
    %c0_96 = arith.constant 0 : index
    %117 = vector.load %arg3[%c0_95, %c0_96] : memref<74x32xf32, #tpu.memory_space<vmem>>, vector<72x32xf32>
    %118 = arith.truncf %117 : vector<72x32xf32> to vector<72x32xbf16>
    %cst_97 = arith.constant dense<0.000000e+00> : vector<64x32xf32>
    %119 = tpu.matmul %116, %118, %cst_97 {dimension_numbers = #tpu.dot_dimension_numbers<[1], [0], [0], [1], [0, 0, 1, 1], [], []>} : vector<64x72xbf16>, vector<72x32xbf16>, vector<64x32xf32> -> vector<64x32xf32>
    %c72 = arith.constant 72 : index
    %c0_98 = arith.constant 0 : index
    %120 = vector.load %arg3[%c72, %c0_98] : memref<74x32xf32, #tpu.memory_space<vmem>>, vector<1x32xf32>
    %c73 = arith.constant 73 : index
    %c0_99 = arith.constant 0 : index
    %121 = vector.load %arg3[%c73, %c0_99] : memref<74x32xf32, #tpu.memory_space<vmem>>, vector<1x32xf32>
    %122 = vector.broadcast %120 : vector<1x32xf32> to vector<64x32xf32>
    %123 = arith.mulf %119, %122 : vector<64x32xf32>
    %124 = vector.broadcast %121 : vector<1x32xf32> to vector<64x32xf32>
    %125 = arith.addf %123, %124 : vector<64x32xf32>
    %126 = vector.shape_cast %125 : vector<64x32xf32> to vector<1x8x8x32xf32>
    %127 = vector.extract_strided_slice %126 {offsets = [0, 0, 0, 0], sizes = [1, 8, 8, 16], strides = [1, 1, 1, 1]} : vector<1x8x8x32xf32> to vector<1x8x8x16xf32>
    %128 = vector.extract_strided_slice %126 {offsets = [0, 0, 0, 16], sizes = [1, 8, 8, 16], strides = [1, 1, 1, 1]} : vector<1x8x8x32xf32> to vector<1x8x8x16xf32>
    %129 = arith.negf %127 : vector<1x8x8x16xf32>
    %130 = math.exp %129 : vector<1x8x8x16xf32>
    %cst_100 = arith.constant 1.000000e+00 : f32
    %131 = vector.broadcast %cst_100 : f32 to vector<1x8x8x16xf32>
    %132 = arith.addf %131, %130 : vector<1x8x8x16xf32>
    %133 = arith.divf %131, %132 : vector<1x8x8x16xf32>
    %134 = arith.mulf %128, %133 : vector<1x8x8x16xf32>
    %135 = vector.shape_cast %134 : vector<1x8x8x16xf32> to vector<1x4x2x128xf32>
    %136 = vector.extract_strided_slice %135 {offsets = [0, 0, 0, 0], sizes = [1, 4, 1, 128], strides = [1, 1, 1, 1]} : vector<1x4x2x128xf32> to vector<1x4x1x128xf32>
    %137 = vector.shape_cast %136 : vector<1x4x1x128xf32> to vector<1x4x128xf32>
    %138 = vector.extract_strided_slice %135 {offsets = [0, 0, 1, 0], sizes = [1, 4, 1, 128], strides = [1, 1, 1, 1]} : vector<1x4x2x128xf32> to vector<1x4x1x128xf32>
    %139 = vector.shape_cast %138 : vector<1x4x1x128xf32> to vector<1x4x128xf32>
    %140 = arith.addf %137, %139 : vector<1x4x128xf32>
    %cst_101 = arith.constant 5.000000e-01 : f32
    %141 = vector.broadcast %cst_101 : f32 to vector<1x4x128xf32>
    %142 = arith.mulf %140, %141 : vector<1x4x128xf32>
    %c0_102 = arith.constant 0 : index
    %c0_103 = arith.constant 0 : index
    %c0_104 = arith.constant 0 : index
    %143 = vector.load %arg4[%c0_102, %c0_103, %c0_104] : memref<1x4x128xf32, #tpu.memory_space<vmem>>, vector<1x4x128xf32>
    tpu.vector_store %arg4[%c0_102, %c0_103, %c0_104], %142 {strides = array<i32>} : memref<1x4x128xf32, #tpu.memory_space<vmem>>, vector<1x4x128xf32>,
    return
  }
  func.func @transform_0(%arg0: i32) -> (i32, i32, i32) {
    %c0_i32 = arith.constant 0 : i32
    %c0_i32_0 = arith.constant 0 : i32
    %c0_i32_1 = arith.constant 0 : i32
    return %arg0, %c0_i32, %c0_i32_0 : i32, i32, i32
  }
  func.func @transform_1(%arg0: i32) -> (i32, i32) {
    %c0_i32 = arith.constant 0 : i32
    %c0_i32_0 = arith.constant 0 : i32
    %c0_i32_1 = arith.constant 0 : i32
    return %c0_i32, %c0_i32_0 : i32, i32
  }
  func.func @transform_2(%arg0: i32) -> (i32, i32) {
    %c0_i32 = arith.constant 0 : i32
    %c0_i32_0 = arith.constant 0 : i32
    %c0_i32_1 = arith.constant 0 : i32
    return %c0_i32, %c0_i32_0 : i32, i32
  }
  func.func @transform_3(%arg0: i32) -> (i32, i32, i32) {
    %c0_i32 = arith.constant 0 : i32
    %c0_i32_0 = arith.constant 0 : i32
    %c0_i32_1 = arith.constant 0 : i32
    return %arg0, %c0_i32, %c0_i32_0 : i32, i32, i32
  }
}

</mosaic_0001>

<bundles_post_ra>
// kernel: cnn_forward.1
= control target key start
LH: loop header
LB: loop body
LE: loop exit
PB: predicated region body
PF: predicated region fallthrough
CT: control target
= control target key end

     0   :  { %s4859_s12 = smov 0   ;;  %s7252_s0 = inlined_call_operand.vmem [shape: f32[2,16,8], index: 0, kind: input, shape index: {}]   ;;  %s7253_s1 = inlined_call_operand.vmem [shape: f32[11,16], index: 1, kind: input, shape index: {}]   ;;  %s7254_s2 = inlined_call_operand.vmem [shape: f32[74,32], index: 2, kind: input, shape index: {}]   ;;  %s7255_s3 = inlined_call_operand.vmem [shape: f32[2,4,128], index: 3, kind: output, shape index: {}]  }
   0x1 LB: > { %s4448_s13 = sadd.s32 4294967295, %s4817_s12   ;;  %p4452_p0 = scmp.ge.s32.totalorder %s4817_s12, 1  ;;  %s4817_s12 = sphi %s4859_s12, %s13_s12  }
   0x2   : > { %p137_p1 = scmp.lt.s32.totalorder %s4817_s12, 3 }
   0x4   : > { %p138_p2 = pnand %p4452_p0, %p137_p1 }
   0x6   : > { %141 = sbr.rel (%p138_p2) target bundleno = 2169 (0x879), region = 32 }
   0xb   : > { %p160_p3 = scmp.lt.s32.totalorder %s4448_s13, 1  ;;  %vm170_vm0 = vcmask 80896   ;;  %vm173_vm1 = vcmask 74752   ;;  %v7256_v0 = vmov 0.0   ;;  %s4820_s18 = smov 1   ;;  %v193_v3 = vlaneseq }
   0xc   : > { %171 = vst.msk [vmem:[#allocation2] sm:$0xff] %vm170_vm0, %v7256_v0  ;;  %172 = vst.msk [vmem:[#allocation2 + $0x8] sm:$0xff] %vm170_vm0, %v7256_v0  ;;  %vm185_vm2 = vcmask 72712   ;;  %vm2384_vm3 = vcmask 60416   ;;  %vm2386_vm4 = vcmask 57344   ;;  %s4822_s16 = smov 8  }
   0xd   : > { %174 = vst.msk [vmem:[#allocation2 + $0x10] sm:$0x3] %vm173_vm1, %v7256_v0  ;;  %s7392_s13 = smov (!%p160_p3, %s4448_s13), 1  ;;  %v4876_v5 = vshrl.u32 %v193_v3, 7  ;;  %s4825_s19 = smov 56   ;;  %vm2281_vm5 = vcmask 64512  }
   0xe   : > { %s4575_s14 = sshll.u32 %s7392_s13, 4  ;;  %s4826_s20 = smov 64   ;;  %vm2299_vm6 = vcmask 195584   ;;  %vm2290_vm7 = vcmask 130048   ;;  %vm2308_vm8 = vcmask 261120   ;;  %vm2317_vm9 = vcmask 326656  }
   0xf   : > { %s164_s17 = scalar_lea.vmem %s7252_s0, %s4575_s14  ;;  %7265 = vst [vmem:[#allocation4_spill] sm:$0xff] %v4876_v5  ;;  %v4879_v7 = vsub.s32 2, %v4876_v5  ;;  %v4883_v10 = vsub.s32 4, %v4876_v5  ;;  %v4886_v11 = vsub.s32 3, %v4876_v5  ;;  %v4891_v14 = vsub.s32 5, %v4876_v5  ;;  %s4827_s21 = smov 120  }
  0x10   : > { %v175_v1 = vld [vmem:[%s164_s17] sm:$0xff]  ;;  %v176_v2 = vld [vmem:[%s164_s17 + $0x8] sm:$0xff]  ;;  %v4894_v15 = vsub.s32 0, %v4876_v5  ;;  %v4899_v18 = vsub.s32 6, %v4876_v5  ;;  %v4903_v20 = vsub.s32 1, %v4876_v5  ;;  %v4907_v22 = vsub.s32 7, %v4876_v5 }
  0x11   : > { %179 = vrot.lane.b32.xlu0 %v175_v1, %s4820_s18  ;;  %s4823_s17 = smov 16   ;;  %s4830_s22 = smov 24   ;;  %vm2326_vm10 = vcmask 392192   ;;  %vm2335_vm11 = vcmask 457728   ;;  %vm2527_vm12 = vcmask 1041409   ;;  %vm2530_vm13 = vcmask 1042434  }
  0x12   : > { %s4831_s23 = smov 32   ;;  %s4832_s24 = smov 40   ;;  %vm2533_vm14 = vcmask 1043459   ;;  %vm2536_vm15 = vcmask 1044484   ;;  %vm2539_vm0 = vcmask 1045509   ;;  %vm2542_vm1 = vcmask 1046534  }
  0x13   : > { %s4833_s25 = smov 112   ;;  %s4834_s26 = smov 96  }
  0x14   : > { %s4835_s27 = smov 104   ;;  %s4836_s28 = smov 80  }
  0x15   : > { %181 = vrot.lane.b32.xlu0 %v176_v2, %s4820_s18  ;;  %s4824_s18 = smov 48   ;;  %s4837_s29 = smov 88  }
  0x16   : > { %s4838_s30 = smov 72  }
  0x83   : > { %v180_v4 = vpop.permute.xlu0 %179 }
  0x84   : > { %186 = vst.msk [vmem:[#allocation2 + $0x1] sm:$0xff] %vm185_vm2, %v180_v4 }
  0x87   : > { %v182_v6 = vpop.permute.xlu0 %181 }
  0x88   : > { %187 = vst.msk [vmem:[#allocation2 + $0x9] sm:$0xff] %vm185_vm2, %v182_v6  ;;  %vm2545_vm2 = vcmask 1047559  }
  0x8b   : > { %v190_v8 = vld [vmem:[#allocation2] sm:$0xff] }
  0x8c   : > { %v210_v9 = vrot.slane %v190_v8, %v4879_v7  ;;  %v224_v12 = vrot.slane %v190_v8, %v4883_v10  ;;  %v217_v13 = vrot.slane %v190_v8, %v4886_v11  ;;  %v231_v16 = vrot.slane %v190_v8, %v4891_v14  ;;  %v543_v29 = vld [vmem:[#allocation2 + $0x1] sm:$0xff] }
  0x8d   : > { %v196_v17 = vrot.slane %v190_v8, %v4894_v15  ;;  %v238_v19 = vrot.slane %v190_v8, %v4899_v18  ;;  %v203_v21 = vrot.slane %v190_v8, %v4903_v20  ;;  %v245_v23 = vrot.slane %v190_v8, %v4907_v22 }
  0x8e   : > { %352 = vbcast.lane.b32.xlu0 %v210_v9, 257  ;;  %212 = vbcast.lane.b32.xlu1 %v210_v9, 256  ;;  %v4915_v30 = vrot.slane %v543_v29, %v4879_v7  ;;  %v4920_v32 = vrot.slane %v543_v29, %v4886_v11  ;;  %v4925_v34 = vrot.slane %v543_v29, %v4883_v10 }
  0x8f   : > { %v191_v24 = vld [vmem:[#allocation2 + $0x8] sm:$0xff]  ;;  %v4930_v36 = vrot.slane %v543_v29, %v4891_v14  ;;  %v4935_v38 = vrot.slane %v543_v29, %v4894_v15  ;;  %v4939_v39 = vrot.slane %v543_v29, %v4899_v18  ;;  %v4943_v40 = vrot.slane %v543_v29, %v4903_v20 }
  0x90   : > { %v252_v25 = vrot.slane %v191_v24, %v4894_v15  ;;  %v259_v26 = vrot.slane %v191_v24, %v4903_v20  ;;  %v266_v27 = vrot.slane %v191_v24, %v4879_v7  ;;  %v273_v28 = vrot.slane %v191_v24, %v4886_v11  ;;  %v544_v42 = vld [vmem:[#allocation2 + $0x9] sm:$0xff] }
  0x91   : > { %v280_v31 = vrot.slane %v191_v24, %v4883_v10  ;;  %v287_v33 = vrot.slane %v191_v24, %v4891_v14  ;;  %v294_v35 = vrot.slane %v191_v24, %v4899_v18  ;;  %v301_v37 = vrot.slane %v191_v24, %v4907_v22 }
  0x92   : > { %226 = vbcast.lane.b32.xlu0 %v224_v12, 256  ;;  %219 = vbcast.lane.b32.xlu1 %v217_v13, 256  ;;  %v4948_v41 = vrot.slane %v543_v29, %v4907_v22  ;;  %v4952_v43 = vrot.slane %v544_v42, %v4894_v15  ;;  %v4962_v46 = vrot.slane %v544_v42, %v4903_v20 }
  0x93   : > { %v4970_v49 = vrot.slane %v544_v42, %v4879_v7  ;;  %v4984_v54 = vrot.slane %v544_v42, %v4886_v11  ;;  %v4999_v59 = vrot.slane %v544_v42, %v4883_v10  ;;  %v5014_v1 = vrot.slane %v544_v42, %v4891_v14 }
  0x94   : > { %v5023_v4 = vrot.slane %v544_v42, %v4899_v18 }
  0x96   : > { %360 = vbcast.lane.b32.xlu0 %v224_v12, 257  ;;  %356 = vbcast.lane.b32.xlu1 %v217_v13, 257 }
  0x9a   : > { %233 = vbcast.lane.b32.xlu1 %v231_v16, 256  ;;  %198 = vbcast.lane.b32.xlu0 %v196_v17, 256 }
  0x9e   : > { %364 = vbcast.lane.b32.xlu1 %v231_v16, 257  ;;  %240 = vbcast.lane.b32.xlu0 %v238_v19, 256 }
  0xa2   : > { %205 = vbcast.lane.b32.xlu1 %v203_v21, 256  ;;  %344 = vbcast.lane.b32.xlu0 %v196_v17, 257 }
  0xa6   : > { %247 = vbcast.lane.b32.xlu1 %v245_v23, 256  ;;  %368 = vbcast.lane.b32.xlu0 %v238_v19, 257 }
  0xaa   : > { %348 = vbcast.lane.b32.xlu1 %v203_v21, 257  ;;  %453 = vbcast.lane.b32.xlu0 %v210_v9, 258 }
  0xae   : > { %372 = vbcast.lane.b32.xlu1 %v245_v23, 257  ;;  %254 = vbcast.lane.b32.xlu0 %v252_v25, 256 }
  0xb2   : > { %457 = vbcast.lane.b32.xlu1 %v217_v13, 258  ;;  %376 = vbcast.lane.b32.xlu0 %v252_v25, 257  ;;  %v5038_v13 = vrot.slane %v544_v42, %v4907_v22 }
  0xb6   : > { %261 = vbcast.lane.b32.xlu1 %v259_v26, 256  ;;  %461 = vbcast.lane.b32.xlu0 %v224_v12, 258 }
  0xba   : > { %380 = vbcast.lane.b32.xlu1 %v259_v26, 257  ;;  %268 = vbcast.lane.b32.xlu0 %v266_v27, 256 }
  0xbe   : > { %465 = vbcast.lane.b32.xlu1 %v231_v16, 258  ;;  %384 = vbcast.lane.b32.xlu0 %v266_v27, 257 }
  0xc2   : > { %275 = vbcast.lane.b32.xlu1 %v273_v28, 256  ;;  %445 = vbcast.lane.b32.xlu0 %v196_v17, 258 }
  0xc6   : > { %388 = vbcast.lane.b32.xlu1 %v273_v28, 257  ;;  %469 = vbcast.lane.b32.xlu0 %v238_v19, 258  ;;  %v896_v19 = vld [vmem:[#allocation2 + $0x2] sm:$0xff] }
  0xc7   : > { %v5053_v24 = vrot.slane %v896_v19, %v4879_v7  ;;  %v5068_v29 = vrot.slane %v896_v19, %v4886_v11  ;;  %v5119_v0 = vrot.slane %v896_v19, %v4903_v20 }
  0xca   : > { %449 = vbcast.lane.b32.xlu1 %v203_v21, 258  ;;  %565 = vbcast.lane.b32.xlu0 %v4915_v30, 256 }
  0xce   : > { %473 = vbcast.lane.b32.xlu1 %v245_v23, 258  ;;  %282 = vbcast.lane.b32.xlu0 %v280_v31, 256 }
  0xd2   : > { %572 = vbcast.lane.b32.xlu1 %v4920_v32, 256  ;;  %392 = vbcast.lane.b32.xlu0 %v280_v31, 257 }
  0xd6   : > { %289 = vbcast.lane.b32.xlu1 %v287_v33, 256  ;;  %477 = vbcast.lane.b32.xlu0 %v252_v25, 258 }
  0xda   : > { %396 = vbcast.lane.b32.xlu1 %v287_v33, 257  ;;  %579 = vbcast.lane.b32.xlu0 %v4925_v34, 256 }
  0xde   : > { %481 = vbcast.lane.b32.xlu1 %v259_v26, 258  ;;  %296 = vbcast.lane.b32.xlu0 %v294_v35, 256 }
  0xe2   : > { %586 = vbcast.lane.b32.xlu1 %v4930_v36, 256  ;;  %400 = vbcast.lane.b32.xlu0 %v294_v35, 257 }
  0xe6   : > { %303 = vbcast.lane.b32.xlu1 %v301_v37, 256  ;;  %485 = vbcast.lane.b32.xlu0 %v266_v27, 258 }
  0xea   : > { %404 = vbcast.lane.b32.xlu1 %v301_v37, 257  ;;  %551 = vbcast.lane.b32.xlu0 %v4935_v38, 256 }
  0xee   : > { %489 = vbcast.lane.b32.xlu1 %v273_v28, 258  ;;  %593 = vbcast.lane.b32.xlu0 %v4939_v39, 256 }
  0xf2   : > { %558 = vbcast.lane.b32.xlu1 %v4943_v40, 256  ;;  %705 = vbcast.lane.b32.xlu0 %v4915_v30, 257 }
  0xf6   : > { %600 = vbcast.lane.b32.xlu1 %v4948_v41, 256  ;;  %493 = vbcast.lane.b32.xlu0 %v280_v31, 258 }
  0xfa   : > { %709 = vbcast.lane.b32.xlu1 %v4920_v32, 257  ;;  %607 = vbcast.lane.b32.xlu0 %v4952_v43, 256 }
  0xfe   : > { %497 = vbcast.lane.b32.xlu1 %v287_v33, 258  ;;  %713 = vbcast.lane.b32.xlu0 %v4925_v34, 257 }
 0x100   : > { %v4957_v44 = vpop.permute.xlu1 %212  ;;  %v4959_v45 = vpop.permute.xlu0 %352 }
 0x102   : > { %614 = vbcast.lane.b32.xlu1 %v4962_v46, 256  ;;  %501 = vbcast.lane.b32.xlu0 %v294_v35, 258 }
 0x104   : > { %v4965_v47 = vpop.permute.xlu1 %219  ;;  %v4967_v48 = vpop.permute.xlu0 %226 }
 0x106   : > { %717 = vbcast.lane.b32.xlu1 %v4930_v36, 257  ;;  %621 = vbcast.lane.b32.xlu0 %v4970_v49, 256 }
 0x108   : > { %v4974_v50 = vpop.permute.xlu1 %356  ;;  %v4976_v51 = vpop.permute.xlu0 %360 }
 0x10a   : > { %505 = vbcast.lane.b32.xlu1 %v301_v37, 258  ;;  %697 = vbcast.lane.b32.xlu0 %v4935_v38, 257  ;;  %v5092_v37 = vrot.slane %v896_v19, %v4891_v14 }
 0x10c   : > { %v4979_v52 = vpop.permute.xlu1 %233  ;;  %v4981_v53 = vpop.permute.xlu0 %198 }
 0x10e   : > { %628 = vbcast.lane.b32.xlu1 %v4984_v54, 256  ;;  %721 = vbcast.lane.b32.xlu0 %v4939_v39, 257 }
 0x110   : > { %v4988_v55 = vpop.permute.xlu1 %364  ;;  %v4990_v56 = vpop.permute.xlu0 %240 }
 0x112   : > { %701 = vbcast.lane.b32.xlu1 %v4943_v40, 257  ;;  %806 = vbcast.lane.b32.xlu0 %v4915_v30, 258 }
 0x114   : > { %v4994_v57 = vpop.permute.xlu1 %205  ;;  %v4996_v58 = vpop.permute.xlu0 %344 }
 0x116   : > { %725 = vbcast.lane.b32.xlu1 %v4948_v41, 257  ;;  %635 = vbcast.lane.b32.xlu0 %v4999_v59, 256 }
 0x118   : > { %v5003_v60 = vpop.permute.xlu1 %247  ;;  %v5005_v61 = vpop.permute.xlu0 %368 }
 0x11a   : > { %810 = vbcast.lane.b32.xlu1 %v4920_v32, 258  ;;  %729 = vbcast.lane.b32.xlu0 %v4952_v43, 257  ;;  %v5077_v32 = vrot.slane %v896_v19, %v4883_v10 }
 0x11c   : > { %v5009_v62 = vpop.permute.xlu1 %348  ;;  %v5011_v63 = vpop.permute.xlu0 %453 }
 0x11e   : > { %642 = vbcast.lane.b32.xlu1 %v5014_v1, 256  ;;  %814 = vbcast.lane.b32.xlu0 %v4925_v34, 258 }
 0x120   : > { %v5018_v2 = vpop.permute.xlu1 %372  ;;  %v5020_v3 = vpop.permute.xlu0 %254 }
 0x122   : > { %733 = vbcast.lane.b32.xlu1 %v4962_v46, 257  ;;  %649 = vbcast.lane.b32.xlu0 %v5023_v4, 256 }
 0x124   : > { %v5027_v6 = vpop.permute.xlu1 %457  ;;  %v5029_v8 = vpop.permute.xlu0 %376 }
 0x126   : > { %818 = vbcast.lane.b32.xlu1 %v4930_v36, 258  ;;  %737 = vbcast.lane.b32.xlu0 %v4970_v49, 257 }
 0x128   : > { %v5033_v9 = vpop.permute.xlu1 %261  ;;  %v5035_v12 = vpop.permute.xlu0 %461 }
 0x12a   : > { %656 = vbcast.lane.b32.xlu1 %v5038_v13, 256  ;;  %798 = vbcast.lane.b32.xlu0 %v4935_v38, 258 }
 0x12c   : > { %v5042_v16 = vpop.permute.xlu1 %380  ;;  %v5044_v17 = vpop.permute.xlu0 %268 }
 0x12e   : > { %741 = vbcast.lane.b32.xlu1 %v4984_v54, 257  ;;  %822 = vbcast.lane.b32.xlu0 %v4939_v39, 258 }
 0x130   : > { %v5048_v21 = vpop.permute.xlu1 %465  ;;  %v5050_v23 = vpop.permute.xlu0 %384 }
 0x132   : > { %802 = vbcast.lane.b32.xlu1 %v4943_v40, 258  ;;  %918 = vbcast.lane.b32.xlu0 %v5053_v24, 256  ;;  %v5101_v40 = vrot.slane %v896_v19, %v4894_v15 }
 0x134   : > { %v5057_v25 = vpop.permute.xlu1 %275  ;;  %v5059_v26 = vpop.permute.xlu0 %445 }
 0x136   : > { %826 = vbcast.lane.b32.xlu1 %v4948_v41, 258  ;;  %745 = vbcast.lane.b32.xlu0 %v4999_v59, 257 }
 0x138   : > { %v5063_v27 = vpop.permute.xlu1 %388  ;;  %v5065_v28 = vpop.permute.xlu0 %469 }
 0x13a   : > { %925 = vbcast.lane.b32.xlu1 %v5068_v29, 256  ;;  %830 = vbcast.lane.b32.xlu0 %v4952_v43, 258  ;;  %v5110_v43 = vrot.slane %v896_v19, %v4899_v18 }
 0x13c   : > { %v5072_v30 = vpop.permute.xlu1 %449  ;;  %v5074_v31 = vpop.permute.xlu0 %565 }
 0x13e   : > { %749 = vbcast.lane.b32.xlu1 %v5014_v1, 257  ;;  %932 = vbcast.lane.b32.xlu0 %v5077_v32, 256 }
 0x140   : > { %v5081_v33 = vpop.permute.xlu1 %473  ;;  %v5083_v34 = vpop.permute.xlu0 %282 }
 0x141   : > { %7266 = vst [vmem:[#allocation5_spill] sm:$0xff] %v5083_v34 }
 0x142   : > { %834 = vbcast.lane.b32.xlu1 %v4962_v46, 258  ;;  %753 = vbcast.lane.b32.xlu0 %v5023_v4, 257 }
 0x144   : > { %v5087_v35 = vpop.permute.xlu1 %572  ;;  %v5089_v36 = vpop.permute.xlu0 %392 }
 0x146   : > { %939 = vbcast.lane.b32.xlu1 %v5092_v37, 256  ;;  %838 = vbcast.lane.b32.xlu0 %v4970_v49, 258 }
 0x148   : > { %v5096_v38 = vpop.permute.xlu1 %289  ;;  %v5098_v39 = vpop.permute.xlu0 %477 }
 0x149   : > { %7267 = vst [vmem:[#allocation6_spill] sm:$0xff] %v5096_v38  ;;  %v5128_v38 = vrot.slane %v896_v19, %v4907_v22 }
 0x14a   : > { %757 = vbcast.lane.b32.xlu1 %v5038_v13, 257  ;;  %904 = vbcast.lane.b32.xlu0 %v5101_v40, 256 }
 0x14c   : > { %v5105_v41 = vpop.permute.xlu1 %396  ;;  %v5107_v42 = vpop.permute.xlu0 %579 }
 0x14d   : > { %7268 = vst [vmem:[#allocation7_spill] sm:$0xff] %v5107_v42 }
 0x14e   : > { %842 = vbcast.lane.b32.xlu1 %v4984_v54, 258  ;;  %946 = vbcast.lane.b32.xlu0 %v5110_v43, 256  ;;  %v897_v54 = vld [vmem:[#allocation2 + $0xa] sm:$0xff] }
 0x14f   : > { %v5137_v34 = vrot.slane %v897_v54, %v4894_v15 }
 0x150   : > { %v5114_v46 = vpop.permute.xlu1 %481  ;;  %v5116_v49 = vpop.permute.xlu0 %296 }
 0x151   : > { %7269 = vst [vmem:[#allocation8_spill] sm:$0xff] %v5114_v46  ;;  %7270 = vst [vmem:[#allocation9_spill] sm:$0xff] %v5116_v49 }
 0x152   : > { %911 = vbcast.lane.b32.xlu1 %v5119_v0, 256  ;;  %1058 = vbcast.lane.b32.xlu0 %v5053_v24, 257 }
 0x154   : > { %v5123_v5 = vpop.permute.xlu1 %586  ;;  %v5125_v42 = vpop.permute.xlu0 %400 }
 0x155   : > { %7271 = vst [vmem:[#allocation10_spill] sm:$0xff] %v5125_v42 }
 0x156   : > { %953 = vbcast.lane.b32.xlu1 %v5128_v38, 256  ;;  %846 = vbcast.lane.b32.xlu0 %v4999_v59, 258 }
 0x158   : > { %v5132_v49 = vpop.permute.xlu1 %303  ;;  %v5134_v46 = vpop.permute.xlu0 %485 }
 0x159   : > { %7272 = vst [vmem:[#allocation11_spill] sm:$0xff] %v5132_v49  ;;  %7273 = vst [vmem:[#allocation12_spill] sm:$0xff] %v5134_v46  ;;  %v5152_v46 = vrot.slane %v897_v54, %v4903_v20 }
 0x15a   : > { %1062 = vbcast.lane.b32.xlu1 %v5068_v29, 257  ;;  %960 = vbcast.lane.b32.xlu0 %v5137_v34, 256 }
 0x15c   : > { %v5141_v42 = vpop.permute.xlu1 %404  ;;  %v5143_v19 = vpop.permute.xlu0 %551 }
 0x15d   : > { %7274 = vst [vmem:[#allocation13_spill] sm:$0xff] %v5141_v42  ;;  %7275 = vst [vmem:[#allocation14_spill] sm:$0xff] %v5143_v19  ;;  %v972_v19 = vrot.slane %v897_v54, %v4879_v7 }
 0x15e   : > { %850 = vbcast.lane.b32.xlu1 %v5014_v1, 258  ;;  %1066 = vbcast.lane.b32.xlu0 %v5077_v32, 257 }
 0x160   : > { %v5147_v59 = vpop.permute.xlu1 %489  ;;  %v5149_v49 = vpop.permute.xlu0 %593 }
 0x161   : > { %7276 = vst [vmem:[#allocation15_spill] sm:$0xff] %v5147_v59  ;;  %7277 = vst [vmem:[#allocation16_spill] sm:$0xff] %v5149_v49 }
 0x162   : > { %967 = vbcast.lane.b32.xlu1 %v5152_v46, 256  ;;  %854 = vbcast.lane.b32.xlu0 %v5023_v4, 258 }
 0x164   : > { %v5156_v15 = vpop.permute.xlu1 %558  ;;  %v5158_v42 = vpop.permute.xlu0 %705 }
 0x165   : > { %7278 = vst [vmem:[#allocation17_spill] sm:$0xff] %v5156_v15  ;;  %v979_v15 = vrot.slane %v897_v54, %v4886_v11 }
 0x166   : > { %1070 = vbcast.lane.b32.xlu1 %v5092_v37, 257  ;;  %974 = vbcast.lane.b32.xlu0 %v972_v19, 256 }
 0x168   : > { %v5162_v1 = vpop.permute.xlu1 %600  ;;  %v5164_v59 = vpop.permute.xlu0 %493 }
 0x169   : > { %7279 = vst [vmem:[#allocation18_spill] sm:$0xff] %v5164_v59 }
 0x16a   : > { %858 = vbcast.lane.b32.xlu1 %v5038_v13, 258  ;;  %1050 = vbcast.lane.b32.xlu0 %v5101_v40, 257 }
 0x16c   : > { %v5168_v20 = vpop.permute.xlu1 %709  ;;  %v5170_v4 = vpop.permute.xlu0 %607 }
 0x16d   : > { %7280 = vst [vmem:[#allocation19_spill] sm:$0xff] %v5168_v20  ;;  %7281 = vst [vmem:[#allocation20_spill] sm:$0xff] %v5170_v4  ;;  %v986_v20 = vrot.slane %v897_v54, %v4883_v10 }
 0x16e   : > { %981 = vbcast.lane.b32.xlu1 %v979_v15, 256  ;;  %1074 = vbcast.lane.b32.xlu0 %v5110_v43, 257 }
 0x170   : > { %v5174_v7 = vpop.permute.xlu1 %497  ;;  %v5176_v49 = vpop.permute.xlu0 %713 }
 0x171   : > { %7282 = vst [vmem:[#allocation21_spill] sm:$0xff] %v5176_v49 }
 0x172   : > { %1054 = vbcast.lane.b32.xlu1 %v5119_v0, 257  ;;  %1159 = vbcast.lane.b32.xlu0 %v5053_v24, 258 }
 0x174   : > { %v5180_v13 = vpop.permute.xlu1 %614  ;;  %v5182_v59 = vpop.permute.xlu0 %501 }
 0x175   : > { %7283 = vst [vmem:[#allocation22_spill] sm:$0xff] %v5180_v13  ;;  %7284 = vst [vmem:[#allocation23_spill] sm:$0xff] %v5182_v59  ;;  %v993_v13 = vrot.slane %v897_v54, %v4891_v14 }
 0x176   : > { %1078 = vbcast.lane.b32.xlu1 %v5128_v38, 257  ;;  %988 = vbcast.lane.b32.xlu0 %v986_v20, 256 }
 0x178   : > { %v5186_v11 = vpop.permute.xlu1 %717  ;;  %v5188_v4 = vpop.permute.xlu0 %621 }
 0x179   : > { %7285 = vst [vmem:[#allocation24_spill] sm:$0xff] %v5186_v11  ;;  %7286 = vst [vmem:[#allocation25_spill] sm:$0xff] %v5188_v4  ;;  %v1000_v11 = vrot.slane %v897_v54, %v4899_v18 }
 0x17a   : > { %1163 = vbcast.lane.b32.xlu1 %v5068_v29, 258  ;;  %1082 = vbcast.lane.b32.xlu0 %v5137_v34, 257 }
 0x17c   : > { %v5192_v49 = vpop.permute.xlu1 %505  ;;  %v5194_v24 = vpop.permute.xlu0 %697 }
 0x17d   : > { %7287 = vst [vmem:[#allocation26_spill] sm:$0xff] %v5194_v24 }
 0x17e   : > { %995 = vbcast.lane.b32.xlu1 %v993_v13, 256  ;;  %1167 = vbcast.lane.b32.xlu0 %v5077_v32, 258  ;;  %v1007_v32 = vrot.slane %v897_v54, %v4907_v22 }
 0x180   : > { %v5198_v10 = vpop.permute.xlu1 %628  ;;  %v5200_v59 = vpop.permute.xlu0 %721 }
 0x181   : > { %7288 = vst [vmem:[#allocation27_spill] sm:$0xff] %v5200_v59 }
 0x182   : > { %1086 = vbcast.lane.b32.xlu1 %v5152_v46, 257  ;;  %1002 = vbcast.lane.b32.xlu0 %v1000_v11, 256 }
 0x184   : > { %v5204_v29 = vpop.permute.xlu1 %701  ;;  %v5206_v4 = vpop.permute.xlu0 %806 }
 0x185   : > { %7289 = vst [vmem:[#allocation28_spill] sm:$0xff] %v5204_v29 }
 0x186   : > { %1171 = vbcast.lane.b32.xlu1 %v5092_v37, 258  ;;  %1090 = vbcast.lane.b32.xlu0 %v972_v19, 257 }
 0x188   : > { %v5209_v14 = vpop.permute.xlu1 %725  ;;  %v5211_v24 = vpop.permute.xlu0 %635 }
 0x189   : > { %7290 = vst [vmem:[#allocation29_spill] sm:$0xff] %v5209_v14  ;;  %7291 = vst [vmem:[#allocation30_spill] sm:$0xff] %v5211_v24 }
 0x18a   : > { %1009 = vbcast.lane.b32.xlu1 %v1007_v32, 256  ;;  %1151 = vbcast.lane.b32.xlu0 %v5101_v40, 258 }
 0x18c   : > { %v5215_v18 = vpop.permute.xlu1 %810  ;;  %v5217_v59 = vpop.permute.xlu0 %729 }
 0x18d   : > { %7292 = vst [vmem:[#allocation31_spill] sm:$0xff] %v5217_v59 }
 0x18e   : > { %1094 = vbcast.lane.b32.xlu1 %v979_v15, 257  ;;  %1175 = vbcast.lane.b32.xlu0 %v5110_v43, 258 }
 0x190   : > { %v5220_v29 = vpop.permute.xlu1 %642  ;;  %v5222_v37 = vpop.permute.xlu0 %814 }
 0x191   : > { %7293 = vst [vmem:[#allocation32_spill] sm:$0xff] %v5220_v29 }
 0x192   : > { %1155 = vbcast.lane.b32.xlu1 %v5119_v0, 258  ;;  %1098 = vbcast.lane.b32.xlu0 %v986_v20, 257 }
 0x194   : > { %v5225_v24 = vpop.permute.xlu1 %733  ;;  %v5227_v22 = vpop.permute.xlu0 %649 }
 0x195   : > { %7294 = vst [vmem:[#allocation33_spill] sm:$0xff] %v5225_v24  ;;  %7295 = vst [vmem:[#allocation34_spill] sm:$0xff] %v5227_v22 }
 0x196   : > { %1179 = vbcast.lane.b32.xlu1 %v5128_v38, 258  ;;  %1183 = vbcast.lane.b32.xlu0 %v5137_v34, 258 }
 0x198   : > { %v5231_v40 = vpop.permute.xlu1 %818  ;;  %v5233_v54 = vpop.permute.xlu0 %737 }
 0x199   : > { %7296 = vst [vmem:[#allocation35_spill] sm:$0xff] %v5231_v40  ;;  %7297 = vst [vmem:[#allocation36_spill] sm:$0xff] %v5233_v54 }
 0x19a   : > { %1102 = vbcast.lane.b32.xlu1 %v993_v13, 257  ;;  %1106 = vbcast.lane.b32.xlu0 %v1000_v11, 257 }
 0x19c   : > { %v5235_v43 = vpop.permute.xlu1 %656  ;;  %v5237_v29 = vpop.permute.xlu0 %798 }
 0x19d   : > { %7298 = vst [vmem:[#allocation37_spill] sm:$0xff] %v5235_v43  ;;  %7299 = vst [vmem:[#allocation38_spill] sm:$0xff] %v5237_v29 }
 0x19e   : > { %1187 = vbcast.lane.b32.xlu1 %v5152_v46, 258  ;;  %1191 = vbcast.lane.b32.xlu0 %v972_v19, 258 }
 0x1a0   : > { %v5240_v0 = vpop.permute.xlu1 %741  ;;  %v5242_v22 = vpop.permute.xlu0 %822 }
 0x1a1   : > { %7300 = vst [vmem:[#allocation39_spill] sm:$0xff] %v5240_v0  ;;  %7301 = vst [vmem:[#allocation40_spill] sm:$0xff] %v5242_v22 }
 0x1a2   : > { %1110 = vbcast.lane.b32.xlu1 %v1007_v32, 257  ;;  %1199 = vbcast.lane.b32.xlu0 %v986_v20, 258 }
 0x1a4   : > { %v5244_v34 = vpop.permute.xlu1 %802  ;;  %v5246_v38 = vpop.permute.xlu0 %918 }
 0x1a5   : > { %7302 = vst [vmem:[#allocation41_spill] sm:$0xff] %v5244_v34 }
 0x1a6   : > { %1195 = vbcast.lane.b32.xlu1 %v979_v15, 258  ;;  %1207 = vbcast.lane.b32.xlu0 %v1000_v11, 258 }
 0x1a8   : > { %v5248_v54 = vpop.permute.xlu1 %826  ;;  %v5250_v43 = vpop.permute.xlu0 %745 }
 0x1a9   : > { %7303 = vst [vmem:[#allocation42_spill] sm:$0xff] %v5248_v54  ;;  %7304 = vst [vmem:[#allocation43_spill] sm:$0xff] %v5250_v43 }
 0x1aa   : > { %1203 = vbcast.lane.b32.xlu1 %v993_v13, 258 }
 0x1ac   : > { %v5252_v29 = vpop.permute.xlu1 %925  ;;  %v5254_v46 = vpop.permute.xlu0 %830 }
 0x1ad   : > { %7305 = vst [vmem:[#allocation44_spill] sm:$0xff] %v5254_v46 }
 0x1ae   : > { %1211 = vbcast.lane.b32.xlu1 %v1007_v32, 258 }
 0x1b0   : > { %v5256_v19 = vpop.permute.xlu1 %749  ;;  %v5258_v22 = vpop.permute.xlu0 %932 }
 0x1b1   : > { %7306 = vst [vmem:[#allocation45_spill] sm:$0xff] %v5256_v19 }
 0x1b4   : > { %v5260_v20 = vpop.permute.xlu1 %834  ;;  %v5262_v34 = vpop.permute.xlu0 %753 }
 0x1b5   : > { %7307 = vst [vmem:[#allocation46_spill] sm:$0xff] %v5260_v20  ;;  %7308 = vst [vmem:[#allocation47_spill] sm:$0xff] %v5262_v34  ;;  %v5283_v34 = vld [vmem:[%s7253_s1] ss:$0 sm:$0xff] }
 0x1b8   : > { %v5264_v15 = vpop.permute.xlu1 %939  ;;  %v5266_v11 = vpop.permute.xlu0 %838 }
 0x1b9   : > { %7309 = vst [vmem:[#allocation48_spill] sm:$0xff] %v5264_v15  ;;  %7310 = vst [vmem:[#allocation49_spill] sm:$0xff] %v5266_v11  ;;  %v5288_v11 = vld [vmem:[%s7253_s1 + $0x1] ss:$0 sm:$0xff]  ;;  %v313_v15 = vmul.f32 %v5283_v34, %v4967_v48  ;;  %v314_v48 = vmul.f32 %v5283_v34, %v4979_v52  ;;  %v310_v52 = vmul.f32 %v5283_v34, %v4994_v57 }
 0x1ba   : > { %v414_v0 = vmul.f32 %v5288_v11, %v4976_v51  ;;  %v410_v24 = vmul.f32 %v5288_v11, %v4996_v58  ;;  %v416_v40 = vmul.f32 %v5288_v11, %v5005_v61  ;;  %v417_v51 = vmul.f32 %v5288_v11, %v5018_v2 }
 0x1bb   : > { %v418_v61 = vmul.f32 %v5288_v11, %v5029_v8  ;;  %v315_v2 = vmul.f32 %v5283_v34, %v4990_v56  ;;  %v5372_v56 = vld [vmem:[%s7253_s1 + $0x3] ss:$0 sm:$0xff] }
 0x1bc   : > { %v5268_v54 = vpop.permute.xlu1 %757  ;;  %v5270_v13 = vpop.permute.xlu0 %904 }
 0x1bd   : > { %7311 = vst [vmem:[#allocation50_spill] sm:$0xff] %v5268_v54  ;;  %7312 = vst [vmem:[#allocation51_spill] sm:$0xff] %v5270_v13  ;;  %v4821_v13 = vmov 0  }
 0x1be   : > { %2385 = vst.msk [vmem:[#allocation3] sm:$0xf] %vm2384_vm3, %v4821_v13  ;;  %2388 = vst.msk [vmem:[#allocation3 + $0x8] sm:$0xf] %vm2384_vm3, %v4821_v13 }
 0x1bf   : > { %2387 = vst.msk [vmem:[#allocation3 + $0x4] sm:$0x1] %vm2386_vm4, %v4821_v13  ;;  %2389 = vst.msk [vmem:[#allocation3 + $0xc] sm:$0x1] %vm2386_vm4, %v4821_v13 }
 0x1c0   : > { %v5272_v43 = vpop.permute.xlu1 %842  ;;  %v5274_v46 = vpop.permute.xlu0 %946  ;;  %2390 = vst.msk [vmem:[#allocation3 + $0x10] sm:$0xf] %vm2384_vm3, %v4821_v13  ;;  %2392 = vst.msk [vmem:[#allocation3 + $0x18] sm:$0xf] %vm2384_vm3, %v4821_v13 }
 0x1c1   : > { %7313 = vst [vmem:[#allocation52_spill] sm:$0xff] %v5272_v43  ;;  %7314 = vst [vmem:[#allocation53_spill] sm:$0xff] %v5274_v46  ;;  %v311_v43 = vmul.f32 %v5283_v34, %v4957_v44  ;;  %v413_v46 = vmul.f32 %v5288_v11, %v4974_v50  ;;  %v312_v44 = vmul.f32 %v5283_v34, %v4965_v47 }
 0x1c2   : > { %2391 = vst.msk [vmem:[#allocation3 + $0x14] sm:$0x1] %vm2386_vm4, %v4821_v13  ;;  %2393 = vst.msk [vmem:[#allocation3 + $0x1c] sm:$0x1] %vm2386_vm4, %v4821_v13  ;;  %v415_v47 = vmul.f32 %v5288_v11, %v4988_v55  ;;  %v309_v55 = vmul.f32 %v5283_v34, %v4981_v53  ;;  %v316_v53 = vmul.f32 %v5283_v34, %v5003_v60 }
 0x1c3   : > { %2394 = vst.msk [vmem:[#allocation3 + $0x20] sm:$0xf] %vm2384_vm3, %v4821_v13  ;;  %2396 = vst.msk [vmem:[#allocation3 + $0x28] sm:$0xf] %vm2384_vm3, %v4821_v13  ;;  %v419_v60 = vmul.f32 %v5288_v11, %v5042_v16 }
 0x1c4   : > { %v5276_v32 = vpop.permute.xlu1 %911  ;;  %v5278_v19 = vpop.permute.xlu0 %1058  ;;  %2395 = vst.msk [vmem:[#allocation3 + $0x24] sm:$0x1] %vm2386_vm4, %v4821_v13  ;;  %2397 = vst.msk [vmem:[#allocation3 + $0x2c] sm:$0x1] %vm2386_vm4, %v4821_v13 }
 0x1c5   : > { %7315 = vst [vmem:[#allocation54_spill] sm:$0xff] %v5276_v32  ;;  %v412_v32 = vmul.f32 %v5288_v11, %v4959_v45  ;;  %2398 = vst.msk [vmem:[#allocation3 + $0x30] sm:$0xf] %vm2384_vm3, %v4821_v13  ;;  %v5325_v45 = vld [vmem:[%s7253_s1 + $0x2] ss:$0 sm:$0xff] }
 0x1c6   : > { %2399 = vst.msk [vmem:[#allocation3 + $0x34] sm:$0x1] %vm2386_vm4, %v4821_v13  ;;  %2401 = vst.msk [vmem:[#allocation3 + $0x3c] sm:$0x1] %vm2386_vm4, %v4821_v13  ;;  %v514_v58 = vmul.f32 %v5325_v45, %v5027_v6  ;;  %v317_v6 = vmul.f32 %v5283_v34, %v5020_v3  ;;  %v515_v8 = vmul.f32 %v5325_v45, %v5035_v12 }
 0x1c7   : > { %2400 = vst.msk [vmem:[#allocation3 + $0x38] sm:$0xf] %vm2384_vm3, %v4821_v13  ;;  %2402 = vst.msk [vmem:[#allocation3 + $0x40] sm:$0xf] %vm2384_vm3, %v4821_v13  ;;  %v516_v3 = vmul.f32 %v5325_v45, %v5048_v21  ;;  %v517_v21 = vmul.f32 %v5325_v45, %v5065_v28 }
 0x1c8   : > { %v5290_v54 = vpop.permute.xlu1 %953  ;;  %v5292_v20 = vpop.permute.xlu0 %846  ;;  %2403 = vst.msk [vmem:[#allocation3 + $0x44] sm:$0x1] %vm2386_vm4, %v4821_v13  ;;  %2405 = vst.msk [vmem:[#allocation3 + $0x4c] sm:$0x1] %vm2386_vm4, %v4821_v13  ;;  %v434_v14 = vadd.f32 %v418_v61, %v317_v6  ;;  %v7321_v6 = vld [vmem:[#allocation6_spill] sm:$0xff] }
 0x1c9   : > { %7316 = vst [vmem:[#allocation55_spill] sm:$0xff] %v5290_v54  ;;  %7317 = vst [vmem:[#allocation56_spill] sm:$0xff] %v5292_v20  ;;  %v428_v54 = vadd.f32 %v412_v32, %v311_v43  ;;  %v513_v43 = vmul.f32 %v5325_v45, %v5011_v63  ;;  %v430_v63 = vadd.f32 %v414_v0, %v313_v15 }
 0x1ca   : > { %2404 = vst.msk [vmem:[#allocation3 + $0x48] sm:$0xf] %vm2384_vm3, %v4821_v13  ;;  %v429_v13 = vadd.f32 %v413_v46, %v312_v44  ;;  %v431_v32 = vadd.f32 %v415_v47, %v314_v48  ;;  %v426_v44 = vadd.f32 %v410_v24, %v309_v55  ;;  %v433_v15 = vadd.f32 %v417_v51, %v316_v53 }
 0x1cb   : > { %v529_v0 = vadd.f32 %v513_v43, %v428_v54  ;;  %v420_v54 = vmul.f32 %v5288_v11, %v5050_v23  ;;  %v531_v16 = vadd.f32 %v515_v8, %v430_v63  ;;  %v512_v47 = vmul.f32 %v5325_v45, %v5072_v30 }
 0x1cc   : > { %v5327_v50 = vpop.permute.xlu1 %1062  ;;  %v5329_v20 = vpop.permute.xlu0 %960  ;;  %v530_v57 = vadd.f32 %v514_v58, %v429_v13  ;;  %v421_v13 = vmul.f32 %v5288_v11, %v5063_v27  ;;  %v664_v43 = vmul.f32 %v5372_v56, %v5074_v31  ;;  %v320_v23 = vmul.f32 %v5283_v34, %v5057_v25 }
 0x1cd   : > { %7318 = vst [vmem:[#allocation57_spill] sm:$0xff] %v5329_v20  ;;  %v411_v20 = vmul.f32 %v5288_v11, %v5009_v62  ;;  %v665_v27 = vmul.f32 %v5372_v56, %v5087_v35  ;;  %v532_v28 = vadd.f32 %v516_v3, %v431_v32  ;;  %v422_v30 = vmul.f32 %v5288_v11, %v5089_v36 }
 0x1ce   : > { %v519_v31 = vmul.f32 %v5325_v45, %v5098_v39  ;;  %v437_v35 = vadd.f32 %v421_v13, %v320_v23  ;;  %v423_v58 = vmul.f32 %v5288_v11, %v5105_v41  ;;  %v680_v63 = vadd.f32 %v664_v43, %v529_v0  ;;  %v7327_v43 = vld [vmem:[#allocation12_spill] sm:$0xff]  ;;  %v7328_v23 = vld [vmem:[#allocation13_spill] sm:$0xff] }
 0x1cf   : > { %v427_v59 = vadd.f32 %v411_v20, %v310_v52  ;;  %v511_v20 = vmul.f32 %v5325_v45, %v5059_v26  ;;  %v518_v26 = vmul.f32 %v5325_v45, %v5081_v33  ;;  %v5424_v52 = vld [vmem:[%s7253_s1 + $0x5] ss:$0 sm:$0xff]  ;;  %v681_v32 = vadd.f32 %v665_v27, %v530_v57  ;;  %v7329_v27 = vld [vmem:[#allocation14_spill] sm:$0xff] }
 0x1d0   : > { %v5355_v46 = vpop.permute.xlu1 %850  ;;  %v5357_v62 = vpop.permute.xlu0 %1066  ;;  %v866_v13 = vmul.f32 %v5424_v52, %v5206_v4 }
 0x1d1   : > { %7319 = vst [vmem:[#allocation58_spill] sm:$0xff] %v5355_v46  ;;  %v432_v46 = vadd.f32 %v416_v40, %v315_v2  ;;  %v318_v40 = vmul.f32 %v5283_v34, %v5033_v9  ;;  %v319_v9 = vmul.f32 %v5283_v34, %v5044_v17  ;;  %v5411_v17 = vld [vmem:[%s7253_s1 + $0x4] ss:$0 sm:$0xff]  ;;  %v527_v55 = vadd.f32 %v511_v20, %v426_v44  ;;  %v7320_v2 = vld [vmem:[#allocation5_spill] sm:$0xff] }
 0x1d2   : > { %v528_v36 = vadd.f32 %v512_v47, %v427_v59  ;;  %v321_v39 = vmul.f32 %v5283_v34, %v7320_v2  ;;  %v534_v53 = vadd.f32 %v518_v26, %v433_v15  ;;  %v322_v44 = vmul.f32 %v5283_v34, %v7321_v6  ;;  %v7322_v59 = vld [vmem:[#allocation7_spill] sm:$0xff] }
 0x1d3   : > { %v435_v51 = vadd.f32 %v419_v60, %v318_v40  ;;  %v436_v33 = vadd.f32 %v420_v54, %v319_v9  ;;  %v533_v61 = vadd.f32 %v517_v21, %v432_v46  ;;  %v765_v8 = vmul.f32 %v5411_v17, %v5158_v42  ;;  %v7323_v60 = vld [vmem:[#allocation8_spill] sm:$0xff]  ;;  %v5437_v40 = vld [vmem:[%s7253_s1 + $0x6] ss:$0 sm:$0xff]  ;;  %v7326_v21 = vld [vmem:[#allocation9_spill] sm:$0xff] }
 0x1d4   : > { %v5378_v24 = vpop.permute.xlu1 %967  ;;  %v5380_v12 = vpop.permute.xlu0 %854  ;;  %v438_v41 = vadd.f32 %v422_v30, %v321_v39  ;;  %v535_v46 = vadd.f32 %v519_v31, %v434_v14  ;;  %v666_v0 = vmul.f32 %v5372_v56, %v7322_v59  ;;  %v520_v3 = vmul.f32 %v5325_v45, %v7323_v60  ;;  %v7325_v14 = vld [vmem:[#allocation10_spill] sm:$0xff]  ;;  %v7330_v31 = vld [vmem:[#allocation15_spill] sm:$0xff] }
 0x1d5   : > { %v439_v54 = vadd.f32 %v423_v58, %v322_v44  ;;  %v667_v42 = vmul.f32 %v5372_v56, %v5123_v5  ;;  %v424_v20 = vmul.f32 %v5288_v11, %v7325_v14  ;;  %v323_v47 = vmul.f32 %v5283_v34, %v7326_v21  ;;  %v5460_v5 = vld [vmem:[%s7253_s1 + $0x7] ss:$0 sm:$0xff]  ;;  %v7331_v58 = vld [vmem:[#allocation16_spill] sm:$0xff]  ;;  %v7333_v14 = vld [vmem:[#allocation17_spill] sm:$0xff] }
 0x1d6   : > { %v521_v9 = vmul.f32 %v5325_v45, %v7327_v43  ;;  %v425_v26 = vmul.f32 %v5288_v11, %v7328_v23  ;;  %v662_v30 = vmul.f32 %v5372_v56, %v7329_v27  ;;  %v522_v4 = vmul.f32 %v5325_v45, %v7330_v31  ;;  %v7332_v59 = vld [vmem:[#allocation11_spill] sm:$0xff] }
 0x1d7   : > { %v668_v2 = vmul.f32 %v5372_v56, %v7331_v58  ;;  %v781_v39 = vadd.f32 %v765_v8, %v680_v63  ;;  %v1017_v6 = vmul.f32 %v5437_v40, %v5246_v38  ;;  %v682_v44 = vadd.f32 %v666_v0, %v531_v16  ;;  %v7338_v58 = vld [vmem:[#allocation22_spill] sm:$0xff] }
 0x1d8   : > { %v5413_v25 = vpop.permute.xlu1 %1070  ;;  %v5415_v48 = vpop.permute.xlu0 %974  ;;  %v536_v11 = vadd.f32 %v520_v3, %v435_v51  ;;  %v324_v60 = vmul.f32 %v5283_v34, %v7332_v59  ;;  %v663_v21 = vmul.f32 %v5372_v56, %v7333_v14  ;;  %v683_v27 = vadd.f32 %v667_v42, %v532_v28  ;;  %v5485_v51 = vld [vmem:[%s7253_s1 + $0x8] ss:$0 sm:$0xff]  ;;  %v7334_v28 = vld [vmem:[#allocation19_spill] sm:$0xff] }
 0x1d9   : > { %v440_v31 = vadd.f32 %v424_v20, %v323_v47  ;;  %v1118_v63 = vmul.f32 %v5460_v5, %v5278_v19  ;;  %v537_v8 = vadd.f32 %v521_v9, %v436_v33  ;;  %v5478_v16 = vadd.f32 %v662_v30, %v527_v55  ;;  %v7335_v19 = vld [vmem:[#allocation18_spill] sm:$0xff]  ;;  %v7336_v55 = vld [vmem:[#allocation20_spill] sm:$0xff] }
 0x1da   : > { %v441_v38 = vadd.f32 %v425_v26, %v324_v60  ;;  %v669_v34 = vmul.f32 %v5372_v56, %v5162_v1  ;;  %v538_v0 = vadd.f32 %v522_v4, %v437_v35  ;;  %v684_v3 = vadd.f32 %v668_v2, %v533_v61  ;;  %v7337_v35 = vld [vmem:[#allocation21_spill] sm:$0xff]  ;;  %v5513_v60 = vld [vmem:[%s7253_s1 + $0x9] ss:$0 sm:$0xff] }
 0x1db   : > { %v766_v42 = vmul.f32 %v5411_v17, %v7334_v28  ;;  %v523_v33 = vmul.f32 %v5325_v45, %v7335_v19  ;;  %v670_v47 = vmul.f32 %v5372_v56, %v7336_v55  ;;  %v524_v1 = vmul.f32 %v5325_v45, %v5174_v7  ;;  %v7340_v7 = vld [vmem:[#allocation24_spill] sm:$0xff] }
 0x1dc   : > { %v5439_v15 = vpop.permute.xlu1 %858  ;;  %v5441_v57 = vpop.permute.xlu0 %1050  ;;  %v767_v61 = vmul.f32 %v5411_v17, %v7337_v35  ;;  %v685_v4 = vadd.f32 %v669_v34, %v534_v53  ;;  %v671_v2 = vmul.f32 %v5372_v56, %v7338_v58  ;;  %v768_v59 = vmul.f32 %v5411_v17, %v7340_v7  ;;  %v5524_v55 = vld [vmem:[%s7253_s1 + $0xa] ss:$0 sm:$0xff] }
 0x1dd   : > { %7324 = vst [vmem:[#allocation5_spill] sm:$0xff] %v5439_v15  ;;  %v882_v15 = vadd.f32 %v866_v13, %v781_v39  ;;  %v5489_v13 = vadd.f32 %v663_v21, %v528_v36  ;;  %v7339_v39 = vld [vmem:[#allocation23_spill] sm:$0xff]  ;;  %v782_v14 = vadd.f32 %v766_v42, %v681_v32  ;;  %v1018_v53 = vmul.f32 %v5437_v40, %v5252_v29 }
 0x1de   : > { %v539_v34 = vadd.f32 %v523_v33, %v438_v41  ;;  %v686_v28 = vadd.f32 %v670_v47, %v535_v46  ;;  %v868_v19 = vmul.f32 %v5424_v52, %v5222_v37  ;;  %v783_v42 = vadd.f32 %v767_v61, %v682_v44  ;;  %v7342_v61 = vld [vmem:[#allocation26_spill] sm:$0xff] }
 0x1df   : > { %v1033_v20 = vadd.f32 %v1017_v6, %v882_v15  ;;  %v867_v15 = vmul.f32 %v5424_v52, %v5215_v18  ;;  %v525_v6 = vmul.f32 %v5325_v45, %v7339_v39  ;;  %v7341_v18 = vld [vmem:[#allocation25_spill] sm:$0xff]  ;;  %v1119_v29 = vmul.f32 %v5460_v5, %v5327_v50  ;;  %v7344_v39 = vld [vmem:[#allocation28_spill] sm:$0xff] }
 0x1e0   : > { %v5472_v43 = vpop.permute.xlu1 %981  ;;  %v5474_v23 = vpop.permute.xlu0 %1074  ;;  %v672_v21 = vmul.f32 %v5372_v56, %v7341_v18  ;;  %v687_v46 = vadd.f32 %v671_v2, %v536_v11  ;;  %v784_v33 = vadd.f32 %v768_v59, %v683_v27  ;;  %v526_v37 = vmul.f32 %v5325_v45, %v5192_v49  ;;  %v7346_v59 = vld [vmem:[#allocation30_spill] sm:$0xff]  ;;  %v7347_v18 = vld [vmem:[#allocation31_spill] sm:$0xff] }
 0x1e1   : > { %v1134_v36 = vadd.f32 %v1118_v63, %v1033_v20  ;;  %v540_v20 = vadd.f32 %v524_v1, %v439_v54  ;;  %v883_v35 = vadd.f32 %v867_v15, %v782_v14  ;;  %v541_v54 = vadd.f32 %v525_v6, %v440_v31  ;;  %v7343_v31 = vld [vmem:[#allocation27_spill] sm:$0xff] }
 0x1e2   : > { %v5535_v47 = vadd.f32 %v672_v21, %v537_v8  ;;  %v763_v50 = vmul.f32 %v5411_v17, %v7342_v61  ;;  %v673_v11 = vmul.f32 %v5372_v56, %v5198_v10  ;;  %v769_v27 = vmul.f32 %v5411_v17, %v7343_v31  ;;  %v7345_v10 = vld [vmem:[#allocation29_spill] sm:$0xff] }
 0x1e3   : > { %v1034_v1 = vadd.f32 %v1018_v53, %v883_v35  ;;  %v884_v15 = vadd.f32 %v868_v19, %v783_v42  ;;  %v542_v2 = vadd.f32 %v526_v37, %v441_v38  ;;  %v764_v6 = vmul.f32 %v5411_v17, %v7344_v39  ;;  %v7348_v38 = vld [vmem:[#allocation32_spill] sm:$0xff]  ;;  %v7349_v37 = vld [vmem:[#allocation35_spill] sm:$0xff] }
 0x1e4   : > { %v5497_v9 = vpop.permute.xlu1 %1054  ;;  %v1160_v26 = vpop.permute.xlu0 %1159  ;;  %v770_v7 = vmul.f32 %v5411_v17, %v7345_v10  ;;  %v674_v14 = vmul.f32 %v5372_v56, %v7346_v59  ;;  %v771_v21 = vmul.f32 %v5411_v17, %v7347_v18  ;;  %v689_v19 = vadd.f32 %v673_v11, %v538_v0  ;;  %v7350_v0 = vld [vmem:[#allocation33_spill] sm:$0xff]  ;;  %v7351_v11 = vld [vmem:[#allocation48_spill] sm:$0xff] }
 0x1e5   : > { %v1219_v30 = vmul.f32 %v5485_v51, %v1160_v26  ;;  %v1135_v8 = vadd.f32 %v1119_v29, %v1034_v1  ;;  %v785_v42 = vadd.f32 %v769_v27, %v684_v3  ;;  %v675_v35 = vmul.f32 %v5372_v56, %v7348_v38  ;;  %v7353_v10 = vld [vmem:[#allocation36_spill] sm:$0xff] }
 0x1e6   : > { %v869_v1 = vmul.f32 %v5424_v52, %v7349_v37  ;;  %v772_v3 = vmul.f32 %v5411_v17, %v7350_v0  ;;  %v1020_v27 = vmul.f32 %v5437_v40, %v7351_v11  ;;  %v1121_v59 = vmul.f32 %v5460_v5, %v5413_v25  ;;  %v7358_v37 = vld [vmem:[#allocation40_spill] sm:$0xff] }
 0x1e7   : > { %v1235_v63 = vadd.f32 %v1219_v30, %v1134_v36  ;;  %v1019_v36 = vmul.f32 %v5437_v40, %v5258_v22  ;;  %v1120_v22 = vmul.f32 %v5460_v5, %v5357_v62 }
 0x1e8   : > { %v5526_v26 = vpop.permute.xlu1 %1078  ;;  %v5528_v32 = vpop.permute.xlu0 %988  ;;  %v788_v18 = vadd.f32 %v772_v3, %v687_v46  ;;  %v7359_v46 = vld [vmem:[#allocation41_spill] sm:$0xff] }
 0x1e9   : > { %v1255_v41 = vmul.f32 %v5513_v60, %v1235_v63  ;;  %v1035_v53 = vadd.f32 %v1019_v36, %v884_v15  ;;  %v779_v63 = vadd.f32 %v763_v50, %v5478_v16  ;;  %v780_v15 = vadd.f32 %v764_v6, %v5489_v13 }
 0x1ea   : > { %v690_v16 = vadd.f32 %v674_v14, %v539_v34  ;;  %v787_v50 = vadd.f32 %v771_v21, %v686_v28  ;;  %v773_v13 = vmul.f32 %v5411_v17, %v7353_v10  ;;  %v7355_v21 = vld [vmem:[#allocation37_spill] sm:$0xff] }
 0x1eb   : > { %v5540_v44 = vadd.f32 %v5524_v55, %v1255_v41  ;;  %v1136_v61 = vadd.f32 %v1120_v22, %v1035_v53  ;;  %v5579_v22 = vadd.f32 %v675_v35, %v540_v20  ;;  %v677_v53 = vmul.f32 %v5372_v56, %v7355_v21  ;;  %v7357_v35 = vld [vmem:[#allocation51_spill] sm:$0xff]  ;;  %v7363_v21 = vld [vmem:[#allocation44_spill] sm:$0xff] }
 0x1ec   : > { %v1164_v49 = vpop.permute.xlu1 %1163  ;;  %v5548_v45 = vpop.permute.xlu0 %1082  ;;  %v789_v11 = vadd.f32 %v773_v13, %v5535_v47 }
 0x1ed   : > { %v4469_v30 = vmul.f32 -1.442695, %v5540_v44  ;;  %v1220_v58 = vmul.f32 %v5485_v51, %v1164_v49  ;;  %v786_v49 = vadd.f32 %v770_v7, %v685_v4  ;;  %v7354_v4 = vld [vmem:[#allocation38_spill] sm:$0xff]  ;;  %v885_v7 = vadd.f32 %v869_v1, %v784_v33 }
 0x1ee   : > { %v864_v34 = vmul.f32 %v5424_v52, %v7354_v4  ;;  %v870_v33 = vmul.f32 %v5424_v52, %v7358_v37  ;;  %v5615_v10 = vadd.f32 %v677_v53, %v542_v2  ;;  %v872_v2 = vmul.f32 %v5424_v52, %v7363_v21 }
 0x1ef   : > { %4714 = vpow2.f32 %v4469_v30  ;;  %v1236_v62 = vadd.f32 %v1220_v58, %v1135_v8  ;;  %v7352_v58 = vld [vmem:[#allocation34_spill] sm:$0xff]  ;;  %v1036_v1 = vadd.f32 %v1020_v27, %v885_v7 }
 0x1f0   : > { %v5565_v29 = vpop.permute.xlu1 %995  ;;  %v1168_v41 = vpop.permute.xlu0 %1167  ;;  %v676_v39 = vmul.f32 %v5372_v56, %v7352_v58  ;;  %v1116_v56 = vmul.f32 %v5460_v5, %v5441_v57  ;;  %v7361_v57 = vld [vmem:[#allocation53_spill] sm:$0xff] }
 0x1f1   : > { %v1256_v31 = vmul.f32 %v5513_v60, %v1236_v62  ;;  %v1221_v36 = vmul.f32 %v5485_v51, %v1168_v41  ;;  %v7356_v62 = vld [vmem:[#allocation39_spill] sm:$0xff]  ;;  %v1015_v41 = vmul.f32 %v5437_v40, %v7357_v35  ;;  %v1021_v7 = vmul.f32 %v5437_v40, %v7361_v57 }
 0x1f2   : > { %v774_v38 = vmul.f32 %v5411_v17, %v7356_v62 }
 0x1f3   : > { %v5577_v8 = vadd.f32 %v5524_v55, %v1256_v31  ;;  %v1237_v30 = vadd.f32 %v1221_v36, %v1136_v61  ;;  %v692_v61 = vadd.f32 %v676_v39, %v541_v54  ;;  %v880_v31 = vadd.f32 %v864_v34, %v779_v63  ;;  %v7360_v63 = vld [vmem:[#allocation42_spill] sm:$0xff] }
 0x1f4   : > { %v5587_v6 = vpop.permute.xlu1 %1086  ;;  %v5589_v28 = vpop.permute.xlu0 %1002  ;;  %v865_v36 = vmul.f32 %v5424_v52, %v7359_v46  ;;  %v5617_v54 = vadd.f32 %v774_v38, %v689_v19  ;;  %v871_v39 = vmul.f32 %v5424_v52, %v7360_v63  ;;  %v886_v34 = vadd.f32 %v870_v33, %v785_v42  ;;  %v7366_v46 = vld [vmem:[#allocation54_spill] sm:$0xff] }
 0x1f5   : > { %v4470_v20 = vmul.f32 -1.442695, %v5577_v8  ;;  %v1257_v14 = vmul.f32 %v5513_v60, %v1237_v30  ;;  %v1137_v30 = vadd.f32 %v1121_v59, %v1036_v1  ;;  %v1031_v4 = vadd.f32 %v1015_v41, %v880_v31  ;;  %v7362_v59 = vld [vmem:[#allocation43_spill] sm:$0xff]  ;;  %v7365_v1 = vld [vmem:[#allocation46_spill] sm:$0xff] }
 0x1f6   : > { %v881_v13 = vadd.f32 %v865_v36, %v780_v15  ;;  %v1122_v42 = vmul.f32 %v5460_v5, %v5474_v23  ;;  %v887_v37 = vadd.f32 %v871_v39, %v786_v49  ;;  %v7364_v15 = vld [vmem:[#allocation45_spill] sm:$0xff]  ;;  %v873_v31 = vmul.f32 %v5424_v52, %v7365_v1 }
 0x1f7   : > { %4716 = vpow2.f32 %v4470_v20  ;;  %v5604_v25 = vadd.f32 %v5524_v55, %v1257_v14  ;;  %v775_v14 = vmul.f32 %v5411_v17, %v7362_v59  ;;  %v1132_v19 = vadd.f32 %v1116_v56, %v1031_v4 }
 0x1f8   : > { %v1172_v0 = vpop.permute.xlu1 %1171  ;;  %v5610_v3 = vpop.permute.xlu0 %1090  ;;  %v776_v33 = vmul.f32 %v5411_v17, %v7364_v15  ;;  %v1016_v36 = vmul.f32 %v5437_v40, %v7366_v46  ;;  %v1037_v56 = vadd.f32 %v1021_v7, %v886_v34  ;;  %v1117_v63 = vmul.f32 %v5460_v5, %v5497_v9 }
 0x1f9   : > { %v4471_v27 = vmul.f32 -1.442695, %v5604_v25  ;;  %v1222_v58 = vmul.f32 %v5485_v51, %v1172_v0  ;;  %v889_v21 = vadd.f32 %v873_v31, %v788_v18 }
 0x1fa   : > { %v1138_v57 = vadd.f32 %v1122_v42, %v1037_v56  ;;  %v1032_v59 = vadd.f32 %v1016_v36, %v881_v13 }
 0x1fb   : > { %4718 = vpow2.f32 %v4471_v27  ;;  %v1238_v20 = vadd.f32 %v1222_v58, %v1137_v30  ;;  %v5642_v30 = vadd.f32 %v775_v14, %v690_v16  ;;  %v888_v27 = vadd.f32 %v872_v2, %v787_v50  ;;  %v7367_v58 = vld [vmem:[#allocation47_spill] sm:$0xff]  ;;  %v7368_v50 = vld [vmem:[#allocation49_spill] sm:$0xff] }
 0x1fc   : > { %v4715_v47 = vpop.eup %4714  ;;  %v5627_v53 = vpop.permute.xlu1 %1009  ;;  %v777_v49 = vmul.f32 %v5411_v17, %v7367_v58  ;;  %v5654_v16 = vadd.f32 %v776_v33, %v5579_v22  ;;  %v7369_v14 = vld [vmem:[#allocation55_spill] sm:$0xff]  ;;  %v7372_v58 = vld [vmem:[#allocation52_spill] sm:$0xff] }
 0x1fd   : > { %v1152_v62 = vpop.permute.xlu0 %1151  ;;  %v1339_v38 = vadd.f32 1.0, %v4715_v47  ;;  %v1258_v35 = vmul.f32 %v5513_v60, %v1238_v20  ;;  %v874_v47 = vmul.f32 %v5424_v52, %v7368_v50  ;;  %v1022_v9 = vmul.f32 %v5437_v40, %v7369_v14 }
 0x1fe   : > { %v1217_v41 = vmul.f32 %v5485_v51, %v1152_v62  ;;  %v5663_v42 = vadd.f32 %v777_v49, %v692_v61  ;;  %v7371_v61 = vld [vmem:[#allocation50_spill] sm:$0xff]  ;;  %v1025_v14 = vmul.f32 %v5437_v40, %v5415_v48 }
 0x1ff   : > { %4720 = vrcp.f32 %v1339_v38  ;;  %v5640_v0 = vadd.f32 %v5524_v55, %v1258_v35  ;;  %v7370_v38 = vld [vmem:[#allocation57_spill] sm:$0xff]  ;;  %v1133_v35 = vadd.f32 %v1117_v63, %v1032_v59  ;;  %v890_v46 = vadd.f32 %v874_v47, %v789_v11 }
 0x200   : > { %v1233_v23 = vadd.f32 %v1217_v41, %v1132_v19  ;;  %v5648_v39 = vpop.permute.xlu1 %1094  ;;  %v1023_v22 = vmul.f32 %v5437_v40, %v7370_v38  ;;  %v1123_v41 = vmul.f32 %v5460_v5, %v5526_v26  ;;  %v778_v36 = vmul.f32 %v5411_v17, %v7371_v61 }
 0x201   : > { %v1176_v4 = vpop.permute.xlu0 %1175  ;;  %v4472_v34 = vmul.f32 -1.442695, %v5640_v0  ;;  %v1038_v56 = vadd.f32 %v1022_v9, %v887_v37  ;;  %v875_v26 = vmul.f32 %v5424_v52, %v7372_v58  ;;  %v1024_v59 = vmul.f32 %v5437_v40, %v5378_v24 }
 0x202   : > { %v1253_v7 = vmul.f32 %v5513_v60, %v1233_v23  ;;  %v1223_v20 = vmul.f32 %v5485_v51, %v1176_v4  ;;  %v1124_v23 = vmul.f32 %v5460_v5, %v5548_v45  ;;  %v1039_v11 = vadd.f32 %v1023_v22, %v888_v27 }
 0x203   : > { %4722 = vpow2.f32 %v4472_v34  ;;  %v1126_v24 = vmul.f32 %v5460_v5, %v5610_v3  ;;  %v878_v3 = vmul.f32 %v5424_v52, %v5380_v12 }
 0x204   : > { %v5661_v2 = vadd.f32 %v5524_v55, %v1253_v7  ;;  %v1239_v19 = vadd.f32 %v1223_v20, %v1138_v57  ;;  %v4717_v62 = vpop.eup %4716  ;;  %v1156_v13 = vpop.permute.xlu1 %1155  ;;  %v7373_v57 = vld [vmem:[#allocation56_spill] sm:$0xff]  ;;  %v1139_v7 = vadd.f32 %v1123_v41, %v1038_v56  ;;  %v1140_v9 = vadd.f32 %v1124_v23, %v1039_v11 }
 0x205   : > { %v5669_v15 = vpop.permute.xlu0 %1098  ;;  %v1340_v33 = vadd.f32 1.0, %v4717_v62  ;;  %v1218_v31 = vmul.f32 %v5485_v51, %v1156_v13  ;;  %v876_v34 = vmul.f32 %v5424_v52, %v7373_v57  ;;  %v894_v11 = vadd.f32 %v878_v3, %v5663_v42 }
 0x206   : > { %v4467_v18 = vmul.f32 -1.442695, %v5661_v2  ;;  %v1259_v1 = vmul.f32 %v5513_v60, %v1239_v19  ;;  %v5694_v19 = vadd.f32 %v778_v36, %v5615_v10  ;;  %v891_v10 = vadd.f32 %v875_v26, %v5617_v54  ;;  %v7374_v36 = vld [vmem:[#allocation58_spill] sm:$0xff] }
 0x207   : > { %4724 = vrcp.f32 %v1340_v33  ;;  %v1234_v63 = vadd.f32 %v1218_v31, %v1133_v35  ;;  %v1125_v35 = vmul.f32 %v5460_v5, %v5587_v6  ;;  %v892_v33 = vadd.f32 %v876_v34, %v5642_v30 }
 0x208   : > { %v5681_v49 = vadd.f32 %v5524_v55, %v1259_v1  ;;  %v4719_v4 = vpop.eup %4718  ;;  %4726 = vpow2.f32 %v4467_v18  ;;  %v1180_v17 = vpop.permute.xlu1 %1179  ;;  %v1040_v6 = vadd.f32 %v1024_v59, %v889_v21  ;;  %v1041_v31 = vadd.f32 %v1025_v14, %v890_v46 }
 0x209   : > { %v1184_v37 = vpop.permute.xlu0 %1183  ;;  %v1341_v20 = vadd.f32 1.0, %v4719_v4  ;;  %v1254_v50 = vmul.f32 %v5513_v60, %v1234_v63  ;;  %v1224_v47 = vmul.f32 %v5485_v51, %v1180_v17  ;;  %v877_v56 = vmul.f32 %v5424_v52, %v7374_v36 }
 0x20a   : > { %v4473_v45 = vmul.f32 -1.442695, %v5681_v49  ;;  %v1225_v27 = vmul.f32 %v5485_v51, %v1184_v37  ;;  %v1026_v54 = vmul.f32 %v5437_v40, %v5472_v43  ;;  %v1027_v21 = vmul.f32 %v5437_v40, %v5528_v32  ;;  %v7375_v37 = vld [vmem:[#allocation5_spill] sm:$0xff] }
 0x20b   : > { %4728 = vrcp.f32 %v1341_v20  ;;  %v5697_v62 = vadd.f32 %v5524_v55, %v1254_v50  ;;  %v1240_v38 = vadd.f32 %v1224_v47, %v1139_v7  ;;  %v1141_v58 = vadd.f32 %v1125_v35, %v1040_v6 }
 0x20c   : > { %v4721_v22 = vpop.eup %4720  ;;  %4730 = vpow2.f32 %v4473_v45  ;;  %v1241_v48 = vadd.f32 %v1225_v27, %v1140_v9  ;;  %v5703_v41 = vpop.permute.xlu1 %1102  ;;  %v1142_v26 = vadd.f32 %v1126_v24, %v1041_v31  ;;  %v1029_v7 = vmul.f32 %v5437_v40, %v5589_v28 }
 0x20d   : > { %v1107_v13 = vpop.permute.xlu0 %1106  ;;  %v4468_v18 = vmul.f32 -1.442695, %v5697_v62  ;;  %v1260_v1 = vmul.f32 %v5513_v60, %v1240_v38  ;;  %1405 = vrot.lane.b32.xlu0 %v4721_v22, %s4822_s16  ;;  %v1128_v32 = vmul.f32 %v5460_v5, %v5669_v15  ;;  %v879_v20 = vmul.f32 %v5424_v52, %v7375_v37 }
 0x20e   : > { %v1261_v61 = vmul.f32 %v5513_v60, %v1241_v48  ;;  %v1043_v59 = vadd.f32 %v1027_v21, %v892_v33  ;;  %v1127_v14 = vmul.f32 %v5460_v5, %v5648_v39  ;;  %v1130_v42 = vmul.f32 %v5460_v5, %v1107_v13 }
 0x20f   : > { %4732 = vpow2.f32 %v4468_v18  ;;  %v5718_v30 = vadd.f32 %v5524_v55, %v1260_v1  ;;  %v1042_v15 = vadd.f32 %v1026_v54, %v891_v10  ;;  %v1045_v22 = vadd.f32 %v1029_v7, %v894_v11 }
 0x210   : > { %v4723_v23 = vpop.eup %4722  ;;  %v5723_v12 = vadd.f32 %v5524_v55, %v1261_v61  ;;  %v1188_v46 = vpop.permute.xlu1 %1187  ;;  %v1144_v24 = vadd.f32 %v1128_v32, %v1043_v59  ;;  %v893_v39 = vadd.f32 %v877_v56, %v5654_v16  ;;  %v1028_v13 = vmul.f32 %v5437_v40, %v5565_v29 }
 0x211   : > { %v1192_v63 = vpop.permute.xlu0 %1191  ;;  %v1342_v4 = vadd.f32 1.0, %v4723_v23  ;;  %v4474_v57 = vmul.f32 -1.442695, %v5718_v30  ;;  %v1226_v43 = vmul.f32 %v5485_v51, %v1188_v46  ;;  %v1143_v1 = vadd.f32 %v1127_v14, %v1042_v15 }
 0x212   : > { %v1227_v34 = vmul.f32 %v5485_v51, %v1192_v63  ;;  %v4475_v17 = vmul.f32 -1.442695, %v5723_v12  ;;  %v1146_v6 = vadd.f32 %v1130_v42, %v1045_v22  ;;  %v895_v23 = vadd.f32 %v879_v20, %v5694_v19 }
 0x213   : > { %4734 = vrcp.f32 %v1342_v4  ;;  %v1242_v45 = vadd.f32 %v1226_v43, %v1141_v58  ;;  %v1129_v58 = vmul.f32 %v5460_v5, %v5703_v41  ;;  %v1030_v46 = vmul.f32 %v5437_v40, %v5627_v53 }
 0x214   : > { %v1243_v50 = vadd.f32 %v1227_v34, %v1142_v26  ;;  %v4725_v47 = vpop.eup %4724  ;;  %4736 = vpow2.f32 %v4474_v57  ;;  %v1111_v28 = vpop.permute.xlu1 %1110  ;;  %v1044_v43 = vadd.f32 %v1028_v13, %v893_v39 }
 0x215   : > { %v1200_v9 = vpop.permute.xlu0 %1199  ;;  %v4727_v27 = vpop.eup %4726  ;;  %4738 = vpow2.f32 %v4475_v17  ;;  %v1262_v38 = vmul.f32 %v5513_v60, %v1242_v45  ;;  %1407 = vrot.lane.b32.xlu1 %v4725_v47, %s4822_s16  ;;  %v1131_v34 = vmul.f32 %v5460_v5, %v1111_v28  ;;  %v1046_v37 = vadd.f32 %v1030_v46, %v895_v23 }
 0x216   : > { %v1263_v52 = vmul.f32 %v5513_v60, %v1243_v50  ;;  %v1337_v35 = vadd.f32 1.0, %v4727_v27  ;;  %v1229_v48 = vmul.f32 %v5485_v51, %v1200_v9  ;;  %v1145_v17 = vadd.f32 %v1129_v58, %v1044_v43  ;;  %v2956_v58 = vld [vmem:[#allocation3] sm:$0xf] }
 0x217   : > { %v5747_v33 = vadd.f32 %v5524_v55, %v1262_v38  ;;  %v1147_v14 = vadd.f32 %v1131_v34, %v1046_v37  ;;  %v2972_v37 = vld [vmem:[#allocation3] sm:$0xe] }
 0x218   : > { %v5750_v10 = vadd.f32 %v5524_v55, %v1263_v52  ;;  %v4729_v18 = vpop.eup %4728  ;;  %4740 = vrcp.f32 %v1337_v35  ;;  %v1245_v3 = vadd.f32 %v1229_v48, %v1144_v24  ;;  %v1196_v31 = vpop.permute.xlu1 %1195 }
 0x219   : > { %v1208_v61 = vpop.permute.xlu0 %1207  ;;  %v4731_v36 = vpop.eup %4730  ;;  %v4476_v54 = vmul.f32 -1.442695, %v5747_v33  ;;  %v1228_v29 = vmul.f32 %v5485_v51, %v1196_v31  ;;  %1409 = vrot.lane.b32.xlu0 %v4729_v18, %s4822_s16 }
 0x21a   : > { %v4477_v16 = vmul.f32 -1.442695, %v5750_v10  ;;  %v1231_v56 = vmul.f32 %v5485_v51, %v1208_v61  ;;  %v1343_v21 = vadd.f32 1.0, %v4731_v36  ;;  %v1265_v26 = vmul.f32 %v5513_v60, %v1245_v3 }
 0x21b   : > { %4742 = vpow2.f32 %v4476_v54  ;;  %v1244_v63 = vadd.f32 %v1228_v29, %v1143_v1 }
 0x21c   : > { %v1247_v4 = vadd.f32 %v1231_v56, %v1146_v6  ;;  %v4733_v57 = vpop.eup %4732  ;;  %4744 = vrcp.f32 %v1343_v21  ;;  %v5765_v11 = vadd.f32 %v5524_v55, %v1265_v26  ;;  %v1204_v19 = vpop.permute.xlu1 %1203  ;;  %v2964_v26 = vld [vmem:[#allocation3 + $0x4] sm:$0x1] }
 0x21d   : > { %v1338_v7 = vadd.f32 1.0, %v4733_v57  ;;  %4746 = vpow2.f32 %v4477_v16  ;;  %v1264_v41 = vmul.f32 %v5513_v60, %v1244_v63  ;;  %v1230_v53 = vmul.f32 %v5485_v51, %v1204_v19 }
 0x21e   : > { %v1267_v32 = vmul.f32 %v5513_v60, %v1247_v4  ;;  %v4479_v40 = vmul.f32 -1.442695, %v5765_v11  ;;  %v4491_v4 = vcombine.low %v2956_v58, %v2964_v26 }
 0x21f   : > { %4748 = vrcp.f32 %v1338_v7  ;;  %v5772_v20 = vadd.f32 %v5524_v55, %v1264_v41  ;;  %v1246_v50 = vadd.f32 %v1230_v53, %v1145_v17  ;;  %v3012_v41 = vld [vmem:[#allocation3 + $0x48] sm:$0xf] }
 0x220   : > { %v5775_v5 = vadd.f32 %v5524_v55, %v1267_v32  ;;  %v4735_v45 = vpop.eup %4734  ;;  %4750 = vpow2.f32 %v4479_v40  ;;  %v1212_v47 = vpop.permute.xlu1 %1211  ;;  %v3072_v19 = vshll.u32 %v4491_v4, 16  ;;  %v3020_v32 = vld [vmem:[#allocation3 + $0x4c] sm:$0x1]  ;;  %v3070_v40 = vshrl.u32 %v4491_v4, 16 }
 0x221   : > { %v4737_v59 = vpop.eup %4736  ;;  %v4478_v42 = vmul.f32 -1.442695, %v5772_v20  ;;  %v1232_v28 = vmul.f32 %v5485_v51, %v1212_v47  ;;  %1411 = vrot.lane.b32.xlu1 %v4735_v45, %s4822_s16  ;;  %v1266_v38 = vmul.f32 %v5513_v60, %v1246_v50  ;;  %v4546_v45 = vcombine.low %v3012_v41, %v3020_v32 }
 0x222   : > { %v4739_v9 = vpop.eup %4738  ;;  %v1344_v27 = vadd.f32 1.0, %v4737_v59  ;;  %v4481_v15 = vmul.f32 -1.442695, %v5775_v5  ;;  %v3074_v53 = vrot.slane %v3072_v19, 1  ;;  %v4499_v59 = vcombine.low %v2972_v37, %v2964_v26 }
 0x223   : > { %v1345_v52 = vadd.f32 1.0, %v4739_v9  ;;  %4752 = vpow2.f32 %v4478_v42  ;;  %v1248_v22 = vadd.f32 %v1232_v28, %v1147_v14  ;;  %v5783_v35 = vadd.f32 %v5524_v55, %v1266_v38 }
 0x224   : > { %4754 = vrcp.f32 %v1344_v27  ;;  %v3075_v47 = vor.u32 %v3074_v53, %v3070_v40  ;;  %v3489_v42 = vshll.u32 %v4546_v45, 16  ;;  %v3165_v28 = vrot.slane %v4499_v59, 1 }
 0x225   : > { %v4741_v24 = vpop.eup %4740  ;;  %4756 = vrcp.f32 %v1345_v52  ;;  %v1268_v48 = vmul.f32 %v5513_v60, %v1248_v22  ;;  %v4480_v51 = vmul.f32 -1.442695, %v5783_v35  ;;  %v4538_v27 = vcombine.low %v3012_v41, %v3012_v41  ;;  %v3028_v52 = vld [vmem:[#allocation3 + $0x48] sm:$0xe]  ;;  %v7376_v41 = vld [vmem:[#allocation4_spill] sm:$0xff] }
 0x226   : > { %4758 = vpow2.f32 %v4481_v15  ;;  %1401 = vrot.lane.b32.xlu0 %v4741_v24, %s4822_s16  ;;  %v3487_v15 = vshrl.u32 %v4546_v45, 16  ;;  %v3491_v38 = vrot.slane %v3489_v42, 1  ;;  %v4554_v24 = vcombine.low %v3028_v52, %v3020_v32 }
 0x227   : > { %v5789_v39 = vadd.f32 %v5524_v55, %v1268_v48  ;;  %4760 = vpow2.f32 %v4480_v51  ;;  %v4829_v19 = vmov 1934713408  }
 0x228   : > { %v4743_v13 = vpop.eup %4742  ;;  %v3492_v22 = vor.u32 %v3491_v38, %v3487_v15  ;;  %v3540_v48 = vrot.slane %v4554_v24, 1 }
 0x229   : > { %v4745_v18 = vpop.eup %4744  ;;  %v1346_v1 = vadd.f32 1.0, %v4743_v13  ;;  %v4482_v6 = vmul.f32 -1.442695, %v5789_v39 }
 0x22a   : > { %v4747_v3 = vpop.eup %4746  ;;  %1413 = vrot.lane.b32.xlu0 %v4745_v18, %s4822_s16 }
 0x22b   : > { %4762 = vrcp.f32 %v1346_v1  ;;  %v1347_v31 = vadd.f32 1.0, %v4747_v3 }
 0x22c   : > { %v4749_v60 = vpop.eup %4748  ;;  %4764 = vpow2.f32 %v4482_v6 }
 0x22d   : > { %v4751_v61 = vpop.eup %4750  ;;  %4766 = vrcp.f32 %v1347_v31  ;;  %1403 = vrot.lane.b32.xlu1 %v4749_v60, %s4822_s16 }
 0x22e   : > { %v1349_v36 = vadd.f32 1.0, %v4751_v61 }
 0x230   : > { %v4753_v55 = vpop.eup %4752  ;;  %4768 = vrcp.f32 %v1349_v36 }
 0x231   : > { %v4755_v54 = vpop.eup %4754  ;;  %v1348_v16 = vadd.f32 1.0, %v4753_v55 }
 0x232   : > { %v4757_v29 = vpop.eup %4756  ;;  %1415 = vrot.lane.b32.xlu1 %v4755_v54, %s4822_s16 }
 0x233   : > { %v4759_v56 = vpop.eup %4758  ;;  %4770 = vrcp.f32 %v1348_v16  ;;  %1417 = vrot.lane.b32.xlu0 %v4757_v29, %s4822_s16 }
 0x234   : > { %v1351_v23 = vadd.f32 1.0, %v4759_v56  ;;  %v4761_v21 = vpop.eup %4760 }
 0x235   : > { %v1350_v46 = vadd.f32 1.0, %v4761_v21 }
 0x236   : > { %4772 = vrcp.f32 %v1351_v23 }
 0x237   : > { %4774 = vrcp.f32 %v1350_v46 }
 0x238   : > { %v4763_v63 = vpop.eup %4762 }
 0x239   : > { %v4765_v57 = vpop.eup %4764  ;;  %1419 = vrot.lane.b32.xlu1 %v4763_v63, %s4822_s16 }
 0x23a   : > { %v4767_v43 = vpop.eup %4766  ;;  %v1352_v34 = vadd.f32 1.0, %v4765_v57  ;;  %v4828_v57 = vmov 1983009808  }
 0x23b   : > { %1421 = vrot.lane.b32.xlu0 %v4767_v43, %s4822_s16 }
 0x23c   : > { %4776 = vrcp.f32 %v1352_v34 }
 0x23d   : > { %v4769_v7 = vpop.eup %4768 }
 0x23f   : > { %1425 = vrot.lane.b32.xlu0 %v4769_v7, %s4822_s16 }
 0x240   : > { %v4771_v17 = vpop.eup %4770 }
 0x241   : > { %1423 = vrot.lane.b32.xlu1 %v4771_v17, %s4822_s16 }
 0x243   : > { %v4773_v50 = vpop.eup %4772 }
 0x244   : > { %1429 = vrot.lane.b32.xlu0 %v4773_v50, %s4822_s16  ;;  %v4775_v14 = vpop.eup %4774 }
 0x245   : > { %1427 = vrot.lane.b32.xlu1 %v4775_v14, %s4822_s16 }
 0x248   : > { %3125 = vrot.lane.b32.xlu0 %v3075_v47, %s4822_s16 }
 0x249   : > { %v4777_v9 = vpop.eup %4776 }
 0x24a   : > { %1431 = vrot.lane.b32.xlu1 %v4777_v9, %s4822_s16 }
 0x24c   : > { %3173 = vrot.lane.b32.xlu0 %v3165_v28, %s4823_s17 }
 0x24e   : > { %3411 = vrot.lane.b32.xlu1 %v4538_v27, %s4824_s18 }
 0x252   : > { %3507 = vrot.lane.b32.xlu1 %v3492_v22, %s4825_s19 }
 0x256   : > { %3555 = vrot.lane.b32.xlu1 %v3540_v48, %s4826_s20 }
 0x27f   : > { %v1406_v51 = vpop.permute.xlu0 %1405 }
 0x280   : > { %v1451_v13 = vmul.f32 %v1406_v51, %v5540_v44 }
 0x282   : > { %1485 = vrot.lane.b32.xlu0 %v1451_v13, %s4827_s21 }
 0x287   : > { %v1408_v18 = vpop.permute.xlu1 %1407 }
 0x288   : > { %v1452_v1 = vmul.f32 %v1408_v18, %v5577_v8 }
 0x28a   : > { %1487 = vrot.lane.b32.xlu1 %v1452_v1, %s4827_s21 }
 0x28b   : > { %v1410_v6 = vpop.permute.xlu0 %1409 }
 0x28c   : > { %v1453_v3 = vmul.f32 %v1410_v6, %v5604_v25 }
 0x28e   : > { %1489 = vrot.lane.b32.xlu0 %v1453_v3, %s4827_s21 }
 0x293   : > { %v1412_v31 = vpop.permute.xlu1 %1411 }
 0x294   : > { %v1454_v60 = vmul.f32 %v1412_v31, %v5640_v0 }
 0x296   : > { %1491 = vrot.lane.b32.xlu1 %v1454_v60, %s4827_s21 }
 0x298   : > { %v1402_v61 = vpop.permute.xlu0 %1401 }
 0x299   : > { %v1449_v44 = vmul.f32 %v1402_v61, %v5661_v2 }
 0x29b   : > { %1481 = vrot.lane.b32.xlu0 %v1449_v44, %s4827_s21 }
 0x29c   : > { %v1414_v36 = vpop.permute.xlu0 %1413 }
 0x29d   : > { %v1455_v8 = vmul.f32 %v1414_v36, %v5681_v49 }
 0x29f   : > { %1493 = vrot.lane.b32.xlu0 %v1455_v8, %s4827_s21  ;;  %v1404_v55 = vpop.permute.xlu1 %1403 }
 0x2a0   : > { %v1450_v25 = vmul.f32 %v1404_v55, %v5697_v62 }
 0x2a2   : > { %1483 = vrot.lane.b32.xlu1 %v1450_v25, %s4827_s21 }
 0x2a4   : > { %v1416_v54 = vpop.permute.xlu1 %1415 }
 0x2a5   : > { %v1456_v0 = vmul.f32 %v1416_v54, %v5718_v30  ;;  %v1418_v16 = vpop.permute.xlu0 %1417 }
 0x2a6   : > { %v1457_v29 = vmul.f32 %v1418_v16, %v5723_v12 }
 0x2a7   : > { %1495 = vrot.lane.b32.xlu1 %v1456_v0, %s4827_s21 }
 0x2a8   : > { %1497 = vrot.lane.b32.xlu0 %v1457_v29, %s4827_s21 }
 0x2ab   : > { %v1420_v2 = vpop.permute.xlu1 %1419 }
 0x2ac   : > { %v1458_v49 = vmul.f32 %v1420_v2, %v5747_v33 }
 0x2ad   : > { %v1422_v56 = vpop.permute.xlu0 %1421 }
 0x2ae   : > { %v1459_v23 = vmul.f32 %v1422_v56, %v5750_v10  ;;  %1499 = vrot.lane.b32.xlu1 %v1458_v49, %s4827_s21 }
 0x2b0   : > { %1501 = vrot.lane.b32.xlu0 %v1459_v23, %s4827_s21 }
 0x2b1   : > { %v1426_v62 = vpop.permute.xlu0 %1425 }
 0x2b2   : > { %v1461_v30 = vmul.f32 %v1426_v62, %v5765_v11 }
 0x2b3   : > { %v1424_v21 = vpop.permute.xlu1 %1423 }
 0x2b4   : > { %1505 = vrot.lane.b32.xlu0 %v1461_v30, %s4827_s21  ;;  %v1460_v12 = vmul.f32 %v1424_v21, %v5772_v20 }
 0x2b6   : > { %v1430_v58 = vpop.permute.xlu0 %1429  ;;  %1503 = vrot.lane.b32.xlu1 %v1460_v12, %s4827_s21 }
 0x2b7   : > { %v1463_v33 = vmul.f32 %v1430_v58, %v5775_v5  ;;  %v1428_v26 = vpop.permute.xlu1 %1427  ;;  %v1531_v5 = vunpack.c.l.s4 %v4828_v57 }
 0x2b8   : > { %v1462_v10 = vmul.f32 %v1428_v26, %v5783_v35  ;;  %v1562_v35 = vunpack.c.l.s4 %v4829_v19 }
 0x2b9   : > { %1509 = vrot.lane.b32.xlu0 %v1463_v33, %s4827_s21  ;;  %v1532_v34 = vunpack.c.0.s8 %v1531_v5  ;;  %v7379_v5 = vmov 0.0  }
 0x2ba   : > { %1507 = vrot.lane.b32.xlu1 %v1462_v10, %s4827_s21  ;;  %v5842_v20 = vpop.permute.xlu0 %3125 }
 0x2bb   : > { %v5851_v32 = vsub.s32 %v1532_v34, %v7376_v41 }
 0x2bc   : > { %v1432_v46 = vpop.permute.xlu1 %1431 }
 0x2bd   : > { %v1464_v11 = vmul.f32 %v1432_v46, %v5789_v39  ;;  %7377 = vst [vmem:[#allocation6_spill] sm:$0xff] %v5851_v32  ;;  %v1563_v39 = vunpack.c.0.s8 %v1562_v35 }
 0x2be   : > { %v5846_v43 = vpop.permute.xlu0 %3173 }
 0x2bf   : > { %1511 = vrot.lane.b32.xlu1 %v1464_v11, %s4827_s21  ;;  %v5862_v45 = vsub.s32 %v1563_v39, %v7376_v41 }
 0x2c0   : > { %v5840_v63 = vpop.permute.xlu1 %3411 }
 0x2c1   : > { %7378 = vst [vmem:[#allocation7_spill] sm:$0xff] %v5862_v45 }
 0x2c4   : > { %v5844_v4 = vpop.permute.xlu1 %3507 }
 0x2c8   : > { %v5848_v7 = vpop.permute.xlu1 %3555 }
 0x2f4   : > { %v5853_v17 = vpop.permute.xlu0 %1485 }
 0x2f5   : > { %v1602_v53 = vrot.slane %v5853_v17, %v5851_v32 }
 0x2fc   : > { %v5855_v40 = vpop.permute.xlu1 %1487 }
 0x2fd   : > { %v1617_v37 = vrot.slane %v5855_v40, %v5851_v32 }
 0x2ff   : > { %v1626_v50 = vcombine.high %v1602_v53, %v1617_v37  ;;  %v1625_v56 = vcombine.low %v1602_v53, %v1617_v37  ;;  %v1610_v53 = vcombine.high %v5855_v40, %v7379_v5 }
 0x300   : > { %v5869_v59 = vpop.permute.xlu0 %1489 }
 0x301   : > { %v5865_v47 = vrot.slane %v1626_v50, %v5862_v45  ;;  %v1668_v42 = vrot.slane %v5869_v59, %v5851_v32  ;;  %v5953_v58 = vrot.slane %v1625_v56, %v5862_v45 }
 0x303   : > { %2099 = vrot.lane.b32.xlu0 %v5865_v47, %s4823_s17  ;;  %v1657_v34 = vcombine.high %v5953_v58, %v7379_v5 }
 0x308   : > { %v5871_v14 = vpop.permute.xlu1 %1491 }
 0x309   : > { %v1683_v28 = vrot.slane %v5871_v14, %v5851_v32 }
 0x30b   : > { %v1692_v9 = vcombine.high %v1668_v42, %v1683_v28  ;;  %v1691_v33 = vcombine.low %v1668_v42, %v1683_v28 }
 0x30d   : > { %v5878_v27 = vrot.slane %v1692_v9, %v5862_v45  ;;  %v5882_v15 = vpop.permute.xlu0 %1481  ;;  %v5967_v19 = vrot.slane %v1691_v33, %v5862_v45  ;;  %v1595_v9 = vcombine.high %v5853_v17, %v7379_v5  ;;  %v1676_v17 = vcombine.high %v5871_v14, %v7379_v5 }
 0x30e   : > { %v1536_v52 = vrot.slane %v5882_v15, %v5851_v32  ;;  %v1529_v14 = vcombine.high %v5882_v15, %v7379_v5 }
 0x30f   : > { %2101 = vrot.lane.b32.xlu1 %v5878_v27, %s4823_s17  ;;  %v1723_v28 = vcombine.high %v5967_v19, %v7379_v5 }
 0x310   : > { %v1543_v56 = vrot.slane %v1529_v14, %v5851_v32 }
 0x311   : > { %v5890_v24 = vpop.permute.xlu0 %1493 }
 0x312   : > { %v1734_v18 = vrot.slane %v5890_v24, %v5851_v32 }
 0x314   : > { %v5884_v38 = vpop.permute.xlu1 %1483 }
 0x315   : > { %v1551_v22 = vrot.slane %v5884_v38, %v5851_v32 }
 0x317   : > { %v1560_v48 = vcombine.high %v1536_v52, %v1551_v22  ;;  %v1559_v35 = vcombine.low %v1536_v52, %v1551_v22  ;;  %v5992_v52 = vrot.slane %v1610_v53, %v5851_v32 }
 0x319   : > { %v5892_v51 = vpop.permute.xlu1 %1495  ;;  %v5895_v13 = vrot.slane %v1560_v48, %v5862_v45  ;;  %v5981_v37 = vrot.slane %v1559_v35, %v5862_v45  ;;  %v1658_v48 = vcombine.high %v5865_v47, %v7379_v5 }
 0x31a   : > { %v1749_v1 = vrot.slane %v5892_v51, %v5851_v32  ;;  %v5903_v3 = vpop.permute.xlu0 %1497  ;;  %v1742_v35 = vcombine.high %v5892_v51, %v7379_v5 }
 0x31b   : > { %2097 = vrot.lane.b32.xlu0 %v5895_v13, %s4823_s17  ;;  %v1800_v61 = vrot.slane %v5903_v3, %v5851_v32 }
 0x31c   : > { %v1758_v6 = vcombine.high %v1734_v18, %v1749_v1  ;;  %v1757_v26 = vcombine.low %v1734_v18, %v1749_v1  ;;  %v1591_v18 = vcombine.high %v5981_v37, %v7379_v5  ;;  %v6002_v1 = vrot.slane %v1595_v9, %v5851_v32 }
 0x31d   : > { %v1756_v51 = vrot.slane %v1742_v35, %v5851_v32 }
 0x31e   : > { %v5906_v31 = vrot.slane %v1758_v6, %v5862_v45  ;;  %v5970_v41 = vrot.slane %v1757_v26, %v5862_v45  ;;  %v1544_v6 = vcombine.high %v5884_v38, %v7379_v5  ;;  %v1641_v47 = vcombine.low %v6002_v1, %v5992_v52 }
 0x31f   : > { %v1690_v38 = vrot.slane %v1676_v17, %v5851_v32 }
 0x320   : > { %2103 = vrot.lane.b32.xlu1 %v5906_v31, %s4823_s17  ;;  %v5910_v60 = vpop.permute.xlu1 %1499  ;;  %v1789_v42 = vcombine.high %v5970_v41, %v7379_v5 }
 0x321   : > { %v1815_v44 = vrot.slane %v5910_v60, %v5851_v32 }
 0x322   : > { %v5916_v8 = vpop.permute.xlu0 %1501 }
 0x323   : > { %v1824_v36 = vcombine.high %v1800_v61, %v1815_v44  ;;  %v1866_v54 = vrot.slane %v5916_v8, %v5851_v32  ;;  %v1823_v50 = vcombine.low %v1800_v61, %v1815_v44  ;;  %v1724_v44 = vcombine.high %v5878_v27, %v7379_v5 }
 0x325   : > { %v5919_v55 = vrot.slane %v1824_v36, %v5862_v45  ;;  %v5995_v40 = vrot.slane %v1823_v50, %v5862_v45 }
 0x326   : > { %v5929_v16 = vpop.permute.xlu0 %1505 }
 0x327   : > { %2105 = vrot.lane.b32.xlu1 %v5919_v55, %s4823_s17  ;;  %v5938_v23 = vrot.slane %v5929_v16, %v5851_v32  ;;  %v1855_v36 = vcombine.high %v5995_v40, %v7379_v5 }
 0x328   : > { %v5923_v25 = vpop.permute.xlu1 %1503 }
 0x329   : > { %v1881_v0 = vrot.slane %v5923_v25, %v5851_v32 }
 0x32b   : > { %v1890_v29 = vcombine.high %v1866_v54, %v1881_v0  ;;  %v5946_v30 = vpop.permute.xlu0 %1509  ;;  %v1889_v22 = vcombine.low %v1866_v54, %v1881_v0  ;;  %v1661_v54 = vcombine.high %v5869_v59, %v7379_v5  ;;  %v6027_v0 = vrot.slane %v1544_v6, %v5851_v32 }
 0x32c   : > { %v5931_v2 = vpop.permute.xlu1 %1507  ;;  %v1998_v10 = vrot.slane %v5946_v30, %v5851_v32 }
 0x32d   : > { %v5934_v49 = vrot.slane %v1890_v29, %v5862_v45  ;;  %v5942_v62 = vrot.slane %v5931_v2, %v5851_v32  ;;  %v6013_v61 = vrot.slane %v1889_v22, %v5862_v45  ;;  %v6032_v29 = vrot.slane %v1641_v47, %v5862_v45 }
 0x32e   : > { %v1675_v59 = vrot.slane %v1661_v54, %v5851_v32 }
 0x32f   : > { %2107 = vrot.lane.b32.xlu1 %v5934_v49, %s4823_s17  ;;  %v1956_v21 = vcombine.high %v5938_v23, %v5942_v62  ;;  %v1921_v27 = vcombine.high %v6013_v61, %v7379_v5  ;;  %v1955_v33 = vcombine.low %v5938_v23, %v5942_v62  ;;  %v1874_v62 = vcombine.high %v5923_v25, %v7379_v5 }
 0x330   : > { %v1707_v15 = vcombine.low %v1675_v59, %v1690_v38  ;;  %v1808_v25 = vcombine.high %v5910_v60, %v7379_v5  ;;  %v1642_v60 = vcombine.high %v6002_v1, %v5992_v52  ;;  %v1576_v1 = vcombine.high %v1543_v56, %v6027_v0 }
 0x331   : > { %v5950_v12 = vpop.permute.xlu1 %1511  ;;  %v5960_v11 = vrot.slane %v1956_v21, %v5862_v45  ;;  %v1575_v21 = vcombine.low %v1543_v56, %v6027_v0  ;;  %v6051_v53 = vrot.slane %v1955_v33, %v5862_v45  ;;  %v1888_v22 = vrot.slane %v1874_v62, %v5851_v32 }
 0x332   : > { %v2013_v46 = vrot.slane %v5950_v12, %v5851_v32  ;;  %v6057_v23 = vrot.slane %v1707_v15, %v5862_v45  ;;  %v1822_v47 = vrot.slane %v1808_v25, %v5851_v32  ;;  %v1656_v52 = vrot.slane %v1642_v60, %v5862_v45 }
 0x333   : > { %2109 = vrot.lane.b32.xlu0 %v5960_v11, %s4823_s17  ;;  %v2006_v15 = vcombine.high %v5950_v12, %v7379_v5 }
 0x334   : > { %v2022_v57 = vcombine.high %v1998_v10, %v2013_v46  ;;  %v2021_v26 = vcombine.low %v1998_v10, %v2013_v46  ;;  %v1987_v10 = vcombine.high %v6051_v53, %v7379_v5 }
 0x336   : > { %v5973_v39 = vrot.slane %v2022_v57, %v5862_v45  ;;  %v1592_v57 = vcombine.high %v5895_v13, %v7379_v5  ;;  %v6054_v50 = vrot.slane %v2021_v26, %v5862_v45  ;;  %v6060_v13 = vrot.slane %v1575_v21, %v5862_v45 }
 0x337   : > { %2067 = vrot.lane.b32.xlu0 %v1657_v34, %s4822_s16  ;;  %v1790_v34 = vcombine.high %v5906_v31, %v7379_v5  ;;  %v1727_v31 = vcombine.high %v5890_v24, %v7379_v5  ;;  %v1859_v24 = vcombine.high %v5916_v8, %v7379_v5  ;;  %v1793_v8 = vcombine.high %v5903_v3, %v7379_v5 }
 0x338   : > { %2111 = vrot.lane.b32.xlu1 %v5973_v39, %s4823_s17  ;;  %v2053_v46 = vcombine.high %v6054_v50, %v7379_v5  ;;  %v1988_v21 = vcombine.high %v5960_v11, %v7379_v5  ;;  %v1991_v26 = vcombine.high %v5946_v30, %v7379_v5  ;;  %v2054_v30 = vcombine.high %v5973_v39, %v7379_v5 }
 0x339   : > { %v1873_v17 = vrot.slane %v1859_v24, %v5851_v32  ;;  %v1807_v3 = vrot.slane %v1793_v8, %v5851_v32  ;;  %v1659_v24 = vcombine.high %v6032_v29, %v7379_v5  ;;  %v1593_v25 = vcombine.high %v6060_v13, %v7379_v5 }
 0x33a   : > { %v2005_v12 = vrot.slane %v1991_v26, %v5851_v32 }
 0x33b   : > { %2071 = vrot.lane.b32.xlu0 %v1789_v42, %s4822_s16  ;;  %v1741_v42 = vrot.slane %v1727_v31, %v5851_v32  ;;  %v1839_v54 = vcombine.low %v1807_v3, %v1822_v47  ;;  %v1840_v56 = vcombine.high %v1807_v3, %v1822_v47 }
 0x33c   : > { %2069 = vrot.lane.b32.xlu1 %v1723_v28, %s4822_s16  ;;  %v1708_v28 = vcombine.high %v1675_v59, %v1690_v38  ;;  %v1590_v59 = vrot.slane %v1576_v1, %v5862_v45 }
 0x33d   : > { %v1773_v9 = vcombine.low %v1741_v42, %v1756_v51  ;;  %v1774_v0 = vcombine.high %v1741_v42, %v1756_v51  ;;  %v1854_v31 = vrot.slane %v1840_v56, %v5862_v45 }
 0x33e   : > { %v1722_v6 = vrot.slane %v1708_v28, %v5862_v45  ;;  %v1725_v28 = vcombine.high %v6057_v23, %v7379_v5  ;;  %v1594_v8 = vcombine.high %v1590_v59, %v7379_v5 }
 0x33f   : > { %2131 = vrot.lane.b32.xlu0 %v1658_v48, %s4830_s22  ;;  %v1856_v48 = vcombine.high %v5919_v55, %v7379_v5  ;;  %v1905_v55 = vcombine.low %v1873_v17, %v1888_v22  ;;  %v1788_v35 = vrot.slane %v1774_v0, %v5862_v45 }
 0x340   : > { %2065 = vrot.lane.b32.xlu1 %v1591_v18, %s4822_s16  ;;  %v1922_v18 = vcombine.high %v5934_v49, %v7379_v5  ;;  %v1940_v49 = vcombine.high %v5931_v2, %v7379_v5 }
 0x341   : > { %v1913_v2 = vrot.slane %v1905_v55, %v5862_v45 }
 0x342   : > { %v1954_v14 = vrot.slane %v1940_v49, %v5851_v32 }
 0x343   : > { %2133 = vrot.lane.b32.xlu0 %v1724_v44, %s4830_s22  ;;  %v1781_v44 = vrot.slane %v1773_v9, %v5862_v45 }
 0x344   : > { %2073 = vrot.lane.b32.xlu1 %v1855_v36, %s4822_s16  ;;  %v1925_v36 = vcombine.high %v5929_v16, %v7379_v5 }
 0x345   : > { %v1791_v9 = vcombine.high %v1781_v44, %v7379_v5 }
 0x346   : > { %v1939_v38 = vrot.slane %v1925_v36, %v5851_v32 }
 0x347   : > { %2075 = vrot.lane.b32.xlu0 %v1921_v27, %s4822_s16  ;;  %v1847_v27 = vrot.slane %v1839_v54, %v5862_v45 }
 0x348   : > { %2163 = vrot.lane.b32.xlu1 %v6032_v29, %s4831_s23  ;;  %v1971_v16 = vcombine.low %v1939_v38, %v1954_v14  ;;  %v1660_v29 = vcombine.high %v1656_v52, %v7379_v5 }
 0x34a   : > { %v1979_v33 = vrot.slane %v1971_v16, %v5862_v45 }
 0x34b   : > { %2129 = vrot.lane.b32.xlu0 %v1592_v57, %s4830_s22  ;;  %v1972_v57 = vcombine.high %v1939_v38, %v1954_v14 }
 0x34c   : > { %2135 = vrot.lane.b32.xlu1 %v1790_v34, %s4830_s22  ;;  %v2020_v34 = vrot.slane %v2006_v15, %v5851_v32 }
 0x34d   : > { %v1986_v62 = vrot.slane %v1972_v57, %v5862_v45 }
 0x34e   : > { %v2037_v11 = vcombine.low %v2005_v12, %v2020_v34  ;;  %v2038_v51 = vcombine.high %v2005_v12, %v2020_v34 }
 0x34f   : > { %2165 = vrot.lane.b32.xlu0 %v6057_v23, %s4831_s23  ;;  %v1792_v23 = vcombine.high %v1788_v35, %v7379_v5  ;;  %v1990_v55 = vcombine.high %v1986_v62, %v7379_v5 }
 0x350   : > { %2161 = vrot.lane.b32.xlu1 %v6060_v13, %s4831_s23  ;;  %v2045_v42 = vrot.slane %v2037_v11, %v5862_v45  ;;  %v1989_v13 = vcombine.high %v1979_v33, %v7379_v5 }
 0x352   : > { %v2055_v60 = vcombine.high %v2045_v42, %v7379_v5 }
 0x353   : > { %2077 = vrot.lane.b32.xlu0 %v1987_v10, %s4822_s16  ;;  %v1906_v10 = vcombine.high %v1873_v17, %v1888_v22  ;;  %v1726_v22 = vcombine.high %v1722_v6, %v7379_v5  ;;  %v1858_v17 = vcombine.high %v1854_v31, %v7379_v5 }
 0x354   : > { %2079 = vrot.lane.b32.xlu1 %v2053_v46, %s4822_s16  ;;  %v2052_v46 = vrot.slane %v2038_v51, %v5862_v45 }
 0x355   : > { %v1920_v39 = vrot.slane %v1906_v10, %v5862_v45 }
 0x357   : > { %2137 = vrot.lane.b32.xlu0 %v1856_v48, %s4830_s22  ;;  %v1857_v48 = vcombine.high %v1847_v27, %v7379_v5  ;;  %v1924_v47 = vcombine.high %v1920_v39, %v7379_v5 }
 0x358   : > { %2139 = vrot.lane.b32.xlu1 %v1922_v18, %s4830_s22  ;;  %v1923_v18 = vcombine.high %v1913_v2, %v7379_v5 }
 0x35b   : > { %2167 = vrot.lane.b32.xlu0 %v1781_v44, %s4831_s23 }
 0x35c   : > { %2229 = vrot.lane.b32.xlu1 %v1722_v6, %s4824_s18  ;;  %v2056_v6 = vcombine.high %v2052_v46, %v7379_v5 }
 0x35f   : > { %2227 = vrot.lane.b32.xlu0 %v1656_v52, %s4824_s18 }
 0x360   : > { %2171 = vrot.lane.b32.xlu1 %v1913_v2, %s4831_s23 }
 0x363   : > { %2169 = vrot.lane.b32.xlu0 %v1847_v27, %s4831_s23 }
 0x364   : > { %2225 = vrot.lane.b32.xlu1 %v1590_v59, %s4824_s18 }
 0x367   : > { %2141 = vrot.lane.b32.xlu0 %v1988_v21, %s4830_s22 }
 0x368   : > { %2173 = vrot.lane.b32.xlu1 %v1979_v33, %s4831_s23 }
 0x36b   : > { %2231 = vrot.lane.b32.xlu0 %v1788_v35, %s4824_s18 }
 0x36c   : > { %2233 = vrot.lane.b32.xlu1 %v1854_v31, %s4824_s18 }
 0x36f   : > { %2143 = vrot.lane.b32.xlu0 %v2054_v30, %s4830_s22 }
 0x370   : > { %2237 = vrot.lane.b32.xlu1 %v1986_v62, %s4824_s18 }
 0x373   : > { %2175 = vrot.lane.b32.xlu0 %v2045_v42, %s4831_s23 }
 0x374   : > { %2239 = vrot.lane.b32.xlu1 %v2052_v46, %s4824_s18 }
 0x375   : > { %v2100_v44 = vpop.permute.xlu0 %2099 }
 0x377   : > { %2235 = vrot.lane.b32.xlu0 %v1920_v39, %s4824_s18 }
 0x378   : > { %2195 = vrot.lane.b32.xlu1 %v1659_v24, %s4832_s24 }
 0x37b   : > { %2199 = vrot.lane.b32.xlu0 %v1791_v9, %s4832_s24 }
 0x37c   : > { %2197 = vrot.lane.b32.xlu1 %v1725_v28, %s4832_s24 }
 0x37f   : > { %2259 = vrot.lane.b32.xlu0 %v1660_v29, %s4825_s19 }
 0x380   : > { %2193 = vrot.lane.b32.xlu1 %v1593_v25, %s4832_s24 }
 0x381   : > { %v2102_v49 = vpop.permute.xlu1 %2101 }
 0x383   : > { %2201 = vrot.lane.b32.xlu0 %v1857_v48, %s4832_s24 }
 0x384   : > { %2261 = vrot.lane.b32.xlu1 %v1726_v22, %s4825_s19 }
 0x387   : > { %2203 = vrot.lane.b32.xlu0 %v1923_v18, %s4832_s24 }
 0x388   : > { %2263 = vrot.lane.b32.xlu1 %v1792_v23, %s4825_s19 }
 0x38b   : > { %2257 = vrot.lane.b32.xlu0 %v1594_v8, %s4825_s19 }
 0x38c   : > { %2205 = vrot.lane.b32.xlu1 %v1989_v13, %s4832_s24 }
 0x38d   : > { %v6178_v36 = vpop.permute.xlu0 %2097 }
 0x38f   : > { %2207 = vrot.lane.b32.xlu0 %v2055_v60, %s4832_s24 }
 0x390   : > { %2265 = vrot.lane.b32.xlu1 %v1858_v17, %s4825_s19 }
 0x392   : > { %v6176_v3 = vpop.permute.xlu1 %2103 }
 0x393   : > { %2267 = vrot.lane.b32.xlu0 %v1924_v47, %s4825_s19 }
 0x394   : > { %2271 = vrot.lane.b32.xlu1 %v2056_v6, %s4825_s19 }
 0x397   : > { %2269 = vrot.lane.b32.xlu0 %v1990_v55, %s4825_s19 }
 0x399   : > { %v6180_v52 = vpop.permute.xlu1 %2105 }
 0x3a1   : > { %v6182_v1 = vpop.permute.xlu1 %2107 }
 0x3a5   : > { %v6184_v54 = vpop.permute.xlu0 %2109 }
 0x3a9   : > { %v2068_v2 = vpop.permute.xlu0 %2067 }
 0x3aa   : > { %v6186_v14 = vpop.permute.xlu1 %2111  ;;  %v2283_v23 = vsel %vm2281_vm5, %v5953_v58, %v2068_v2 }
 0x3ab   : > { %v2292_v8 = vsel %vm2290_vm7, %v2283_v23, %v2100_v44 }
 0x3ad   : > { %v2072_v16 = vpop.permute.xlu0 %2071 }
 0x3ae   : > { %v2070_v38 = vpop.permute.xlu1 %2069  ;;  %v2285_v5 = vsel %vm2281_vm5, %v5970_v41, %v2072_v16 }
 0x3af   : > { %v2284_v17 = vsel %vm2281_vm5, %v5967_v19, %v2070_v38 }
 0x3b0   : > { %v2293_v2 = vsel %vm2290_vm7, %v2284_v17, %v2102_v49 }
 0x3b1   : > { %v2132_v59 = vpop.permute.xlu0 %2131 }
 0x3b2   : > { %v2066_v27 = vpop.permute.xlu1 %2065  ;;  %v2301_v60 = vsel %vm2299_vm6, %v2292_v8, %v2132_v59 }
 0x3b3   : > { %v2282_v17 = vsel %vm2281_vm5, %v5981_v37, %v2066_v27 }
 0x3b5   : > { %v2134_v56 = vpop.permute.xlu0 %2133 }
 0x3b6   : > { %v6188_v0 = vpop.permute.xlu1 %2073  ;;  %v2302_v44 = vsel %vm2299_vm6, %v2293_v2, %v2134_v56 }
 0x3b7   : > { %v2286_v37 = vsel %vm2281_vm5, %v5995_v40, %v6188_v0 }
 0x3b8   : > { %v2295_v40 = vsel %vm2290_vm7, %v2286_v37, %v6180_v52 }
 0x3b9   : > { %v6190_v21 = vpop.permute.xlu0 %2075 }
 0x3ba   : > { %v2164_v15 = vpop.permute.xlu1 %2163 }
 0x3bb   : > { %v2310_v6 = vsel %vm2308_vm8, %v2301_v60, %v2164_v15 }
 0x3bd   : > { %v2130_v26 = vpop.permute.xlu0 %2129 }
 0x3be   : > { %v2136_v33 = vpop.permute.xlu1 %2135 }
 0x3c1   : > { %v2166_v34 = vpop.permute.xlu0 %2165 }
 0x3c2   : > { %v6192_v57 = vpop.permute.xlu1 %2161  ;;  %v2311_v23 = vsel %vm2308_vm8, %v2302_v44, %v2166_v34 }
 0x3c5   : > { %v6196_v31 = vpop.permute.xlu0 %2077 }
 0x3c6   : > { %v6194_v35 = vpop.permute.xlu1 %2079 }
 0x3c9   : > { %v6200_v11 = vpop.permute.xlu0 %2137 }
 0x3ca   : > { %v6198_v12 = vpop.permute.xlu1 %2139 }
 0x3cd   : > { %v2168_v30 = vpop.permute.xlu0 %2167 }
 0x3ce   : > { %v2230_v51 = vpop.permute.xlu1 %2229 }
 0x3d1   : > { %v2228_v10 = vpop.permute.xlu0 %2227 }
 0x3d2   : > { %v6202_v62 = vpop.permute.xlu1 %2171 }
 0x3d5   : > { %v6206_v42 = vpop.permute.xlu0 %2169 }
 0x3d6   : > { %v6204_v46 = vpop.permute.xlu1 %2225 }
 0x3d9   : > { %v6210_v39 = vpop.permute.xlu0 %2141 }
 0x3da   : > { %v6208_v24 = vpop.permute.xlu1 %2173 }
 0x3dd   : > { %v2232_v9 = vpop.permute.xlu0 %2231 }
 0x3de   : > { %v6212_v28 = vpop.permute.xlu1 %2233 }
 0x3e1   : > { %v6216_v29 = vpop.permute.xlu0 %2143 }
 0x3e2   : > { %v6214_v25 = vpop.permute.xlu1 %2237 }
 0x3e5   : > { %v6220_v48 = vpop.permute.xlu0 %2175 }
 0x3e6   : > { %v6218_v22 = vpop.permute.xlu1 %2239 }
 0x3e9   : > { %v6224_v13 = vpop.permute.xlu0 %2235 }
 0x3ea   : > { %v2196_v18 = vpop.permute.xlu1 %2195 }
 0x3eb   : > { %v2319_v58 = vsel %vm2317_vm9, %v2310_v6, %v2196_v18  ;;  %v2294_v18 = vsel %vm2290_vm7, %v2285_v5, %v6176_v3  ;;  %v2291_v5 = vsel %vm2290_vm7, %v2282_v17, %v6178_v36 }
 0x3ec   : > { %v2328_v38 = vsel %vm2326_vm10, %v2319_v58, %v2228_v10  ;;  %v2303_v41 = vsel %vm2299_vm6, %v2294_v18, %v2136_v33  ;;  %v2300_v27 = vsel %vm2299_vm6, %v2291_v5, %v2130_v26  ;;  %v2287_v26 = vsel %vm2281_vm5, %v6013_v61, %v6190_v21 }
 0x3ed   : > { %v2200_v55 = vpop.permute.xlu0 %2199  ;;  %v2312_v16 = vsel %vm2308_vm8, %v2303_v41, %v2168_v30  ;;  %v2309_v30 = vsel %vm2308_vm8, %v2300_v27, %v6192_v57  ;;  %v2304_v57 = vsel %vm2299_vm6, %v2295_v40, %v6200_v11 }
 0x3ee   : > { %v2198_v47 = vpop.permute.xlu1 %2197  ;;  %v2321_v6 = vsel %vm2317_vm9, %v2312_v16, %v2200_v55  ;;  %v2313_v44 = vsel %vm2308_vm8, %v2304_v57, %v6206_v42  ;;  %v2296_v42 = vsel %vm2290_vm7, %v2287_v26, %v6182_v1 }
 0x3ef   : > { %v2320_v15 = vsel %vm2317_vm9, %v2311_v23, %v2198_v47  ;;  %v2330_v58 = vsel %vm2326_vm10, %v2321_v6, %v2232_v9 }
 0x3f0   : > { %v2329_v10 = vsel %vm2326_vm10, %v2320_v15, %v2230_v51 }
 0x3f1   : > { %v2260_v59 = vpop.permute.xlu0 %2259 }
 0x3f2   : > { %v2194_v19 = vpop.permute.xlu1 %2193  ;;  %v2337_v8 = vsel %vm2335_vm11, %v2328_v38, %v2260_v59  ;;  %v2305_v59 = vsel %vm2299_vm6, %v2296_v42, %v6198_v12 }
 0x3f3   : > { %v2353_v49 = vrot.slane %v2337_v8, 1  ;;  %v2318_v55 = vsel %vm2317_vm9, %v2309_v30, %v2194_v19 }
 0x3f4   : > { %v2327_v52 = vsel %vm2326_vm10, %v2318_v55, %v6204_v46 }
 0x3f5   : > { %v2369_v56 = vadd.f32 %v2353_v49, %v2337_v8  ;;  %v2202_v60 = vpop.permute.xlu0 %2201  ;;  %v2314_v8 = vsel %vm2308_vm8, %v2305_v59, %v6202_v62 }
 0x3f6   : > { %v2262_v34 = vpop.permute.xlu1 %2261  ;;  %v2322_v21 = vsel %vm2317_vm9, %v2313_v44, %v2202_v60 }
 0x3f7   : > { %v2338_v47 = vsel %vm2335_vm11, %v2329_v10, %v2262_v34  ;;  %v2377_v3 = vmul.f32 0.5, %v2369_v56  ;;  %v2331_v46 = vsel %vm2326_vm10, %v2322_v21, %v6212_v28 }
 0x3f8   : > { %v2354_v33 = vrot.slane %v2338_v47, 1 }
 0x3f9   : > { %2432 = vrot.lane.b32.xlu1 %v2377_v3, %s4833_s25  ;;  %2416 = vrot.lane.b32.xlu0 %v2377_v3, %s4827_s21  ;;  %v2204_v36 = vpop.permute.xlu0 %2203  ;;  %v2526_v56 = vrot.slane %v2377_v3, 7 }
 0x3fa   : > { %v2264_v51 = vpop.permute.xlu1 %2263  ;;  %v2370_v9 = vadd.f32 %v2354_v33, %v2338_v47  ;;  %v2323_v12 = vsel %vm2317_vm9, %v2314_v8, %v2204_v36 }
 0x3fb   : > { %v2339_v2 = vsel %vm2335_vm11, %v2330_v58, %v2264_v51  ;;  %v2332_v10 = vsel %vm2326_vm10, %v2323_v12, %v6224_v13 }
 0x3fc   : > { %v2355_v0 = vrot.slane %v2339_v2, 1  ;;  %v2378_v15 = vmul.f32 0.5, %v2370_v9 }
 0x3fd   : > { %2464 = vrot.lane.b32.xlu1 %v2377_v3, %s4834_s26  ;;  %2448 = vrot.lane.b32.xlu0 %v2377_v3, %s4835_s27  ;;  %v2258_v61 = vpop.permute.xlu0 %2257 }
 0x3fe   : > { %v2371_v23 = vadd.f32 %v2355_v0, %v2339_v2  ;;  %v6271_v38 = vpop.permute.xlu1 %2205  ;;  %v2336_v11 = vsel %vm2335_vm11, %v2327_v52, %v2258_v61  ;;  %v2529_v34 = vrot.slane %v2378_v15, 6  ;;  %v2288_v2 = vsel %vm2281_vm5, %v6051_v53, %v6196_v31 }
 0x3ff   : > { %v2352_v19 = vrot.slane %v2336_v11, 1  ;;  %v2297_v40 = vsel %vm2290_vm7, %v2288_v2, %v6184_v54 }
 0x400   : > { %v2379_v18 = vmul.f32 0.5, %v2371_v23  ;;  %v2306_v0 = vsel %vm2299_vm6, %v2297_v40, %v6210_v39 }
 0x401   : > { %v2368_v49 = vadd.f32 %v2352_v19, %v2336_v11  ;;  %2496 = vrot.lane.b32.xlu1 %v2377_v3, %s4836_s28  ;;  %2480 = vrot.lane.b32.xlu0 %v2377_v3, %s4837_s29  ;;  %v6289_v1 = vpop.permute.xlu0 %2207  ;;  %v2315_v26 = vsel %vm2308_vm8, %v2306_v0, %v6208_v24  ;;  %v2289_v24 = vsel %vm2281_vm5, %v6054_v50, %v6194_v35 }
 0x402   : > { %v2266_v17 = vpop.permute.xlu1 %2265  ;;  %v2532_v47 = vrot.slane %v2379_v18, 5  ;;  %v2324_v53 = vsel %vm2317_vm9, %v2315_v26, %v6271_v38  ;;  %v2298_v9 = vsel %vm2290_vm7, %v2289_v24, %v6186_v14 }
 0x403   : > { %v2340_v41 = vsel %vm2335_vm11, %v2331_v46, %v2266_v17  ;;  %v2376_v62 = vmul.f32 0.5, %v2368_v49  ;;  %v2333_v54 = vsel %vm2326_vm10, %v2324_v53, %v6214_v25  ;;  %v2307_v25 = vsel %vm2299_vm6, %v2298_v9, %v6216_v29 }
 0x404   : > { %v2356_v16 = vrot.slane %v2340_v41, 1  ;;  %v2316_v44 = vsel %vm2308_vm8, %v2307_v25, %v6220_v48 }
 0x405   : > { %2418 = vrot.lane.b32.xlu1 %v2378_v15, %s4827_s21  ;;  %2512 = vrot.lane.b32.xlu0 %v2377_v3, %s4838_s30  ;;  %v2268_v60 = vpop.permute.xlu0 %2267  ;;  %v2528_v6 = vsel %vm2527_vm12, %v2526_v56, %v2376_v62  ;;  %v2325_v38 = vsel %vm2317_vm9, %v2316_v44, %v6289_v1 }
 0x406   : > { %v2372_v28 = vadd.f32 %v2356_v16, %v2340_v41  ;;  %v2341_v5 = vsel %vm2335_vm11, %v2332_v10, %v2268_v60  ;;  %v2531_v37 = vsel %vm2530_vm13, %v2529_v34, %v2528_v6  ;;  %v2272_v52 = vpop.permute.xlu1 %2271  ;;  %v2334_v50 = vsel %vm2326_vm10, %v2325_v38, %v6218_v22 }
 0x407   : > { %v2357_v33 = vrot.slane %v2341_v5, 1  ;;  %v2534_v30 = vsel %vm2533_vm14, %v2532_v47, %v2531_v37  ;;  %v2343_v35 = vsel %vm2335_vm11, %v2334_v50, %v2272_v52 }
 0x408   : > { %v2380_v27 = vmul.f32 0.5, %v2372_v28  ;;  %v2359_v29 = vrot.slane %v2343_v35, 1 }
 0x409   : > { %v2373_v51 = vadd.f32 %v2357_v33, %v2341_v5  ;;  %2450 = vrot.lane.b32.xlu1 %v2378_v15, %s4835_s27  ;;  %2434 = vrot.lane.b32.xlu0 %v2378_v15, %s4833_s25  ;;  %v2270_v31 = vpop.permute.xlu0 %2269 }
 0x40a   : > { %v2535_v3 = vrot.slane %v2380_v27, 4  ;;  %v2342_v39 = vsel %vm2335_vm11, %v2333_v54, %v2270_v31  ;;  %v2375_v48 = vadd.f32 %v2359_v29, %v2343_v35 }
 0x40b   : > { %v2381_v13 = vmul.f32 0.5, %v2373_v51  ;;  %v2358_v57 = vrot.slane %v2342_v39, 1 }
 0x40c   : > { %v2537_v58 = vsel %vm2536_vm15, %v2535_v3, %v2534_v30  ;;  %v6381_v22 = vmul.f32 0.5, %v2375_v48 }
 0x40d   : > { %2482 = vrot.lane.b32.xlu1 %v2378_v15, %s4837_s29  ;;  %2466 = vrot.lane.b32.xlu0 %v2378_v15, %s4834_s26  ;;  %v2538_v36 = vrot.slane %v2381_v13, 3  ;;  %v2374_v23 = vadd.f32 %v2358_v57, %v2342_v39 }
 0x40e   : > { %v2544_v38 = vrot.slane %v6381_v22, 1 }
 0x40f   : > { %v6307_v55 = vsel %vm2539_vm0, %v2538_v36, %v2537_v58  ;;  %v6366_v14 = vmul.f32 0.5, %v2374_v23 }
 0x411   : > { %2514 = vrot.lane.b32.xlu1 %v2378_v15, %s4838_s30  ;;  %2498 = vrot.lane.b32.xlu0 %v2378_v15, %s4836_s28  ;;  %v2541_v54 = vrot.slane %v6366_v14, 2 }
 0x413   : > { %v2543_v9 = vsel %vm2542_vm1, %v2541_v54, %v6307_v55 }
 0x414   : > { %v6475_v29 = vsel %vm2545_vm2, %v2544_v38, %v2543_v9 }
 0x415   : > { %2420 = vrot.lane.b32.xlu1 %v2379_v18, %s4827_s21  ;;  %2414 = vrot.lane.b32.xlu0 %v2376_v62, %s4827_s21 }
 0x419   : > { %2436 = vrot.lane.b32.xlu1 %v2379_v18, %s4833_s25  ;;  %2430 = vrot.lane.b32.xlu0 %v2376_v62, %s4833_s25 }
 0x41d   : > { %2452 = vrot.lane.b32.xlu1 %v2379_v18, %s4835_s27  ;;  %2446 = vrot.lane.b32.xlu0 %v2376_v62, %s4835_s27 }
 0x421   : > { %2468 = vrot.lane.b32.xlu1 %v2379_v18, %s4834_s26  ;;  %2462 = vrot.lane.b32.xlu0 %v2376_v62, %s4834_s26 }
 0x425   : > { %2484 = vrot.lane.b32.xlu1 %v2379_v18, %s4837_s29  ;;  %2478 = vrot.lane.b32.xlu0 %v2376_v62, %s4837_s29 }
 0x429   : > { %2500 = vrot.lane.b32.xlu1 %v2379_v18, %s4836_s28  ;;  %2494 = vrot.lane.b32.xlu0 %v2376_v62, %s4836_s28 }
 0x42d   : > { %2516 = vrot.lane.b32.xlu1 %v2379_v18, %s4838_s30  ;;  %2510 = vrot.lane.b32.xlu0 %v2376_v62, %s4838_s30 }
 0x431   : > { %2438 = vrot.lane.b32.xlu1 %v2380_v27, %s4833_s25  ;;  %2422 = vrot.lane.b32.xlu0 %v2380_v27, %s4827_s21 }
 0x435   : > { %2470 = vrot.lane.b32.xlu1 %v2380_v27, %s4834_s26  ;;  %2454 = vrot.lane.b32.xlu0 %v2380_v27, %s4835_s27 }
 0x439   : > { %2502 = vrot.lane.b32.xlu1 %v2380_v27, %s4836_s28  ;;  %2486 = vrot.lane.b32.xlu0 %v2380_v27, %s4837_s29 }
 0x43d   : > { %2518 = vrot.lane.b32.xlu0 %v2380_v27, %s4838_s30  ;;  %2424 = vrot.lane.b32.xlu1 %v2381_v13, %s4827_s21 }
 0x441   : > { %2440 = vrot.lane.b32.xlu0 %v2381_v13, %s4833_s25  ;;  %2456 = vrot.lane.b32.xlu1 %v2381_v13, %s4835_s27 }
 0x445   : > { %2472 = vrot.lane.b32.xlu0 %v2381_v13, %s4834_s26  ;;  %2488 = vrot.lane.b32.xlu1 %v2381_v13, %s4837_s29 }
 0x449   : > { %2504 = vrot.lane.b32.xlu0 %v2381_v13, %s4836_s28  ;;  %2520 = vrot.lane.b32.xlu1 %v2381_v13, %s4838_s30 }
 0x44d   : > { %2442 = vrot.lane.b32.xlu1 %v6366_v14, %s4833_s25  ;;  %2426 = vrot.lane.b32.xlu0 %v6366_v14, %s4827_s21 }
 0x451   : > { %2474 = vrot.lane.b32.xlu1 %v6366_v14, %s4834_s26  ;;  %2458 = vrot.lane.b32.xlu0 %v6366_v14, %s4835_s27 }
 0x455   : > { %2506 = vrot.lane.b32.xlu1 %v6366_v14, %s4836_s28  ;;  %2490 = vrot.lane.b32.xlu0 %v6366_v14, %s4837_s29 }
 0x459   : > { %2428 = vrot.lane.b32.xlu1 %v6381_v22, %s4827_s21  ;;  %2522 = vrot.lane.b32.xlu0 %v6366_v14, %s4838_s30 }
 0x45d   : > { %2460 = vrot.lane.b32.xlu1 %v6381_v22, %s4835_s27  ;;  %2444 = vrot.lane.b32.xlu0 %v6381_v22, %s4833_s25 }
 0x461   : > { %2492 = vrot.lane.b32.xlu1 %v6381_v22, %s4837_s29  ;;  %2476 = vrot.lane.b32.xlu0 %v6381_v22, %s4834_s26 }
 0x465   : > { %2524 = vrot.lane.b32.xlu1 %v6381_v22, %s4838_s30  ;;  %2508 = vrot.lane.b32.xlu0 %v6381_v22, %s4836_s28 }
 0x46b   : > { %v6399_v61 = vpop.permute.xlu1 %2432  ;;  %v2417_v21 = vpop.permute.xlu0 %2416 }
 0x46c   : > { %v2547_v57 = vrot.slane %v2417_v21, 7  ;;  %v2561_v50 = vrot.slane %v6399_v61, 7 }
 0x46f   : > { %v6401_v11 = vpop.permute.xlu1 %2464  ;;  %v6403_v42 = vpop.permute.xlu0 %2448 }
 0x470   : > { %v2589_v14 = vrot.slane %v6401_v11, 7  ;;  %v2575_v48 = vrot.slane %v6403_v42, 7 }
 0x473   : > { %v6405_v19 = vpop.permute.xlu1 %2496  ;;  %v6407_v59 = vpop.permute.xlu0 %2480 }
 0x474   : > { %v2617_v55 = vrot.slane %v6405_v19, 7  ;;  %v2603_v21 = vrot.slane %v6407_v59, 7 }
 0x477   : > { %v2419_v15 = vpop.permute.xlu1 %2418  ;;  %v6409_v8 = vpop.permute.xlu0 %2512 }
 0x478   : > { %v2549_v52 = vrot.slane %v2419_v15, 6  ;;  %v2631_v54 = vrot.slane %v6409_v8, 7 }
 0x47b   : > { %v6411_v18 = vpop.permute.xlu1 %2450  ;;  %v6413_v49 = vpop.permute.xlu0 %2434 }
 0x47c   : > { %v2577_v22 = vrot.slane %v6411_v18, 6  ;;  %v2563_v61 = vrot.slane %v6413_v49, 6 }
 0x47f   : > { %v6415_v17 = vpop.permute.xlu1 %2482  ;;  %v6417_v46 = vpop.permute.xlu0 %2466 }
 0x480   : > { %v2605_v11 = vrot.slane %v6415_v17, 6  ;;  %v2591_v42 = vrot.slane %v6417_v46, 6 }
 0x483   : > { %v6419_v1 = vpop.permute.xlu1 %2514  ;;  %v6421_v12 = vpop.permute.xlu0 %2498 }
 0x484   : > { %v2633_v19 = vrot.slane %v6419_v1, 6  ;;  %v2619_v8 = vrot.slane %v6421_v12, 6 }
 0x487   : > { %v2421_v41 = vpop.permute.xlu1 %2420  ;;  %v2415_v62 = vpop.permute.xlu0 %2414 }
 0x488   : > { %v2548_v25 = vsel %vm2527_vm12, %v2547_v57, %v2415_v62  ;;  %v2551_v35 = vrot.slane %v2421_v41, 5 }
 0x489   : > { %v2550_v62 = vsel %vm2530_vm13, %v2549_v52, %v2548_v25 }
 0x48a   : > { %v2552_v18 = vsel %vm2533_vm14, %v2551_v35, %v2550_v62 }
 0x48b   : > { %v6423_v16 = vpop.permute.xlu1 %2436  ;;  %v2431_v56 = vpop.permute.xlu0 %2430 }
 0x48c   : > { %v2562_v59 = vsel %vm2527_vm12, %v2561_v50, %v2431_v56  ;;  %v2565_v9 = vrot.slane %v6423_v16, 5 }
 0x48d   : > { %v2564_v56 = vsel %vm2530_vm13, %v2563_v61, %v2562_v59 }
 0x48f   : > { %v6425_v34 = vpop.permute.xlu1 %2452  ;;  %v2447_v28 = vpop.permute.xlu0 %2446 }
 0x490   : > { %v2576_v57 = vsel %vm2527_vm12, %v2575_v48, %v2447_v28  ;;  %v2579_v25 = vrot.slane %v6425_v34, 5 }
 0x491   : > { %v2578_v28 = vsel %vm2530_vm13, %v2577_v22, %v2576_v57 }
 0x492   : > { %v2580_v35 = vsel %vm2533_vm14, %v2579_v25, %v2578_v28 }
 0x493   : > { %v6427_v10 = vpop.permute.xlu1 %2468  ;;  %v2463_v60 = vpop.permute.xlu0 %2462 }
 0x494   : > { %v2590_v49 = vsel %vm2527_vm12, %v2589_v14, %v2463_v60  ;;  %v2593_v12 = vrot.slane %v6427_v10, 5  ;;  %v2566_v14 = vsel %vm2533_vm14, %v2565_v9, %v2564_v56 }
 0x495   : > { %v2592_v16 = vsel %vm2530_vm13, %v2591_v42, %v2590_v49 }
 0x497   : > { %v6429_v6 = vpop.permute.xlu1 %2484  ;;  %v2479_v47 = vpop.permute.xlu0 %2478 }
 0x498   : > { %v2604_v17 = vsel %vm2527_vm12, %v2603_v21, %v2479_v47  ;;  %v2607_v38 = vrot.slane %v6429_v6, 5 }
 0x499   : > { %v2606_v34 = vsel %vm2530_vm13, %v2605_v11, %v2604_v17 }
 0x49b   : > { %v6431_v5 = vpop.permute.xlu1 %2500  ;;  %v2495_v37 = vpop.permute.xlu0 %2494 }
 0x49c   : > { %v2618_v46 = vsel %vm2527_vm12, %v2617_v55, %v2495_v37  ;;  %v2621_v47 = vrot.slane %v6431_v5, 5  ;;  %v2594_v5 = vsel %vm2533_vm14, %v2593_v12, %v2592_v16 }
 0x49f   : > { %v6433_v27 = vpop.permute.xlu1 %2516  ;;  %v2511_v33 = vpop.permute.xlu0 %2510 }
 0x4a0   : > { %v2632_v1 = vsel %vm2527_vm12, %v2631_v54, %v2511_v33  ;;  %v2635_v37 = vrot.slane %v6433_v27, 5  ;;  %v2620_v33 = vsel %vm2530_vm13, %v2619_v8, %v2618_v46  ;;  %v2608_v27 = vsel %vm2533_vm14, %v2607_v38, %v2606_v34 }
 0x4a1   : > { %v2634_v50 = vsel %vm2530_vm13, %v2633_v19, %v2632_v1 }
 0x4a2   : > { %v2636_v22 = vsel %vm2533_vm14, %v2635_v37, %v2634_v50 }
 0x4a3   : > { %v6435_v30 = vpop.permute.xlu1 %2438  ;;  %v6437_v51 = vpop.permute.xlu0 %2422 }
 0x4a4   : > { %v2567_v10 = vrot.slane %v6435_v30, 4  ;;  %v2553_v6 = vrot.slane %v6437_v51, 4  ;;  %v2622_v51 = vsel %vm2533_vm14, %v2621_v47, %v2620_v33 }
 0x4a6   : > { %v2554_v11 = vsel %vm2536_vm15, %v2553_v6, %v2552_v18 }
 0x4a7   : > { %v6439_v3 = vpop.permute.xlu1 %2470  ;;  %v6441_v13 = vpop.permute.xlu0 %2454 }
 0x4a8   : > { %v2595_v48 = vrot.slane %v6439_v3, 4  ;;  %v2581_v55 = vrot.slane %v6441_v13, 4  ;;  %v2568_v13 = vsel %vm2536_vm15, %v2567_v10, %v2566_v14 }
 0x4aa   : > { %v2582_v19 = vsel %vm2536_vm15, %v2581_v55, %v2580_v35 }
 0x4ab   : > { %v6443_v58 = vpop.permute.xlu1 %2502  ;;  %v6445_v36 = vpop.permute.xlu0 %2486 }
 0x4ac   : > { %v2623_v21 = vrot.slane %v6443_v58, 4  ;;  %v2609_v59 = vrot.slane %v6445_v36, 4 }
 0x4ae   : > { %v2610_v37 = vsel %vm2536_vm15, %v2609_v59, %v2608_v27 }
 0x4af   : > { %v6447_v2 = vpop.permute.xlu1 %2424  ;;  %v6449_v40 = vpop.permute.xlu0 %2518 }
 0x4b0   : > { %v2555_v62 = vrot.slane %v6447_v2, 3  ;;  %v2596_v2 = vsel %vm2536_vm15, %v2595_v48, %v2594_v5  ;;  %v2637_v8 = vrot.slane %v6449_v40, 4 }
 0x4b3   : > { %v6451_v0 = vpop.permute.xlu1 %2456  ;;  %v6453_v26 = vpop.permute.xlu0 %2440 }
 0x4b4   : > { %v2583_v61 = vrot.slane %v6451_v0, 3  ;;  %v2569_v3 = vrot.slane %v6453_v26, 3  ;;  %v2624_v0 = vsel %vm2536_vm15, %v2623_v21, %v2622_v51  ;;  %v2556_v26 = vsel %vm2539_vm0, %v2555_v62, %v2554_v11 }
 0x4b7   : > { %v6455_v53 = vpop.permute.xlu1 %2488  ;;  %v6457_v31 = vpop.permute.xlu0 %2472 }
 0x4b8   : > { %v2611_v46 = vrot.slane %v6455_v53, 3  ;;  %v2597_v36 = vrot.slane %v6457_v31, 3 }
 0x4ba   : > { %v2612_v55 = vsel %vm2539_vm0, %v2611_v46, %v2610_v37 }
 0x4bb   : > { %v6460_v39 = vpop.permute.xlu1 %2520  ;;  %v6462_v24 = vpop.permute.xlu0 %2504 }
 0x4bc   : > { %v2625_v56 = vrot.slane %v6462_v24, 3  ;;  %v2639_v38 = vrot.slane %v6460_v39, 3  ;;  %v2638_v24 = vsel %vm2536_vm15, %v2637_v8, %v2636_v22  ;;  %vm2903_vm15 = vsmask.f32 7938 }
 0x4be   : > { %v2640_v5 = vsel %vm2539_vm0, %v2639_v38, %v2638_v24 }
 0x4bf   : > { %v6467_v44 = vpop.permute.xlu1 %2442  ;;  %v6469_v23 = vpop.permute.xlu0 %2426 }
 0x4c0   : > { %v2571_v42 = vrot.slane %v6467_v44, 2  ;;  %v2557_v57 = vrot.slane %v6469_v23, 2  ;;  %v2584_v44 = vsel %vm2539_vm0, %v2583_v61, %v2582_v19 }
 0x4c2   : > { %v2558_v40 = vsel %vm2542_vm1, %v2557_v57, %v2556_v26 }
 0x4c3   : > { %v6485_v15 = vpop.permute.xlu1 %2474  ;;  %v6487_v41 = vpop.permute.xlu0 %2458 }
 0x4c4   : > { %v2585_v58 = vrot.slane %v6487_v41, 2  ;;  %v2570_v41 = vsel %vm2539_vm0, %v2569_v3, %v2568_v13  ;;  %v2599_v16 = vrot.slane %v6485_v15, 2  ;;  %v2598_v15 = vsel %vm2539_vm0, %v2597_v36, %v2596_v2 }
 0x4c5   : > { %v2572_v23 = vsel %vm2542_vm1, %v2571_v42, %v2570_v41 }
 0x4c6   : > { %v2586_v1 = vsel %vm2542_vm1, %v2585_v58, %v2584_v44  ;;  %v2600_v27 = vsel %vm2542_vm1, %v2599_v16, %v2598_v15 }
 0x4c7   : > { %v6505_v52 = vpop.permute.xlu1 %2506  ;;  %v6507_v60 = vpop.permute.xlu0 %2490 }
 0x4c8   : > { %v2627_v53 = vrot.slane %v6505_v52, 2  ;;  %v2613_v10 = vrot.slane %v6507_v60, 2  ;;  %v2626_v52 = vsel %vm2539_vm0, %v2625_v56, %v2624_v0  ;;  %vm2909_vm0 = vsmask.f32 256 }
 0x4ca   : > { %v2628_v21 = vsel %vm2542_vm1, %v2627_v53, %v2626_v52  ;;  %v2614_v22 = vsel %vm2542_vm1, %v2613_v10, %v2612_v55 }
 0x4cb   : > { %v2429_v54 = vpop.permute.xlu1 %2428  ;;  %v2523_v30 = vpop.permute.xlu0 %2522 }
 0x4cc   : > { %v2559_v49 = vrot.slane %v2429_v54, 1  ;;  %v2641_v6 = vrot.slane %v2523_v30, 2 }
 0x4ce   : > { %v2560_v31 = vsel %vm2545_vm2, %v2559_v49, %v2558_v40  ;;  %v2642_v61 = vsel %vm2542_vm1, %v2641_v6, %v2640_v5  ;;  %vm6593_vm1 = vmand %vm2384_vm3, %vm2903_vm15  ;;  %vm3741_vm3 = vcmask 1043456   ;;  %vm3728_vm15 = vcmask 588800  }
 0x4cf   : > { %v2461_v18 = vpop.permute.xlu1 %2460  ;;  %v2445_v17 = vpop.permute.xlu0 %2444 }
 0x4d0   : > { %v2587_v9 = vrot.slane %v2461_v18, 1  ;;  %v2573_v25 = vrot.slane %v2445_v17, 1 }
 0x4d2   : > { %v2588_v28 = vsel %vm2545_vm2, %v2587_v9, %v2586_v1  ;;  %v2574_v12 = vsel %vm2545_vm2, %v2573_v25, %v2572_v23 }
 0x4d3   : > { %v2493_v34 = vpop.permute.xlu1 %2492  ;;  %v2477_v47 = vpop.permute.xlu0 %2476  ;;  %v2669_v33 = vcombine.low %v2560_v31, %v2588_v28  ;;  %v2653_v50 = vcombine.low %v6475_v29, %v2574_v12  ;;  %v2670_v14 = vcombine.high %v2560_v31, %v2588_v28  ;;  %v2654_v39 = vcombine.high %v6475_v29, %v2574_v12 }
 0x4d4   : > { %v2615_v35 = vrot.slane %v2493_v34, 1  ;;  %v2601_v48 = vrot.slane %v2477_v47, 1 }
 0x4d5   : > { %v2677_v54 = vrot.slane %v2669_v33, %v5851_v32  ;;  %v2661_v29 = vrot.slane %v2653_v50, %v5851_v32  ;;  %v2684_v3 = vrot.slane %v2670_v14, %v5851_v32  ;;  %v2668_v13 = vrot.slane %v2654_v39, %v5851_v32 }
 0x4d6   : > { %v2616_v11 = vsel %vm2545_vm2, %v2615_v35, %v2614_v22  ;;  %v2602_v42 = vsel %vm2545_vm2, %v2601_v48, %v2600_v27 }
 0x4d7   : > { %v2525_v62 = vpop.permute.xlu1 %2524  ;;  %v2509_v60 = vpop.permute.xlu0 %2508  ;;  %v2717_v26 = vcombine.low %v2661_v29, %v2677_v54  ;;  %v2718_v8 = vcombine.high %v2661_v29, %v2677_v54  ;;  %v2733_v41 = vcombine.low %v2668_v13, %v2684_v3  ;;  %v2734_v9 = vcombine.high %v2668_v13, %v2684_v3 }
 0x4d8   : > { %v2643_v30 = vrot.slane %v2525_v62, 1  ;;  %v2629_v51 = vrot.slane %v2509_v60, 1 }
 0x4d9   : > { %v2725_v1 = vrot.slane %v2717_v26, %v5862_v45  ;;  %v2732_v56 = vrot.slane %v2718_v8, %v5862_v45  ;;  %v2741_v16 = vrot.slane %v2733_v41, %v5862_v45  ;;  %v2748_v53 = vrot.slane %v2734_v9, %v5862_v45  ;;  %v2917_v26 = vld [vmem:[#allocation3 + $0x14] sm:$0x1]  ;;  %v2923_v41 = vld [vmem:[#allocation3 + $0x1c] sm:$0x1] }
 0x4da   : > { %v2644_v58 = vsel %vm2545_vm2, %v2643_v30, %v2642_v61  ;;  %v2630_v2 = vsel %vm2545_vm2, %v2629_v51, %v2628_v21  ;;  %v2905_v51 = vld [vmem:[#allocation3 + $0x8] sm:$0xf]  ;;  %vm6599_vm2 = vmand %vm2386_vm4, %vm2909_vm0  ;;  %vm3677_vm4 = vcmask 523264  }
 0x4db   : > { %v2701_v19 = vcombine.low %v2616_v11, %v2644_v58  ;;  %v2702_v59 = vcombine.high %v2616_v11, %v2644_v58  ;;  %v2685_v57 = vcombine.low %v2602_v42, %v2630_v2  ;;  %v2686_v0 = vcombine.high %v2602_v42, %v2630_v2  ;;  %v2911_v42 = vld [vmem:[#allocation3 + $0xc] sm:$0x1] }
 0x4dd   : > { %v2709_v49 = vrot.slane %v2701_v19, %v5851_v32  ;;  %v2716_v18 = vrot.slane %v2702_v59, %v5851_v32  ;;  %v2693_v17 = vrot.slane %v2685_v57, %v5851_v32  ;;  %v2700_v44 = vrot.slane %v2686_v0, %v5851_v32  ;;  %v2914_v0 = vld [vmem:[#allocation3 + $0x10] sm:$0xf] }
 0x4df   : > { %v2749_v25 = vcombine.low %v2693_v17, %v2709_v49  ;;  %v2750_v46 = vcombine.high %v2693_v17, %v2709_v49  ;;  %v2765_v36 = vcombine.low %v2700_v44, %v2716_v18  ;;  %v2766_v23 = vcombine.high %v2700_v44, %v2716_v18  ;;  %v2920_v44 = vld [vmem:[#allocation3 + $0x18] sm:$0xf] }
 0x4e1   : > { %v2757_v40 = vrot.slane %v2749_v25, %v5862_v45  ;;  %v2764_v28 = vrot.slane %v2750_v46, %v5862_v45  ;;  %v2773_v12 = vrot.slane %v2765_v36, %v5862_v45  ;;  %v2780_v38 = vrot.slane %v2766_v23, %v5862_v45  ;;  %v2926_v23 = vld [vmem:[#allocation3 + $0x20] sm:$0xf] }
 0x4e3   : > { %v2781_v31 = vcombine.low %v2725_v1, %v2757_v40  ;;  %v2782_v34 = vcombine.high %v2725_v1, %v2757_v40  ;;  %v2783_v47 = vcombine.low %v2732_v56, %v2764_v28  ;;  %v2784_v37 = vcombine.high %v2732_v56, %v2764_v28 }
 0x4e4   : > { %v2785_v24 = vcombine.low %v2741_v16, %v2773_v12  ;;  %v2786_v33 = vcombine.high %v2741_v16, %v2773_v12  ;;  %v2787_v50 = vcombine.low %v2748_v53, %v2780_v38  ;;  %v2788_v10 = vcombine.high %v2748_v53, %v2780_v38  ;;  %v2929_v12 = vld [vmem:[#allocation3 + $0x24] sm:$0x1]  ;;  %v2932_v38 = vld [vmem:[#allocation3 + $0x28] sm:$0xf] }
 0x4e5   : > { %v4576_v6 = vpack.c.bf16 %v2781_v31, %v2781_v31  ;;  %v4577_v14 = vpack.c.bf16 %v2782_v34, %v2782_v34  ;;  %v4578_v39 = vpack.c.bf16 %v2783_v47, %v2783_v47  ;;  %v4579_v15 = vpack.c.bf16 %v2784_v37, %v2784_v37  ;;  %v2935_v47 = vld [vmem:[#allocation3 + $0x2c] sm:$0x1]  ;;  %v2938_v37 = vld [vmem:[#allocation3 + $0x30] sm:$0xf] }
 0x4e6   : > { %v4580_v52 = vpack.c.bf16 %v2785_v24, %v2785_v24  ;;  %v4581_v35 = vpack.c.bf16 %v2786_v33, %v2786_v33  ;;  %v6587_v48 = vpack.c.bf16 %v2787_v50, %v2787_v50  ;;  %v6589_v55 = vpack.c.bf16 %v2788_v10, %v2788_v10 }
 0x4e7   : > { %v2822_v5 = vshrl.u32 %v4576_v6, 16  ;;  %v2825_v27 = vshll.u32 %v4576_v6, 16  ;;  %v2830_v21 = vshrl.u32 %v4577_v14, 16  ;;  %v2833_v62 = vshll.u32 %v4577_v14, 16  ;;  %v2941_v6 = vld [vmem:[#allocation3 + $0x34] sm:$0x1] }
 0x4e8   : > { %v2838_v60 = vshrl.u32 %v4578_v39, 16  ;;  %v2841_v54 = vshll.u32 %v4578_v39, 16  ;;  %v2846_v29 = vshrl.u32 %v4579_v15, 16  ;;  %v2849_v30 = vshll.u32 %v4579_v15, 16  ;;  %v2944_v14 = vld [vmem:[#allocation3 + $0x38] sm:$0xf] }
 0x4e9   : > { %v2824_v22 = vrot.slane %v2822_v5, 7  ;;  %v2832_v61 = vrot.slane %v2830_v21, 7  ;;  %v2854_v3 = vshrl.u32 %v4580_v52, 16  ;;  %v2857_v13 = vshll.u32 %v4580_v52, 16  ;;  %v2953_v5 = vld [vmem:[#allocation3 + $0x44] sm:$0x1] }
 0x4ea   : > { %v2840_v58 = vrot.slane %v2838_v60, 7  ;;  %v2848_v2 = vrot.slane %v2846_v29, 7  ;;  %v2862_v19 = vshrl.u32 %v4581_v35, 16  ;;  %v2865_v59 = vshll.u32 %v4581_v35, 16 }
 0x4eb   : > { %v2827_v8 = vor.u32 %v2825_v27, %v2824_v22  ;;  %v2828_v49 = vrot.slane %v2824_v22, 4  ;;  %v2835_v18 = vor.u32 %v2833_v62, %v2832_v61  ;;  %v2836_v17 = vrot.slane %v2832_v61, 4 }
 0x4ec   : > { %v2843_v9 = vor.u32 %v2841_v54, %v2840_v58  ;;  %v2844_v25 = vrot.slane %v2840_v58, 4  ;;  %v2851_v46 = vor.u32 %v2849_v30, %v2848_v2  ;;  %v2852_v36 = vrot.slane %v2848_v2, 4 }
 0x4ed   : > { %v2856_v1 = vrot.slane %v2854_v3, 7  ;;  %v2864_v56 = vrot.slane %v2862_v19, 7  ;;  %v2870_v40 = vshrl.u32 %v6587_v48, 16  ;;  %v2873_v28 = vshll.u32 %v6587_v48, 16  ;;  %v2947_v48 = vld [vmem:[#allocation3 + $0x3c] sm:$0x1] }
 0x4ee   : > { %v2878_v16 = vshrl.u32 %v6589_v55, 16  ;;  %v2881_v53 = vshll.u32 %v6589_v55, 16  ;;  %v2906_v31 = vsel %vm6593_vm1, %v2827_v8, %v2905_v51  ;;  %v2912_v34 = vsel %vm6599_vm2, %v2828_v49, %v2911_v42  ;;  %v2950_v55 = vld [vmem:[#allocation3 + $0x40] sm:$0xf] }
 0x4ef   : > { %v2859_v24 = vor.u32 %v2857_v13, %v2856_v1  ;;  %v2860_v33 = vrot.slane %v2856_v1, 4  ;;  %v2867_v50 = vor.u32 %v2865_v59, %v2864_v56  ;;  %v2868_v10 = vrot.slane %v2864_v56, 4  ;;  %2907 = vst [vmem:[#allocation3 + $0x8] sm:$0xf] %v2906_v31  ;;  %2913 = vst [vmem:[#allocation3 + $0xc] sm:$0x1] %v2912_v34 }
 0x4f0   : > { %v2872_v39 = vrot.slane %v2870_v40, 7  ;;  %v2880_v15 = vrot.slane %v2878_v16, 7  ;;  %v2915_v52 = vsel %vm6593_vm1, %v2835_v18, %v2914_v0  ;;  %v2918_v35 = vsel %vm6599_vm2, %v2836_v17, %v2917_v26 }
 0x4f1   : > { %2916 = vst [vmem:[#allocation3 + $0x10] sm:$0xf] %v2915_v52  ;;  %2919 = vst [vmem:[#allocation3 + $0x14] sm:$0x1] %v2918_v35  ;;  %v2921_v27 = vsel %vm6593_vm1, %v2843_v9, %v2920_v44  ;;  %v2924_v21 = vsel %vm6599_vm2, %v2844_v25, %v2923_v41  ;;  %v2927_v62 = vsel %vm6593_vm1, %v2851_v46, %v2926_v23 }
 0x4f2   : > { %v2930_v60 = vsel %vm6599_vm2, %v2852_v36, %v2929_v12  ;;  %v2875_v54 = vor.u32 %v2873_v28, %v2872_v39  ;;  %v2876_v29 = vrot.slane %v2872_v39, 4  ;;  %v2883_v30 = vor.u32 %v2881_v53, %v2880_v15  ;;  %2922 = vst [vmem:[#allocation3 + $0x18] sm:$0xf] %v2921_v27  ;;  %2925 = vst [vmem:[#allocation3 + $0x1c] sm:$0x1] %v2924_v21 }
 0x4f3   : > { %v2884_v51 = vrot.slane %v2880_v15, 4  ;;  %2928 = vst [vmem:[#allocation3 + $0x20] sm:$0xf] %v2927_v62  ;;  %2931 = vst [vmem:[#allocation3 + $0x24] sm:$0x1] %v2930_v60  ;;  %v2933_v22 = vsel %vm6593_vm1, %v2859_v24, %v2932_v38  ;;  %v2936_v61 = vsel %vm6599_vm2, %v2860_v33, %v2935_v47  ;;  %v2939_v3 = vsel %vm6593_vm1, %v2867_v50, %v2938_v37 }
 0x4f4   : > { %v2942_v13 = vsel %vm6599_vm2, %v2868_v10, %v2941_v6  ;;  %2934 = vst [vmem:[#allocation3 + $0x28] sm:$0xf] %v2933_v22  ;;  %2937 = vst [vmem:[#allocation3 + $0x2c] sm:$0x1] %v2936_v61  ;;  %v2945_v42 = vsel %vm6593_vm1, %v2875_v54, %v2944_v14  ;;  %v2948_v58 = vsel %vm6599_vm2, %v2876_v29, %v2947_v48 }
 0x4f5   : > { %2940 = vst [vmem:[#allocation3 + $0x30] sm:$0xf] %v2939_v3  ;;  %2943 = vst [vmem:[#allocation3 + $0x34] sm:$0x1] %v2942_v13  ;;  %v2951_v2 = vsel %vm6593_vm1, %v2883_v30, %v2950_v55  ;;  %v2954_v19 = vsel %vm6599_vm2, %v2884_v51, %v2953_v5 }
 0x4f6   : > { %2946 = vst [vmem:[#allocation3 + $0x38] sm:$0xf] %v2945_v42  ;;  %2949 = vst [vmem:[#allocation3 + $0x3c] sm:$0x1] %v2948_v58  ;;  %v6649_v11 = vld [vmem:[#allocation3 + $0x8] sm:$0xf] }
 0x4f7   : > { %2952 = vst [vmem:[#allocation3 + $0x40] sm:$0xf] %v2951_v2  ;;  %2955 = vst [vmem:[#allocation3 + $0x44] sm:$0x1] %v2954_v19  ;;  %v4507_v18 = vcombine.low %v6649_v11, %v6649_v11  ;;  %v6710_v10 = vld [vmem:[#allocation3 + $0xc] sm:$0x1] }
 0x4f8   : > { %v6647_v49 = vld [vmem:[#allocation3 + $0x10] sm:$0xf]  ;;  %v2973_v6 = vld [vmem:[#allocation3 + $0x8] sm:$0xe]  ;;  %v6730_v51 = vld [vmem:[#allocation3 + $0x14] sm:$0x1] }
 0x4f9   : > { %v4508_v57 = vcombine.low %v6647_v49, %v6647_v49  ;;  %v6669_v46 = vld [vmem:[#allocation3 + $0x18] sm:$0xf]  ;;  %v6689_v38 = vld [vmem:[#allocation3 + $0x10] sm:$0xf]  ;;  %v4500_v55 = vcombine.low %v2973_v6, %v6710_v10  ;;  %v6732_v61 = vld [vmem:[#allocation3 + $0x1c] sm:$0x1] }
 0x4fa   : > { %v6667_v25 = vld [vmem:[#allocation3 + $0x20] sm:$0xf]  ;;  %v4509_v23 = vcombine.low %v6669_v46, %v6669_v46  ;;  %v6687_v12 = vld [vmem:[#allocation3 + $0x18] sm:$0xf]  ;;  %v4531_v53 = vcombine.low %v6689_v38, %v6689_v38  ;;  %v6714_v39 = vld [vmem:[#allocation3 + $0x24] sm:$0x1] }
 0x4fb   : > { %v6641_v0 = vld [vmem:[#allocation3 + $0x28] sm:$0xf]  ;;  %v4510_v36 = vcombine.low %v6667_v25, %v6667_v25  ;;  %v4532_v16 = vcombine.low %v6687_v12, %v6687_v12  ;;  %v6701_v47 = vld [vmem:[#allocation3 + $0x2c] sm:$0x1]  ;;  %v6712_v14 = vld [vmem:[#allocation3 + $0x20] sm:$0xf] }
 0x4fc   : > { %v6639_v59 = vld [vmem:[#allocation3 + $0x30] sm:$0xf]  ;;  %v4511_v8 = vcombine.low %v6641_v0, %v6641_v0  ;;  %v6697_v31 = vld [vmem:[#allocation3 + $0x28] sm:$0xf]  ;;  %v2976_v15 = vld [vmem:[#allocation3 + $0x20] sm:$0xe]  ;;  %v4533_v35 = vcombine.low %v6712_v14, %v6712_v14 }
 0x4fd   : > { %v4512_v26 = vcombine.low %v6639_v59, %v6639_v59  ;;  %v6659_v44 = vld [vmem:[#allocation3 + $0x38] sm:$0xf]  ;;  %v6679_v56 = vld [vmem:[#allocation3 + $0x30] sm:$0xf]  ;;  %v2977_v37 = vld [vmem:[#allocation3 + $0x28] sm:$0xe]  ;;  %v4534_v24 = vcombine.low %v6697_v31, %v6697_v31  ;;  %v4503_v48 = vcombine.low %v2976_v15, %v6714_v39 }
 0x4fe   : > { %3221 = vrot.lane.b32.xlu0 %v4511_v8, %s4830_s22  ;;  %v6657_v17 = vld [vmem:[#allocation3 + $0x40] sm:$0xf]  ;;  %v4513_v9 = vcombine.low %v6659_v44, %v6659_v44  ;;  %v6677_v1 = vld [vmem:[#allocation3 + $0x38] sm:$0xf]  ;;  %v4535_v28 = vcombine.low %v6679_v56, %v6679_v56  ;;  %v4504_v50 = vcombine.low %v2977_v37, %v6701_v47  ;;  %v6722_v5 = vld [vmem:[#allocation3 + $0x34] sm:$0x1] }
 0x4ff   : > { %3223 = vrot.lane.b32.xlu1 %v4512_v26, %s4830_s22  ;;  %v4514_v41 = vcombine.low %v6657_v17, %v6657_v17  ;;  %v4536_v40 = vcombine.low %v6677_v1, %v6677_v1  ;;  %v6699_v34 = vld [vmem:[#allocation3 + $0x40] sm:$0xf]  ;;  %v2978_v27 = vld [vmem:[#allocation3 + $0x30] sm:$0xe]  ;;  %v6724_v21 = vld [vmem:[#allocation3 + $0x3c] sm:$0x1] }
 0x500   : > { %v4537_v33 = vcombine.low %v6699_v34, %v6699_v34  ;;  %v3170_v52 = vrot.slane %v4504_v50, 1  ;;  %v2979_v62 = vld [vmem:[#allocation3 + $0x38] sm:$0xe]  ;;  %v3169_v60 = vrot.slane %v4503_v48, 1  ;;  %v3166_v54 = vrot.slane %v4500_v55, 1 }
 0x501   : > { %v4505_v29 = vcombine.low %v2978_v27, %v6722_v5  ;;  %v4506_v30 = vcombine.low %v2979_v62, %v6724_v21  ;;  %v2974_v22 = vld [vmem:[#allocation3 + $0x10] sm:$0xe]  ;;  %v2975_v3 = vld [vmem:[#allocation3 + $0x18] sm:$0xe]  ;;  %v6738_v19 = vld [vmem:[#allocation3 + $0x2c] sm:$0x1] }
 0x502   : > { %3213 = vrot.lane.b32.xlu0 %v4507_v18, %s4830_s22  ;;  %v4501_v58 = vcombine.low %v2974_v22, %v6730_v51  ;;  %v4502_v2 = vcombine.low %v2975_v3, %v6732_v61  ;;  %v3000_v26 = vld [vmem:[#allocation3 + $0x28] sm:$0xe]  ;;  %v6740_v8 = vld [vmem:[#allocation3 + $0x34] sm:$0x1]  ;;  %v6754_v50 = vld [vmem:[#allocation3 + $0x3c] sm:$0x1] }
 0x503   : > { %3215 = vrot.lane.b32.xlu1 %v4508_v57, %s4830_s22  ;;  %v3171_v13 = vrot.slane %v4505_v29, 1  ;;  %v3172_v42 = vrot.slane %v4506_v30, 1  ;;  %v3001_v57 = vld [vmem:[#allocation3 + $0x30] sm:$0xe]  ;;  %v3002_v6 = vld [vmem:[#allocation3 + $0x38] sm:$0xe] }
 0x504   : > { %v3167_v18 = vrot.slane %v4501_v58, 1  ;;  %v6756_v15 = vld [vmem:[#allocation3 + $0x44] sm:$0x1]  ;;  %v4529_v55 = vcombine.low %v3002_v6, %v6754_v50  ;;  %v6762_v62 = vld [vmem:[#allocation3 + $0x1c] sm:$0x1] }
 0x505   : > { %v2999_v29 = vld [vmem:[#allocation3 + $0x20] sm:$0xe]  ;;  %v6768_v30 = vld [vmem:[#allocation3 + $0x28] sm:$0xf]  ;;  %v6772_v58 = vld [vmem:[#allocation3 + $0x34] sm:$0x1] }
 0x506   : > { %3225 = vrot.lane.b32.xlu0 %v4513_v9, %s4830_s22  ;;  %v4527_v9 = vcombine.low %v3000_v26, %v6738_v19  ;;  %v3355_v22 = vrot.slane %v4529_v55, 1  ;;  %v6774_v26 = vld [vmem:[#allocation3 + $0x3c] sm:$0x1]  ;;  %v3022_v6 = vld [vmem:[#allocation3 + $0x18] sm:$0xe] }
 0x507   : > { %3227 = vrot.lane.b32.xlu1 %v4514_v41, %s4830_s22  ;;  %v3168_v41 = vrot.slane %v4502_v2, 1  ;;  %v3025_v2 = vld [vmem:[#allocation3 + $0x30] sm:$0xe]  ;;  %v6798_v55 = vld [vmem:[#allocation3 + $0x38] sm:$0xf] }
 0x50a   : > { %3217 = vrot.lane.b32.xlu0 %v4509_v23, %s4830_s22  ;;  %v6746_v23 = vld [vmem:[#allocation3 + $0xc] sm:$0x1] }
 0x50b   : > { %3219 = vrot.lane.b32.xlu1 %v4510_v36, %s4830_s22  ;;  %v4528_v36 = vcombine.low %v3001_v57, %v6740_v8  ;;  %v3026_v57 = vld [vmem:[#allocation3 + $0x38] sm:$0xe] }
 0x50d   : > { %v3354_v37 = vrot.slane %v4528_v36, 1 }
 0x50e   : > { %3405 = vrot.lane.b32.xlu0 %v4535_v28, %s4824_s18  ;;  %v6748_v28 = vld [vmem:[#allocation3 + $0x14] sm:$0x1] }
 0x50f   : > { %3407 = vrot.lane.b32.xlu1 %v4536_v40, %s4824_s18  ;;  %v2996_v40 = vld [vmem:[#allocation3 + $0x8] sm:$0xe] }
 0x512   : > { %3397 = vrot.lane.b32.xlu0 %v4531_v53, %s4824_s18  ;;  %v3353_v53 = vrot.slane %v4527_v9, 1  ;;  %v6782_v9 = vld [vmem:[#allocation3 + $0x20] sm:$0xf] }
 0x513   : > { %3399 = vrot.lane.b32.xlu1 %v4532_v16, %s4824_s18  ;;  %v2997_v16 = vld [vmem:[#allocation3 + $0x10] sm:$0xe] }
 0x516   : > { %3409 = vrot.lane.b32.xlu0 %v4537_v33, %s4824_s18  ;;  %v4524_v33 = vcombine.low %v2997_v16, %v6748_v28  ;;  %v4551_v16 = vcombine.low %v3025_v2, %v6772_v58 }
 0x517   : > { %3403 = vrot.lane.b32.xlu1 %v4534_v24, %s4824_s18  ;;  %v4523_v24 = vcombine.low %v2996_v40, %v6746_v23 }
 0x518   : > { %v3350_v48 = vrot.slane %v4524_v33, 1  ;;  %v6788_v33 = vld [vmem:[#allocation3 + $0x1c] sm:$0x1] }
 0x51a   : > { %3401 = vrot.lane.b32.xlu0 %v4533_v35, %s4824_s18  ;;  %v3349_v35 = vrot.slane %v4523_v24, 1  ;;  %v3021_v24 = vld [vmem:[#allocation3 + $0x10] sm:$0xe] }
 0x51b   : > { %3183 = vrot.lane.b32.xlu1 %v3170_v52, %s4823_s17  ;;  %v3003_v52 = vld [vmem:[#allocation3 + $0x40] sm:$0xe] }
 0x51c   : > { %v4530_v27 = vcombine.low %v3003_v52, %v6756_v15 }
 0x51e   : > { %3181 = vrot.lane.b32.xlu0 %v3169_v60, %s4823_s17  ;;  %v2998_v60 = vld [vmem:[#allocation3 + $0x18] sm:$0xe]  ;;  %v3356_v3 = vrot.slane %v4530_v27, 1  ;;  %v3537_v27 = vrot.slane %v4551_v16, 1 }
 0x51f   : > { %3175 = vrot.lane.b32.xlu1 %v3166_v54, %s4823_s17  ;;  %v6764_v54 = vld [vmem:[#allocation3 + $0x24] sm:$0x1] }
 0x522   : > { %3185 = vrot.lane.b32.xlu0 %v3171_v13, %s4823_s17  ;;  %v4525_v13 = vcombine.low %v2998_v60, %v6762_v62 }
 0x523   : > { %3187 = vrot.lane.b32.xlu1 %v3172_v42, %s4823_s17  ;;  %v4526_v42 = vcombine.low %v2999_v29, %v6764_v54 }
 0x524   : > { %v3351_v36 = vrot.slane %v4525_v13, 1  ;;  %v3027_v13 = vld [vmem:[#allocation3 + $0x40] sm:$0xe] }
 0x525   : > { %v3352_v40 = vrot.slane %v4526_v42, 1  ;;  %v6810_v42 = vld [vmem:[#allocation3 + $0x10] sm:$0xf] }
 0x526   : > { %3177 = vrot.lane.b32.xlu0 %v3167_v18, %s4823_s17  ;;  %v4496_v18 = vcombine.low %v6768_v30, %v6701_v47  ;;  %v4495_v47 = vcombine.low %v6782_v9, %v6714_v39  ;;  %v4498_v39 = vcombine.low %v6798_v55, %v6724_v21 }
 0x527   : > { %3179 = vrot.lane.b32.xlu1 %v3168_v41, %s4823_s17  ;;  %v6780_v41 = vld [vmem:[#allocation3 + $0x8] sm:$0xf] }
 0x528   : > { %v4492_v52 = vcombine.low %v6780_v41, %v6710_v10  ;;  %v3098_v32 = vshrl.u32 %v4495_v47, 16 }
 0x52a   : > { %3365 = vrot.lane.b32.xlu0 %v3353_v53, %s4832_s24  ;;  %v4552_v53 = vcombine.low %v3026_v57, %v6774_v26  ;;  %v3100_v57 = vshll.u32 %v4495_v47, 16  ;;  %v3119_v47 = vshrl.u32 %v4498_v39, 16 }
 0x52b   : > { %3367 = vrot.lane.b32.xlu1 %v3354_v37, %s4832_s24  ;;  %v6786_v37 = vld [vmem:[#allocation3 + $0x14] sm:$0x1] }
 0x52c   : > { %v3538_v60 = vrot.slane %v4552_v53, 1  ;;  %v4547_v29 = vcombine.low %v3021_v24, %v6786_v37  ;;  %v3079_v24 = vshll.u32 %v4492_v52, 16 }
 0x52e   : > { %3357 = vrot.lane.b32.xlu0 %v3349_v35, %s4832_s24  ;;  %v3107_v35 = vshll.u32 %v4496_v18, 16 }
 0x52f   : > { %3359 = vrot.lane.b32.xlu1 %v3350_v48, %s4832_s24  ;;  %v6796_v48 = vld [vmem:[#allocation3 + $0x30] sm:$0xf] }
 0x530   : > { %v4497_v10 = vcombine.low %v6796_v48, %v6722_v5  ;;  %v3109_v2 = vrot.slane %v3107_v35, 1  ;;  %v4493_v5 = vcombine.low %v6810_v42, %v6730_v51  ;;  %v3102_v35 = vrot.slane %v3100_v57, 1 }
 0x531   : > { %v4520_v51 = vcombine.low %v6639_v59, %v6740_v8 }
 0x532   : > { %3369 = vrot.lane.b32.xlu0 %v3355_v22, %s4832_s24  ;;  %v4548_v22 = vcombine.low %v3022_v6, %v6788_v33  ;;  %v3105_v6 = vshrl.u32 %v4496_v18, 16  ;;  %v4519_v18 = vcombine.low %v6641_v0, %v6738_v19  ;;  %v4516_v0 = vcombine.low %v6647_v49, %v6748_v28 }
 0x533   : > { %3371 = vrot.lane.b32.xlu1 %v3356_v3, %s4832_s24  ;;  %v6802_v3 = vld [vmem:[#allocation3 + $0x44] sm:$0x1] }
 0x534   : > { %v3534_v16 = vrot.slane %v4548_v22, 1  ;;  %v4553_v53 = vcombine.low %v3027_v13, %v6802_v3  ;;  %v3110_v45 = vor.u32 %v3109_v2, %v3105_v6  ;;  %v3121_v22 = vshll.u32 %v4498_v39, 16 }
 0x535   : > { %v3077_v13 = vshrl.u32 %v4492_v52, 16  ;;  %v3284_v59 = vshll.u32 %v4519_v18, 16  ;;  %v3291_v6 = vshll.u32 %v4520_v51, 16  ;;  %v4521_v39 = vcombine.low %v6659_v44, %v6754_v50 }
 0x536   : > { %3361 = vrot.lane.b32.xlu0 %v3351_v36, %s4832_s24  ;;  %v6812_v36 = vld [vmem:[#allocation3 + $0x18] sm:$0xf] }
 0x537   : > { %3363 = vrot.lane.b32.xlu1 %v3352_v40, %s4832_s24  ;;  %v3533_v40 = vrot.slane %v4547_v29, 1  ;;  %v4494_v21 = vcombine.low %v6812_v36, %v6732_v61  ;;  %v3081_v29 = vrot.slane %v3079_v24, 1  ;;  %v3112_v24 = vshrl.u32 %v4497_v10, 16 }
 0x539   : > { %v3082_v57 = vor.u32 %v3081_v29, %v3077_v13  ;;  %v3093_v2 = vshll.u32 %v4494_v21, 16  ;;  %v3263_v29 = vshll.u32 %v4516_v0, 16  ;;  %v6841_v13 = vcombine.low %v6669_v46, %v6762_v62 }
 0x53a   : > { %3549 = vrot.lane.b32.xlu0 %v3537_v27, %s4826_s20  ;;  %v3114_v27 = vshll.u32 %v4497_v10, 16  ;;  %v3084_v10 = vshrl.u32 %v4493_v5, 16 }
 0x53b   : > { %3551 = vrot.lane.b32.xlu1 %v3538_v60, %s4826_s20  ;;  %v3539_v60 = vrot.slane %v4553_v53, 1  ;;  %v3086_v53 = vshll.u32 %v4493_v5, 16  ;;  %v3095_v52 = vrot.slane %v3093_v2, 1  ;;  %v6845_v5 = vcombine.low %v6667_v25, %v6764_v54 }
 0x53c   : > { %v3116_v61 = vrot.slane %v3114_v27, 1  ;;  %v3265_v46 = vrot.slane %v3263_v29, 1  ;;  %v6854_v25 = vcombine.low %v6679_v56, %v6772_v58  ;;  %v3261_v54 = vshrl.u32 %v4516_v0, 16 }
 0x53d   : > { %v3088_v8 = vrot.slane %v3086_v53, 1  ;;  %v6867_v53 = vcombine.low %v6677_v1, %v6774_v26  ;;  %v3277_v0 = vshll.u32 %v6845_v5, 16  ;;  %v3698_v1 = vld [vmem:[%s7254_s2 + $0x20] sm:$0xff]  ;;  %v3699_v26 = vld [vmem:[%s7254_s2 + $0x28] sm:$0xff] }
 0x53e   : > { %3541 = vrot.lane.b32.xlu0 %v3533_v40, %s4826_s20  ;;  %v3103_v40 = vor.u32 %v3102_v35, %v3098_v32  ;;  %v3117_v19 = vor.u32 %v3116_v61, %v3112_v24  ;;  %v3091_v35 = vshrl.u32 %v4494_v21, 16  ;;  %v3702_v21 = vld [vmem:[%s7254_s2 + $0x40] sm:$0xff]  ;;  %v3266_v24 = vor.u32 %v3265_v46, %v3261_v54 }
 0x53f   : > { %3543 = vrot.lane.b32.xlu1 %v3534_v16, %s4826_s20  ;;  %v3123_v16 = vrot.slane %v3121_v22, 1  ;;  %v3089_v28 = vor.u32 %v3088_v8, %v3084_v10  ;;  %v3282_v22 = vshrl.u32 %v4519_v18, 16  ;;  %v4539_v8 = vcombine.low %v6689_v38, %v6786_v37  ;;  %v3696_v38 = vld [vmem:[%s7254_s2 + $0x10] sm:$0xff]  ;;  %v3694_v46 = vld [vmem:[%s7254_s2] sm:$0xff] }
 0x540   : > { %v3096_v27 = vor.u32 %v3095_v52, %v3091_v35  ;;  %v4540_v52 = vcombine.low %v6687_v12, %v6788_v33  ;;  %v3468_v10 = vshll.u32 %v6854_v25, 16  ;;  %v6886_v35 = vld [vmem:[#allocation3 + $0x2c] sm:$0x1]  ;;  %v3697_v12 = vld [vmem:[%s7254_s2 + $0x18] sm:$0xff]  ;;  %v3268_v37 = vshrl.u32 %v6841_v13, 16 }
 0x541   : > { %v3124_v32 = vor.u32 %v3123_v16, %v3119_v47  ;;  %v3701_v16 = vld [vmem:[%s7254_s2 + $0x38] sm:$0xff]  ;;  %v3275_v33 = vshrl.u32 %v6845_v5, 16 }
 0x542   : > { %3553 = vrot.lane.b32.xlu0 %v3539_v60, %s4826_s20  ;;  %v3293_v60 = vrot.slane %v3291_v6, 1  ;;  %v3470_v29 = vrot.slane %v3468_v10, 1 }
 0x543   : > { %3135 = vrot.lane.b32.xlu1 %v3110_v45, %s4822_s16  ;;  %v4515_v45 = vcombine.low %v6649_v11, %v6746_v23  ;;  %v4522_v11 = vcombine.low %v6657_v17, %v6756_v15  ;;  %v3286_v23 = vrot.slane %v3284_v59, 1  ;;  %v3289_v17 = vshrl.u32 %v4520_v51, 16 }
 0x544   : > { %v3298_v15 = vshll.u32 %v4521_v39, 16 }
 0x545   : > { %v3256_v49 = vshll.u32 %v4515_v45, 16  ;;  %v3287_v44 = vor.u32 %v3286_v23, %v3282_v22  ;;  %v3294_v18 = vor.u32 %v3293_v60, %v3289_v17  ;;  %v3305_v62 = vshll.u32 %v4522_v11, 16  ;;  %v3015_v17 = vld [vmem:[#allocation3 + $0x24] sm:$0x1] }
 0x546   : > { %3133 = vrot.lane.b32.xlu0 %v3103_v40, %s4822_s16  ;;  %v3707_v40 = vpack.c.bf16 %v3702_v21, %v3702_v21  ;;  %v3254_v61 = vshrl.u32 %v4515_v45, 16  ;;  %v3300_v58 = vrot.slane %v3298_v15, 1  ;;  %v3270_v45 = vshll.u32 %v6841_v13, 16 }
 0x547   : > { %3127 = vrot.lane.b32.xlu1 %v3082_v57, %s4822_s16  ;;  %v3258_v50 = vrot.slane %v3256_v49, 1  ;;  %v3700_v57 = vld [vmem:[%s7254_s2 + $0x30] sm:$0xff]  ;;  %v3307_v47 = vrot.slane %v3305_v62, 1  ;;  %v3303_v59 = vshrl.u32 %v4522_v11, 16  ;;  %v3279_v49 = vrot.slane %v3277_v0, 1  ;;  %v3695_v62 = vld [vmem:[%s7254_s2 + $0x8] sm:$0xff] }
 0x548   : > { %v3743_v51 = vsel %vm3741_vm3, %v3707_v40, 0  ;;  %4622 = vmatprep.subr.msk.bf16.mxu1 %vm3741_vm3, %v3707_v40  ;;  %v3706_v2 = vpack.c.bf16 %v3701_v16, %v3700_v57  ;;  %4621 = vmatprep.subr.msk.bf16.mxu0 %vm3741_vm3, %v3707_v40  ;;  %v3272_v23 = vrot.slane %v3270_v45, 1  ;;  %v3704_v11 = vpack.c.bf16 %v3697_v12, %v3696_v38 }
 0x549   : > { %v3259_v56 = vor.u32 %v3258_v50, %v3254_v61  ;;  %4616 = vmatpush3.bf16.msra.mxu1 %v3743_v51  ;;  %4594 = vmatpush3.bf16.msra.mxu0 %v3743_v51  ;;  %v4545_v60 = vcombine.low %v6699_v34, %v6802_v3  ;;  %v3440_v22 = vshll.u32 %v4539_v8, 16  ;;  %v3280_v50 = vor.u32 %v3279_v49, %v3275_v33 }
 0x54a   : > { %3137 = vrot.lane.b32.xlu0 %v3117_v19, %s4822_s16  ;;  %v3296_v19 = vshrl.u32 %v4521_v39, 16  ;;  %4612 = vmatprep.subr.bf16.mxu1 %v3706_v2  ;;  %v3308_v39 = vor.u32 %v3307_v47, %v3303_v59  ;;  %v3447_v21 = vshll.u32 %v4540_v52, 16  ;;  %v3466_v13 = vshrl.u32 %v6854_v25, 16 }
 0x54b   : > { %3139 = vrot.lane.b32.xlu1 %v3124_v32, %s4822_s16  ;;  %4595 = vmatprep.subr.bf16.mxu0 %v3706_v2  ;;  %v3705_v32 = vpack.c.bf16 %v3699_v26, %v3698_v1  ;;  %v4541_v34 = vcombine.low %v6712_v14, %v3015_v17  ;;  %v3442_v5 = vrot.slane %v3440_v22, 1  ;;  %v3703_v54 = vpack.c.bf16 %v3695_v62, %v3694_v46  ;;  %v3023_v26 = vld [vmem:[#allocation3 + $0x20] sm:$0xe] }
 0x54c   : > { %v3301_v6 = vor.u32 %v3300_v58, %v3296_v19  ;;  %v3471_v3 = vor.u32 %v3470_v29, %v3466_v13  ;;  %v3449_v61 = vrot.slane %v3447_v21, 1  ;;  %v3438_v51 = vshrl.u32 %v4539_v8, 16 }
 0x54d   : > { %4617 = vmatpush3.bf16.msra.mxu1 %v3706_v2  ;;  %4596 = vmatpush3.bf16.msra.mxu0 %v3706_v2  ;;  %v3445_v14 = vshrl.u32 %v4540_v52, 16  ;;  %v3454_v58 = vshll.u32 %v4541_v34, 16  ;;  %v3024_v2 = vld [vmem:[#allocation3 + $0x28] sm:$0xe]  ;;  %v3452_v59 = vshrl.u32 %v4541_v34, 16  ;;  %v4549_v52 = vcombine.low %v3023_v26, %v3015_v17 }
 0x54e   : > { %3129 = vrot.lane.b32.xlu0 %v3089_v28, %s4822_s16  ;;  %v3475_v28 = vshll.u32 %v6867_v53, 16  ;;  %4613 = vmatprep.subr.bf16.mxu1 %v3705_v32  ;;  %v3443_v57 = vor.u32 %v3442_v5, %v3438_v51  ;;  %v4550_v1 = vcombine.low %v3024_v2, %v6886_v35 }
 0x54f   : > { %3131 = vrot.lane.b32.xlu1 %v3096_v27, %s4822_s16  ;;  %4597 = vmatprep.subr.bf16.mxu0 %v3705_v32  ;;  %v4542_v27 = vcombine.low %v6697_v31, %v6886_v35  ;;  %v3473_v31 = vshrl.u32 %v6867_v53, 16  ;;  %v3450_v16 = vor.u32 %v3449_v61, %v3445_v14  ;;  %v3456_v19 = vrot.slane %v3454_v58, 1 }
 0x550   : > { %v3477_v15 = vrot.slane %v3475_v28, 1  ;;  %v3536_v8 = vrot.slane %v4550_v1, 1 }
 0x551   : > { %4618 = vmatpush3.bf16.msra.mxu1 %v3705_v32  ;;  %4598 = vmatpush3.bf16.msra.mxu0 %v3705_v32  ;;  %v3461_v25 = vshll.u32 %v4542_v27, 16  ;;  %v3459_v47 = vshrl.u32 %v4542_v27, 16  ;;  %v3457_v32 = vor.u32 %v3456_v19, %v3452_v59 }
 0x552   : > { %3317 = vrot.lane.b32.xlu0 %v3287_v44, %s4831_s23  ;;  %v3273_v44 = vor.u32 %v3272_v23, %v3268_v37  ;;  %4614 = vmatprep.subr.bf16.mxu1 %v3704_v11  ;;  %v3478_v40 = vor.u32 %v3477_v15, %v3473_v31 }
 0x553   : > { %3319 = vrot.lane.b32.xlu1 %v3294_v18, %s4831_s23  ;;  %4599 = vmatprep.subr.bf16.mxu0 %v3704_v11  ;;  %v3482_v18 = vshll.u32 %v4545_v60, 16 }
 0x555   : > { %4619 = vmatpush3.bf16.msra.mxu1 %v3704_v11  ;;  %4600 = vmatpush3.bf16.msra.mxu0 %v3704_v11  ;;  %v3484_v53 = vrot.slane %v3482_v18, 1 }
 0x556   : > { %3309 = vrot.lane.b32.xlu0 %v3259_v56, %s4831_s23  ;;  %4615 = vmatprep.subr.bf16.mxu1 %v3703_v54  ;;  %v3463_v56 = vrot.slane %v3461_v25, 1 }
 0x557   : > { %3311 = vrot.lane.b32.xlu1 %v3266_v24, %s4831_s23  ;;  %4601 = vmatprep.subr.bf16.mxu0 %v3703_v54  ;;  %v3480_v24 = vshrl.u32 %v4545_v60, 16 }
 0x558   : > { %v3464_v0 = vor.u32 %v3463_v56, %v3459_v47 }
 0x559   : > { %4620 = vmatpush3.bf16.msra.mxu1 %v3703_v54  ;;  %4602 = vmatpush3.bf16.msra.mxu0 %v3703_v54  ;;  %v3485_v45 = vor.u32 %v3484_v53, %v3480_v24 }
 0x55a   : > { %3321 = vrot.lane.b32.xlu0 %v3301_v6, %s4831_s23 }
 0x55b   : > { %3323 = vrot.lane.b32.xlu1 %v3308_v39, %s4831_s23  ;;  %v3535_v39 = vrot.slane %v4549_v52, 1 }
 0x55e   : > { %3313 = vrot.lane.b32.xlu0 %v3273_v44, %s4831_s23 }
 0x55f   : > { %3315 = vrot.lane.b32.xlu1 %v3280_v50, %s4831_s23 }
 0x562   : > { %3501 = vrot.lane.b32.xlu0 %v3471_v3, %s4825_s19 }
 0x563   : > { %3503 = vrot.lane.b32.xlu1 %v3478_v40, %s4825_s19 }
 0x566   : > { %3493 = vrot.lane.b32.xlu0 %v3443_v57, %s4825_s19 }
 0x567   : > { %3495 = vrot.lane.b32.xlu1 %v3450_v16, %s4825_s19 }
 0x56a   : > { %3505 = vrot.lane.b32.xlu0 %v3485_v45, %s4825_s19 }
 0x56b   : > { %3499 = vrot.lane.b32.xlu1 %v3464_v0, %s4825_s19 }
 0x56e   : > { %3497 = vrot.lane.b32.xlu0 %v3457_v32, %s4825_s19 }
 0x56f   : > { %3547 = vrot.lane.b32.xlu1 %v3536_v8, %s4826_s20 }
 0x570   : > { %v3222_v10 = vpop.permute.xlu0 %3221 }
 0x571   : > { %v3224_v6 = vpop.permute.xlu1 %3223 }
 0x572   : > { %3545 = vrot.lane.b32.xlu0 %v3535_v39, %s4826_s20 }
 0x574   : > { %v3214_v35 = vpop.permute.xlu0 %3213 }
 0x575   : > { %v6924_v23 = vpop.permute.xlu1 %3215 }
 0x578   : > { %v6928_v28 = vpop.permute.xlu0 %3225 }
 0x579   : > { %v6926_v49 = vpop.permute.xlu1 %3227 }
 0x57c   : > { %v6932_v12 = vpop.permute.xlu0 %3217 }
 0x57d   : > { %v6930_v38 = vpop.permute.xlu1 %3219 }
 0x580   : > { %v6936_v33 = vpop.permute.xlu0 %3405 }
 0x581   : > { %v6934_v37 = vpop.permute.xlu1 %3407 }
 0x584   : > { %v6940_v27 = vpop.permute.xlu0 %3397 }
 0x585   : > { %v6938_v11 = vpop.permute.xlu1 %3399 }
 0x588   : > { %v6944_v29 = vpop.permute.xlu0 %3409 }
 0x589   : > { %v6942_v60 = vpop.permute.xlu1 %3403 }
 0x58a   : > { %7384 = vst [vmem:[#allocation8_spill] sm:$0xff] %v6942_v60 }
 0x58c   : > { %v6946_v17 = vpop.permute.xlu0 %3401 }
 0x58d   : > { %v3184_v22 = vpop.permute.xlu1 %3183  ;;  %7385 = vst [vmem:[#allocation10_spill] sm:$0xff] %v6946_v17  ;;  %v4810_v17 = vld [vmem:[#allocation3] sm:$0xf] }
 0x58e   : > { %v3559_v60 = vsel %vm2281_vm5, %v4810_v17, %v5842_v20 }
 0x58f   : > { %v3582_v20 = vsel %vm2290_vm7, %v3559_v60, %v5846_v43 }
 0x590   : > { %v3182_v44 = vpop.permute.xlu0 %3181  ;;  %v3598_v17 = vsel %vm2299_vm6, %v3582_v20, %v3214_v35 }
 0x591   : > { %v3176_v50 = vpop.permute.xlu1 %3175 }
 0x594   : > { %v3186_v15 = vpop.permute.xlu0 %3185 }
 0x595   : > { %v3188_v21 = vpop.permute.xlu1 %3187 }
 0x598   : > { %v6948_v13 = vpop.permute.xlu0 %3177 }
 0x599   : > { %v6950_v31 = vpop.permute.xlu1 %3179 }
 0x59c   : > { %v3366_v34 = vpop.permute.xlu0 %3365 }
 0x59d   : > { %v3368_v3 = vpop.permute.xlu1 %3367 }
 0x5a0   : > { %v3358_v5 = vpop.permute.xlu0 %3357 }
 0x5a1   : > { %v3360_v18 = vpop.permute.xlu1 %3359 }
 0x5a4   : > { %v6952_v46 = vpop.permute.xlu0 %3369 }
 0x5a5   : > { %v3372_v62 = vpop.permute.xlu1 %3371 }
 0x5a8   : > { %v6954_v40 = vpop.permute.xlu0 %3361 }
 0x5a9   : > { %v6956_v61 = vpop.permute.xlu1 %3363 }
 0x5ac   : > { %v3550_v25 = vpop.permute.xlu0 %3549 }
 0x5ad   : > { %v3552_v54 = vpop.permute.xlu1 %3551 }
 0x5b0   : > { %v6958_v51 = vpop.permute.xlu0 %3541 }
 0x5b1   : > { %v6960_v14 = vpop.permute.xlu1 %3543 }
 0x5b4   : > { %v6962_v57 = vpop.permute.xlu0 %3553 }
 0x5b5   : > { %v3136_v16 = vpop.permute.xlu1 %3135 }
 0x5b6   : > { %v3574_v19 = vsel %vm2281_vm5, %v6768_v30, %v3136_v16 }
 0x5b7   : > { %v3592_v32 = vsel %vm2290_vm7, %v3574_v19, %v3184_v22 }
 0x5b8   : > { %v3134_v53 = vpop.permute.xlu0 %3133 }
 0x5b9   : > { %v3128_v56 = vpop.permute.xlu1 %3127  ;;  %v3571_v1 = vsel %vm2281_vm5, %v6782_v9, %v3134_v53 }
 0x5ba   : > { %v3590_v8 = vsel %vm2290_vm7, %v3571_v1, %v3182_v44  ;;  %v3562_v52 = vsel %vm2281_vm5, %v6780_v41, %v3128_v56  ;;  %v3608_v44 = vsel %vm2299_vm6, %v3592_v32, %v3224_v6 }
 0x5bb   : > { %v3584_v9 = vsel %vm2290_vm7, %v3562_v52, %v3176_v50  ;;  %v3606_v22 = vsel %vm2299_vm6, %v3590_v8, %v3222_v10 }
 0x5bc   : > { %v3138_v58 = vpop.permute.xlu0 %3137 }
 0x5bd   : > { %v3140_v2 = vpop.permute.xlu1 %3139  ;;  %v3577_v53 = vsel %vm2281_vm5, %v6796_v48, %v3138_v58  ;;  %v3600_v48 = vsel %vm2299_vm6, %v3584_v9, %v6924_v23 }
 0x5be   : > { %v3580_v39 = vsel %vm2281_vm5, %v6798_v55, %v3140_v2  ;;  %v3594_v50 = vsel %vm2290_vm7, %v3577_v53, %v3186_v15 }
 0x5bf   : > { %v3596_v41 = vsel %vm2290_vm7, %v3580_v39, %v3188_v21  ;;  %v3610_v60 = vsel %vm2299_vm6, %v3594_v50, %v6928_v28 }
 0x5c0   : > { %v3130_v24 = vpop.permute.xlu0 %3129 }
 0x5c1   : > { %v3132_v47 = vpop.permute.xlu1 %3131  ;;  %v3565_v23 = vsel %vm2281_vm5, %v6810_v42, %v3130_v24 }
 0x5c2   : > { %v3568_v42 = vsel %vm2281_vm5, %v6812_v36, %v3132_v47  ;;  %vm4348_vm5 = vcmask 654336  }
 0x5c4   : > { %v3318_v45 = vpop.permute.xlu0 %3317 }
 0x5c5   : > { %v3320_v0 = vpop.permute.xlu1 %3319  ;;  %v3622_v56 = vsel %vm2308_vm8, %v3606_v22, %v3318_v45  ;;  %v3612_v45 = vsel %vm2299_vm6, %v3596_v41, %v6926_v49  ;;  %v7386_v41 = vld [vmem:[#allocation8_spill] sm:$0xff] }
 0x5c6   : > { %v3624_v55 = vsel %vm2308_vm8, %v3608_v44, %v3320_v0  ;;  %v3638_v6 = vsel %vm2317_vm9, %v3622_v56, %v3366_v34 }
 0x5c7   : > { %v3640_v21 = vsel %vm2317_vm9, %v3624_v55, %v3368_v3  ;;  %v3654_v34 = vsel %vm2326_vm10, %v3638_v6, %v6936_v33  ;;  %v7387_v55 = vld [vmem:[#allocation10_spill] sm:$0xff] }
 0x5c8   : > { %v3310_v26 = vpop.permute.xlu0 %3309  ;;  %v3656_v49 = vsel %vm2326_vm10, %v3640_v21, %v6934_v37  ;;  %v3586_v37 = vsel %vm2290_vm7, %v3565_v23, %v6948_v13  ;;  %v4564_v21 = vld [vmem:[%s7254_s2 + $0x49] ss:$0 sm:$0xff] }
 0x5c9   : > { %v3312_v59 = vpop.permute.xlu1 %3311  ;;  %v3614_v2 = vsel %vm2308_vm8, %v3598_v17, %v3310_v26 }
 0x5ca   : > { %v3616_v43 = vsel %vm2308_vm8, %v3600_v48, %v3312_v59  ;;  %v3630_v15 = vsel %vm2317_vm9, %v3614_v2, %v3358_v5 }
 0x5cb   : > { %v3632_v19 = vsel %vm2317_vm9, %v3616_v43, %v3360_v18 }
 0x5cc   : > { %v3322_v30 = vpop.permute.xlu0 %3321  ;;  %v3648_v36 = vsel %vm2326_vm10, %v3632_v19, %v6938_v11 }
 0x5cd   : > { %v3324_v16 = vpop.permute.xlu1 %3323  ;;  %v3626_v5 = vsel %vm2308_vm8, %v3610_v60, %v3322_v30 }
 0x5ce   : > { %v3628_v35 = vsel %vm2308_vm8, %v3612_v45, %v3324_v16 }
 0x5cf   : > { %v3644_v1 = vsel %vm2317_vm9, %v3628_v35, %v3372_v62  ;;  %v3646_v62 = vsel %vm2326_vm10, %v3630_v15, %v6940_v27 }
 0x5d0   : > { %v3314_v58 = vpop.permute.xlu0 %3313  ;;  %v3660_v18 = vsel %vm2326_vm10, %v3644_v1, %v5840_v63 }
 0x5d1   : > { %v3316_v10 = vpop.permute.xlu1 %3315  ;;  %v3676_v11 = vsel %vm2335_vm11, %v3660_v18, %v5844_v4 }
 0x5d4   : > { %v3502_v3 = vpop.permute.xlu0 %3501 }
 0x5d5   : > { %v3504_v0 = vpop.permute.xlu1 %3503  ;;  %v3670_v28 = vsel %vm2335_vm11, %v3654_v34, %v3502_v3 }
 0x5d6   : > { %v3672_v26 = vsel %vm2335_vm11, %v3656_v49, %v3504_v0  ;;  %v3687_v33 = vsel %vm3677_vm4, %v3670_v28, %v3550_v25  ;;  %v3588_v25 = vsel %vm2290_vm7, %v3568_v42, %v6950_v31  ;;  %v3602_v31 = vsel %vm2299_vm6, %v3586_v37, %v6932_v12 }
 0x5d7   : > { %v3689_v24 = vsel %vm3677_vm4, %v3672_v26, %v3552_v54  ;;  %v3642_v54 = vsel %vm2317_vm9, %v3626_v5, %v6952_v46  ;;  %v3604_v46 = vsel %vm2299_vm6, %v3588_v25, %v6930_v38  ;;  %v3693_v12 = vsel %vm3677_vm4, %v3676_v11, %v5848_v7 }
 0x5d8   : > { %v4557_v59 = vcombine.low %v3687_v33, %v3689_v24  ;;  %v3494_v32 = vpop.permute.xlu0 %3493  ;;  %v3658_v39 = vsel %vm2326_vm10, %v3642_v54, %v6944_v29  ;;  %v3620_v9 = vsel %vm2308_vm8, %v3604_v46, %v3316_v10  ;;  %vm4353_vm6 = vcmask 785408  }
 0x5d9   : > { %v3496_v47 = vpop.permute.xlu1 %3495  ;;  %v3662_v8 = vsel %vm2335_vm11, %v3646_v62, %v3494_v32  ;;  %v3636_v53 = vsel %vm2317_vm9, %v3620_v9, %v6956_v61 }
 0x5da   : > { %v3664_v13 = vsel %vm2335_vm11, %v3648_v36, %v3496_v47  ;;  %4607 = vmatprep.mubr.msk.bf16.mxu1 %vm3728_vm15, %v4557_v59  ;;  %v3679_v63 = vsel %vm3677_vm4, %v3662_v8, %v6958_v51  ;;  %v3618_v51 = vsel %vm2308_vm8, %v3602_v31, %v3314_v58  ;;  %v3652_v56 = vsel %vm2326_vm10, %v3636_v53, %v7386_v41  ;;  %v4563_v58 = vld [vmem:[%s7254_s2 + $0x48] ss:$0 sm:$0xff] }
 0x5db   : > { %v3681_v27 = vsel %vm3677_vm4, %v3664_v13, %v6960_v14  ;;  %v3634_v29 = vsel %vm2317_vm9, %v3618_v51, %v6954_v40  ;;  %vm4358_vm9 = vcmask 916480  }
 0x5dc   : > { %v4555_v52 = vcombine.low %v3679_v63, %v3681_v27  ;;  %v3506_v30 = vpop.permute.xlu0 %3505 }
 0x5dd   : > { %v3500_v16 = vpop.permute.xlu1 %3499  ;;  %v3674_v14 = vsel %vm2335_vm11, %v3658_v39, %v3506_v30 }
 0x5de   : > { %4603 = vmatprep.mubr.msk.bf16.mxu0 %vm3728_vm15, %v4555_v52  ;;  %v3691_v4 = vsel %vm3677_vm4, %v3674_v14, %v6962_v57  ;;  %v3650_v57 = vsel %vm2326_vm10, %v3634_v29, %v7387_v55  ;;  %v3668_v20 = vsel %vm2335_vm11, %v3652_v56, %v3500_v16 }
 0x5df   : > { %v4558_v38 = vcombine.low %v3691_v4, %v3693_v12 }
 0x5e0   : > { %v3498_v22 = vpop.permute.xlu0 %3497 }
 0x5e1   : > { %4608 = vmatmul.mubr.msk.bf16.vlgmr.msra.gmra.mxu1 %vm3728_vm15, %v4558_v38  ;;  %v3548_v44 = vpop.permute.xlu1 %3547  ;;  %v3666_v7 = vsel %vm2335_vm11, %v3650_v57, %v3498_v22 }
 0x5e2   : > { %v3685_v40 = vsel %vm3677_vm4, %v3668_v20, %v3548_v44 }
 0x5e4   : > { %v3546_v17 = vpop.permute.xlu0 %3545 }
 0x5e5   : > { %v3683_v50 = vsel %vm3677_vm4, %v3666_v7, %v3546_v17 }
 0x5e6   : > { %v4556_v61 = vcombine.low %v3683_v50, %v3685_v40 }
 0x5e8   : > { %4604 = vmatmul.mubr.msk.bf16.vlgmr.msra.gmra.mxu0 %vm3728_vm15, %v4556_v61 }
 0x6a1   : > { %v4609_v48 = vpop.f32.mrf.mxu1 }
 0x6a2   : > { %v3822_v15 = vmul.f32 %v4609_v48, %v4563_v58 }
 0x6a3   : > { %v3795_v10 = vpop.f32.mrf.mxu1 }
 0x6a4   : > { %v3820_v6 = vmul.f32 %v4563_v58, %v3795_v10  ;;  %v7081_v33 = vadd.f32 %v4564_v21, %v3822_v15 }
 0x6a5   : > { %v4610_v2 = vpop.f32.mrf.mxu1 }
 0x6a6   : > { %v7070_v45 = vadd.f32 %v4564_v21, %v3820_v6  ;;  %v3823_v24 = vmul.f32 %v4610_v2, %v4563_v58  ;;  %v4571_v47 = vmul.f32 -1.442695, %v7081_v33 }
 0x6a7   : > { %v3798_v43 = vpop.f32.mrf.mxu1 }
 0x6a8   : > { %v3821_v35 = vmul.f32 %v4563_v58, %v3798_v43  ;;  %v4605_v60 = vpop.f32.mrf.mxu0  ;;  %v4569_v34 = vmul.f32 -1.442695, %v7070_v45  ;;  %v7087_v25 = vadd.f32 %v4564_v21, %v3823_v24 }
 0x6a9   : > { %v3818_v23 = vmul.f32 %v4605_v60, %v4563_v58 }
 0x6aa   : > { %v7073_v3 = vadd.f32 %v4564_v21, %v3821_v35  ;;  %v3779_v49 = vpop.f32.mrf.mxu0  ;;  %4778 = vpow2.f32 %v4569_v34  ;;  %v4572_v8 = vmul.f32 -1.442695, %v7087_v25 }
 0x6ab   : > { %v7075_v0 = vadd.f32 %v4564_v21, %v3818_v23  ;;  %v3816_v19 = vmul.f32 %v4563_v58, %v3779_v49 }
 0x6ac   : > { %v4606_v1 = vpop.f32.mrf.mxu0  ;;  %v4570_v28 = vmul.f32 -1.442695, %v7073_v3 }
 0x6ad   : > { %v4567_v26 = vmul.f32 -1.442695, %v7075_v0  ;;  %v7079_v42 = vadd.f32 %v4564_v21, %v3816_v19  ;;  %v3819_v5 = vmul.f32 %v4606_v1, %v4563_v58 }
 0x6ae   : > { %v3782_v59 = vpop.f32.mrf.mxu0 }
 0x6af   : > { %4780 = vpow2.f32 %v4567_v26  ;;  %v4565_v37 = vmul.f32 -1.442695, %v7079_v42  ;;  %v3831_v18 = vadd.f32 %v4564_v21, %v3819_v5  ;;  %v3817_v62 = vmul.f32 %v4563_v58, %v3782_v59 }
 0x6b0   : > { %4782 = vpow2.f32 %v4570_v28  ;;  %v7389_v28 = vld [vmem:[#allocation7_spill] sm:$0xff] }
 0x6b1   : > { %v4568_v32 = vmul.f32 -1.442695, %v3831_v18  ;;  %v7084_v36 = vadd.f32 %v4564_v21, %v3817_v62  ;;  %4784 = vpow2.f32 %v4565_v37 }
 0x6b3   : > { %4786 = vpow2.f32 %v4568_v32  ;;  %v4566_v54 = vmul.f32 -1.442695, %v7084_v36 }
 0x6b4   : > { %4788 = vpow2.f32 %v4571_v47 }
 0x6b5   : > { %4790 = vpow2.f32 %v4566_v54 }
 0x6b6   : > { %4792 = vpow2.f32 %v4572_v8 }
 0x6b7   : > { %v4779_v13 = vpop.eup %4778 }
 0x6b8   : > { %v3864_v52 = vadd.f32 1.0, %v4779_v13 }
 0x6bc   : > { %v4781_v63 = vpop.eup %4780 }
 0x6bd   : > { %v3862_v27 = vadd.f32 1.0, %v4781_v63  ;;  %v4783_v11 = vpop.eup %4782 }
 0x6be   : > { %v4785_v31 = vpop.eup %4784  ;;  %v3865_v30 = vadd.f32 1.0, %v4783_v11 }
 0x6bf   : > { %4794 = vrcp.f32 %v3862_v27  ;;  %v3860_v51 = vadd.f32 1.0, %v4785_v31 }
 0x6c0   : > { %v4787_v46 = vpop.eup %4786  ;;  %4796 = vrcp.f32 %v3864_v52 }
 0x6c1   : > { %v3863_v39 = vadd.f32 1.0, %v4787_v46  ;;  %v4789_v16 = vpop.eup %4788 }
 0x6c2   : > { %v4791_v9 = vpop.eup %4790  ;;  %v3866_v14 = vadd.f32 1.0, %v4789_v16  ;;  %v7390_v16 = vmov 0.0  }
 0x6c3   : > { %4798 = vrcp.f32 %v3863_v39  ;;  %v3861_v4 = vadd.f32 1.0, %v4791_v9  ;;  %v4793_v12 = vpop.eup %4792 }
 0x6c4   : > { %4800 = vrcp.f32 %v3865_v30  ;;  %v3867_v38 = vadd.f32 1.0, %v4793_v12 }
 0x6c5   : > { %4802 = vrcp.f32 %v3860_v51 }
 0x6c6   : > { %4804 = vrcp.f32 %v3866_v14 }
 0x6c7   : > { %4806 = vrcp.f32 %v3861_v4 }
 0x6c8   : > { %4808 = vrcp.f32 %v3867_v38 }
 0x6cc   : > { %v4795_v29 = vpop.eup %4794 }
 0x6cd   : > { %3896 = vrot.lane.b32.xlu0 %v4795_v29, %s4823_s17  ;;  %v4797_v53 = vpop.eup %4796 }
 0x6d0   : > { %v4799_v22 = vpop.eup %4798 }
 0x6d1   : > { %3900 = vrot.lane.b32.xlu0 %v4797_v53, %s4823_s17  ;;  %3898 = vrot.lane.b32.xlu1 %v4799_v22, %s4823_s17  ;;  %v4801_v44 = vpop.eup %4800 }
 0x6d2   : > { %v4803_v41 = vpop.eup %4802 }
 0x6d3   : > { %v4805_v56 = vpop.eup %4804 }
 0x6d4   : > { %v4807_v55 = vpop.eup %4806 }
 0x6d5   : > { %3892 = vrot.lane.b32.xlu0 %v4803_v41, %s4823_s17  ;;  %3902 = vrot.lane.b32.xlu1 %v4801_v44, %s4823_s17  ;;  %v4809_v57 = vpop.eup %4808 }
 0x6d9   : > { %3904 = vrot.lane.b32.xlu0 %v4805_v56, %s4823_s17  ;;  %3894 = vrot.lane.b32.xlu1 %v4807_v55, %s4823_s17 }
 0x6dd   : > { %3906 = vrot.lane.b32.xlu1 %v4809_v57, %s4823_s17 }
 0x73f   : > { %v3897_v20 = vpop.permute.xlu0 %3896 }
 0x740   : > { %v3918_v7 = vmul.f32 %v3897_v20, %v7075_v0 }
 0x742   : > { %3936 = vrot.lane.b32.xlu0 %v3918_v7, %s4833_s25 }
 0x743   : > { %v3901_v17 = vpop.permute.xlu0 %3900  ;;  %v3899_v40 = vpop.permute.xlu1 %3898 }
 0x744   : > { %v3920_v50 = vmul.f32 %v3901_v17, %v7070_v45  ;;  %v3919_v61 = vmul.f32 %v3899_v40, %v3831_v18 }
 0x746   : > { %3940 = vrot.lane.b32.xlu0 %v3920_v50, %s4833_s25  ;;  %3938 = vrot.lane.b32.xlu1 %v3919_v61, %s4833_s25 }
 0x747   : > { %v3893_v48 = vpop.permute.xlu0 %3892  ;;  %v3903_v58 = vpop.permute.xlu1 %3902 }
 0x748   : > { %v3916_v10 = vmul.f32 %v3893_v48, %v7079_v42  ;;  %v3921_v6 = vmul.f32 %v3903_v58, %v7073_v3  ;;  %v7388_v3 = vld [vmem:[#allocation6_spill] sm:$0xff] }
 0x74a   : > { %3932 = vrot.lane.b32.xlu0 %v3916_v10, %s4833_s25  ;;  %3942 = vrot.lane.b32.xlu1 %v3921_v6, %s4833_s25 }
 0x74b   : > { %v3905_v21 = vpop.permute.xlu0 %3904  ;;  %v3895_v2 = vpop.permute.xlu1 %3894 }
 0x74c   : > { %v3922_v43 = vmul.f32 %v3905_v21, %v7081_v33  ;;  %v3917_v45 = vmul.f32 %v3895_v2, %v7084_v36 }
 0x74e   : > { %3944 = vrot.lane.b32.xlu0 %v3922_v43, %s4833_s25  ;;  %3934 = vrot.lane.b32.xlu1 %v3917_v45, %s4833_s25 }
 0x74f   : > { %v3907_v35 = vpop.permute.xlu1 %3906 }
 0x750   : > { %v3923_v60 = vmul.f32 %v3907_v35, %v7087_v25 }
 0x752   : > { %3946 = vrot.lane.b32.xlu1 %v3923_v60, %s4833_s25 }
 0x7b4   : > { %v3937_v23 = vpop.permute.xlu0 %3936 }
 0x7b5   : > { %v4029_v49 = vrot.slane %v3937_v23, %v7388_v3  ;;  %v4022_v29 = vcombine.high %v3937_v23, %v7390_v16 }
 0x7b7   : > { %v4036_v57 = vrot.slane %v4022_v29, %v7388_v3 }
 0x7b8   : > { %v3941_v15 = vpop.permute.xlu0 %3940  ;;  %v3939_v34 = vpop.permute.xlu1 %3938 }
 0x7b9   : > { %v4044_v0 = vrot.slane %v3939_v34, %v7388_v3  ;;  %v4095_v5 = vrot.slane %v3941_v15, %v7388_v3  ;;  %v4037_v9 = vcombine.high %v3939_v34, %v7390_v16  ;;  %v4088_v53 = vcombine.high %v3941_v15, %v7390_v16 }
 0x7bb   : > { %v4053_v19 = vcombine.high %v4029_v49, %v4044_v0  ;;  %v4052_v54 = vcombine.low %v4029_v49, %v4044_v0  ;;  %v4051_v22 = vrot.slane %v4037_v9, %v7388_v3  ;;  %v4102_v20 = vrot.slane %v4088_v53, %v7388_v3 }
 0x7bc   : > { %v3943_v1 = vpop.permute.xlu1 %3942  ;;  %v3933_v42 = vpop.permute.xlu0 %3932 }
 0x7bd   : > { %v4067_v26 = vrot.slane %v4053_v19, %v7389_v28  ;;  %v4110_v33 = vrot.slane %v3943_v1, %v7388_v3  ;;  %v3963_v37 = vrot.slane %v3933_v42, %v7388_v3  ;;  %v7132_v31 = vrot.slane %v4052_v54, %v7389_v28 }
 0x7be   : > { %v4103_v14 = vcombine.high %v3943_v1, %v7390_v16  ;;  %v3956_v7 = vcombine.high %v3933_v42, %v7390_v16  ;;  %v4068_v17 = vcombine.low %v4036_v57, %v4051_v22  ;;  %v4069_v49 = vcombine.high %v4036_v57, %v4051_v22 }
 0x7bf   : > { %4242 = vrot.lane.b32.xlu0 %v4067_v26, %s4831_s23  ;;  %v4119_v24 = vcombine.high %v4095_v5, %v4110_v33  ;;  %v4118_v62 = vcombine.low %v4095_v5, %v4110_v33  ;;  %v4084_v38 = vcombine.high %v7132_v31, %v7390_v16  ;;  %v4085_v40 = vcombine.high %v4067_v26, %v7390_v16 }
 0x7c0   : > { %v3935_v59 = vpop.permute.xlu1 %3934  ;;  %v3945_v36 = vpop.permute.xlu0 %3944  ;;  %v4117_v44 = vrot.slane %v4103_v14, %v7388_v3  ;;  %v3970_v10 = vrot.slane %v3956_v7, %v7388_v3  ;;  %v4076_v45 = vrot.slane %v4068_v17, %v7389_v28  ;;  %v4083_v42 = vrot.slane %v4069_v49, %v7389_v28 }
 0x7c1   : > { %v3978_v18 = vrot.slane %v3935_v59, %v7388_v3  ;;  %v4133_v32 = vrot.slane %v4119_v24, %v7389_v28  ;;  %v7126_v13 = vrot.slane %v4118_v62, %v7389_v28  ;;  %v4161_v63 = vrot.slane %v3945_v36, %v7388_v3 }
 0x7c2   : > { %v3971_v41 = vcombine.high %v3935_v59, %v7390_v16  ;;  %v4134_v50 = vcombine.low %v4102_v20, %v4117_v44  ;;  %v4154_v6 = vcombine.high %v3945_v36, %v7390_v16  ;;  %v4135_v60 = vcombine.high %v4102_v20, %v4117_v44 }
 0x7c3   : > { %v3987_v47 = vcombine.high %v3963_v37, %v3978_v18  ;;  %4244 = vrot.lane.b32.xlu1 %v4133_v32, %s4831_s23  ;;  %v3986_v27 = vcombine.low %v3963_v37, %v3978_v18  ;;  %v4150_v51 = vcombine.high %v7126_v13, %v7390_v16  ;;  %v4151_v56 = vcombine.high %v4133_v32, %v7390_v16 }
 0x7c4   : > { %v3947_v25 = vpop.permute.xlu1 %3946  ;;  %v3985_v61 = vrot.slane %v3971_v41, %v7388_v3  ;;  %v4142_v43 = vrot.slane %v4134_v50, %v7389_v28  ;;  %v4168_v35 = vrot.slane %v4154_v6, %v7388_v3  ;;  %v4149_v19 = vrot.slane %v4135_v60, %v7389_v28 }
 0x7c5   : > { %v4001_v8 = vrot.slane %v3987_v47, %v7389_v28  ;;  %v4176_v11 = vrot.slane %v3947_v25, %v7388_v3  ;;  %v7135_v46 = vrot.slane %v3986_v27, %v7389_v28  ;;  %v4169_v48 = vcombine.high %v3947_v25, %v7390_v16 }
 0x7c6   : > { %v4002_v21 = vcombine.low %v3970_v10, %v3985_v61  ;;  %v4003_v0 = vcombine.high %v3970_v10, %v3985_v61  ;;  %v4152_v5 = vcombine.high %v4142_v43, %v7390_v16  ;;  %v4086_v59 = vcombine.high %v4076_v45, %v7390_v16 }
 0x7c7   : > { %v4185_v52 = vcombine.high %v4161_v63, %v4176_v11  ;;  %4240 = vrot.lane.b32.xlu1 %v4001_v8, %s4831_s23  ;;  %v4184_v39 = vcombine.low %v4161_v63, %v4176_v11  ;;  %v4018_v12 = vcombine.high %v7135_v46, %v7390_v16  ;;  %v4019_v58 = vcombine.high %v4001_v8, %v7390_v16 }
 0x7c8   : > { %v4183_v2 = vrot.slane %v4169_v48, %v7388_v3  ;;  %v4010_v15 = vrot.slane %v4002_v21, %v7389_v28  ;;  %v4017_v26 = vrot.slane %v4003_v0, %v7389_v28  ;;  %v4153_v37 = vcombine.high %v4149_v19, %v7390_v16 }
 0x7c9   : > { %v4199_v30 = vrot.slane %v4185_v52, %v7389_v28  ;;  %v7145_v4 = vrot.slane %v4184_v39, %v7389_v28  ;;  %v4087_v62 = vcombine.high %v4083_v42, %v7390_v16 }
 0x7ca   : > { %v4200_v23 = vcombine.low %v4168_v35, %v4183_v2  ;;  %v4201_v1 = vcombine.high %v4168_v35, %v4183_v2  ;;  %v4020_v24 = vcombine.high %v4010_v15, %v7390_v16  ;;  %v4021_v32 = vcombine.high %v4017_v26, %v7390_v16 }
 0x7cb   : > { %4228 = vrot.lane.b32.xlu1 %v4150_v51, %s4823_s17  ;;  %4246 = vrot.lane.b32.xlu0 %v4199_v30, %s4831_s23  ;;  %v4216_v55 = vcombine.high %v7145_v4, %v7390_v16  ;;  %v4217_v34 = vcombine.high %v4199_v30, %v7390_v16 }
 0x7cc   : > { %v4208_v3 = vrot.slane %v4200_v23, %v7389_v28  ;;  %v4215_v33 = vrot.slane %v4201_v1, %v7389_v28 }
 0x7ce   : > { %v4218_v18 = vcombine.high %v4208_v3, %v7390_v16  ;;  %v4219_v28 = vcombine.high %v4215_v33, %v7390_v16 }
 0x7cf   : > { %4224 = vrot.lane.b32.xlu1 %v4018_v12, %s4823_s17  ;;  %4226 = vrot.lane.b32.xlu0 %v4084_v38, %s4823_s17 }
 0x7d3   : > { %4260 = vrot.lane.b32.xlu1 %v4151_v56, %s4824_s18  ;;  %4230 = vrot.lane.b32.xlu0 %v4216_v55, %s4823_s17  ;;  %s4455_s17 = sshll.u32 %s7392_s13, 2 }
 0x7d4   : > { %s168_s23 = scalar_lea.vmem %s7255_s3, %s4455_s17 }
 0x7d7   : > { %4256 = vrot.lane.b32.xlu1 %v4019_v58, %s4824_s18  ;;  %4258 = vrot.lane.b32.xlu0 %v4085_v40, %s4824_s18 }
 0x7db   : > { %4276 = vrot.lane.b32.xlu1 %v4142_v43, %s4826_s20  ;;  %4274 = vrot.lane.b32.xlu0 %v4076_v45, %s4826_s20 }
 0x7df   : > { %4272 = vrot.lane.b32.xlu1 %v4010_v15, %s4826_s20  ;;  %4262 = vrot.lane.b32.xlu0 %v4217_v34, %s4824_s18 }
 0x7e3   : > { %4308 = vrot.lane.b32.xlu1 %v4149_v19, %s4834_s26  ;;  %4278 = vrot.lane.b32.xlu0 %v4208_v3, %s4826_s20 }
 0x7e7   : > { %4304 = vrot.lane.b32.xlu1 %v4017_v26, %s4834_s26  ;;  %4306 = vrot.lane.b32.xlu0 %v4083_v42, %s4834_s26 }
 0x7eb   : > { %4292 = vrot.lane.b32.xlu1 %v4152_v5, %s4836_s28  ;;  %4310 = vrot.lane.b32.xlu0 %v4215_v33, %s4834_s26 }
 0x7ef   : > { %4288 = vrot.lane.b32.xlu1 %v4020_v24, %s4836_s28  ;;  %4290 = vrot.lane.b32.xlu0 %v4086_v59, %s4836_s28 }
 0x7f3   : > { %4324 = vrot.lane.b32.xlu1 %v4153_v37, %s4833_s25  ;;  %4294 = vrot.lane.b32.xlu0 %v4218_v18, %s4836_s28 }
 0x7f7   : > { %4326 = vrot.lane.b32.xlu1 %v4219_v28, %s4833_s25  ;;  %4322 = vrot.lane.b32.xlu0 %v4087_v62, %s4833_s25 }
 0x7fb   : > { %4320 = vrot.lane.b32.xlu0 %v4021_v32, %s4833_s25 }
 0x831   : > { %v4243_v47 = vpop.permute.xlu0 %4242 }
 0x835   : > { %v4245_v36 = vpop.permute.xlu1 %4244 }
 0x839   : > { %v4241_v25 = vpop.permute.xlu1 %4240 }
 0x83d   : > { %v4247_v54 = vpop.permute.xlu0 %4246  ;;  %v4229_v8 = vpop.permute.xlu1 %4228 }
 0x83e   : > { %v4334_v22 = vsel %vm2290_vm7, %v7126_v13, %v4229_v8 }
 0x83f   : > { %v4338_v56 = vsel %vm2308_vm8, %v4334_v22, %v4245_v36 }
 0x841   : > { %v4227_v63 = vpop.permute.xlu0 %4226  ;;  %v4225_v27 = vpop.permute.xlu1 %4224 }
 0x842   : > { %v4333_v55 = vsel %vm2290_vm7, %v7132_v31, %v4227_v63  ;;  %v4332_v31 = vsel %vm2290_vm7, %v7135_v46, %v4225_v27 }
 0x843   : > { %v4337_v13 = vsel %vm2308_vm8, %v4333_v55, %v4243_v47  ;;  %v4336_v46 = vsel %vm2308_vm8, %v4332_v31, %v4241_v25 }
 0x845   : > { %v4231_v11 = vpop.permute.xlu0 %4230  ;;  %v4261_v52 = vpop.permute.xlu1 %4260 }
 0x846   : > { %v4335_v57 = vsel %vm2290_vm7, %v7145_v4, %v4231_v11  ;;  %v4342_v20 = vsel %vm2326_vm10, %v4338_v56, %v4261_v52 }
 0x847   : > { %v4339_v61 = vsel %vm2308_vm8, %v4335_v57, %v4247_v54 }
 0x849   : > { %v4259_v39 = vpop.permute.xlu0 %4258  ;;  %v4257_v30 = vpop.permute.xlu1 %4256 }
 0x84a   : > { %v4341_v48 = vsel %vm2326_vm10, %v4337_v13, %v4259_v39  ;;  %v4340_v60 = vsel %vm2326_vm10, %v4336_v46, %v4257_v30 }
 0x84d   : > { %v4275_v51 = vpop.permute.xlu0 %4274  ;;  %v4277_v9 = vpop.permute.xlu1 %4276 }
 0x84e   : > { %v4346_v7 = vsel %vm3677_vm4, %v4342_v20, %v4277_v9  ;;  %v4345_v58 = vsel %vm3677_vm4, %v4341_v48, %v4275_v51 }
 0x851   : > { %v4263_v14 = vpop.permute.xlu0 %4262  ;;  %v4273_v12 = vpop.permute.xlu1 %4272 }
 0x852   : > { %v4343_v4 = vsel %vm2326_vm10, %v4339_v61, %v4263_v14  ;;  %v4344_v15 = vsel %vm3677_vm4, %v4340_v60, %v4273_v12 }
 0x855   : > { %v4279_v38 = vpop.permute.xlu0 %4278  ;;  %v4309_v29 = vpop.permute.xlu1 %4308 }
 0x856   : > { %v4347_v10 = vsel %vm3677_vm4, %v4343_v4, %v4279_v38 }
 0x859   : > { %v4307_v16 = vpop.permute.xlu0 %4306  ;;  %v4305_v53 = vpop.permute.xlu1 %4304 }
 0x85d   : > { %v4311_v44 = vpop.permute.xlu0 %4310  ;;  %v4293_v41 = vpop.permute.xlu1 %4292 }
 0x85e   : > { %v4351_v50 = vsel %vm4348_vm5, %v4346_v7, %v4293_v41 }
 0x85f   : > { %v4356_v21 = vsel %vm4353_vm6, %v4351_v50, %v4309_v29 }
 0x861   : > { %v4291_v17 = vpop.permute.xlu0 %4290  ;;  %v4289_v40 = vpop.permute.xlu1 %4288 }
 0x862   : > { %v4350_v43 = vsel %vm4348_vm5, %v4345_v58, %v4291_v17  ;;  %v4349_v3 = vsel %vm4348_vm5, %v4344_v15, %v4289_v40 }
 0x863   : > { %v4355_v34 = vsel %vm4353_vm6, %v4350_v43, %v4307_v16  ;;  %v4354_v18 = vsel %vm4353_vm6, %v4349_v3, %v4305_v53 }
 0x865   : > { %v4295_v6 = vpop.permute.xlu0 %4294  ;;  %v4325_v2 = vpop.permute.xlu1 %4324 }
 0x866   : > { %v4352_v45 = vsel %vm4348_vm5, %v4347_v10, %v4295_v6  ;;  %v4361_v35 = vsel %vm4358_vm9, %v4356_v21, %v4325_v2 }
 0x867   : > { %v4369_v23 = vrot.slane %v4361_v35, 1  ;;  %v4357_v0 = vsel %vm4353_vm6, %v4352_v45, %v4311_v44 }
 0x869   : > { %v4323_v49 = vpop.permute.xlu0 %4322  ;;  %v4327_v19 = vpop.permute.xlu1 %4326  ;;  %v4377_v33 = vadd.f32 %v4369_v23, %v4361_v35 }
 0x86a   : > { %v4360_v1 = vsel %vm4358_vm9, %v4355_v34, %v4323_v49  ;;  %v4362_v26 = vsel %vm4358_vm9, %v4357_v0, %v4327_v19 }
 0x86b   : > { %v4368_v42 = vrot.slane %v4360_v1, 1  ;;  %v4370_v5 = vrot.slane %v4362_v26, 1  ;;  %v4381_v36 = vmul.f32 0.5, %v4377_v33 }
 0x86d   : > { %v4376_v24 = vadd.f32 %v4368_v42, %v4360_v1  ;;  %v4378_v59 = vadd.f32 %v4370_v5, %v4362_v26  ;;  %v4321_v37 = vpop.permute.xlu0 %4320  ;;  %v4389_v63 = vrot.slane %v4381_v36, 6 }
 0x86e   : > { %v4359_v28 = vsel %vm4358_vm9, %v4354_v18, %v4321_v37 }
 0x86f   : > { %v4380_v62 = vmul.f32 0.5, %v4376_v24  ;;  %v4367_v32 = vrot.slane %v4359_v28, 1  ;;  %v4382_v47 = vmul.f32 0.5, %v4378_v59 }
 0x871   : > { %v4375_v25 = vadd.f32 %v4367_v32, %v4359_v28  ;;  %v4387_v54 = vrot.slane %v4380_v62, 7  ;;  %v4391_v27 = vrot.slane %v4382_v47, 5 }
 0x873   : > { %v4379_v8 = vmul.f32 0.5, %v4375_v25 }
 0x875   : > { %v4388_v11 = vsel %vm2527_vm12, %v4387_v54, %v4379_v8 }
 0x876   : > { %v4390_v52 = vsel %vm2530_vm13, %v4389_v63, %v4388_v11 }
 0x877   : > { %v4392_v39 = vsel %vm2533_vm14, %v4391_v27, %v4390_v52 }
 0x878   : > { %4394 = vst [vmem:[%s168_s23] sm:$0xf] %v4392_v39 }
 0x879 PF: > { %s13_s12 = sadd.s32 1, %s4817_s12  }
 0x87a   : > { %p10_p4 = scmp.ge.s32.totalorder %s13_s12, 4  }
 0x87c   :  { %12 = sbr.rel (!%p10_p4) target bundleno = 1 (0x1), region = 64 }

</bundles_post_ra>
